<compile_context>
chip_gen: v7x
topology: tpu7x:2x2x1
jax: 0.10.0
libtpu: 0.0.40
codegen_flags: <defaults>
</compile_context>

<pallas_src>
import math

import jax
import jax.numpy as jnp
from jax import lax
from jax.experimental import pallas as pl
from jax.experimental.pallas import tpu as pltpu


def _round_up(x, m):
    return ((x + m - 1) // m) * m


def _chip_defaults():
    """Pick weight-tile / VMEM-limit defaults from the detected chip.

    v5e/v6e (128 MiB VMEM): tn=512, tk=2048, vmem_limit=64 MiB.
    v7x / unknown (64 MiB VMEM): tn=512, tk=1024, vmem_limit=40 MiB (headroom).
    """
    tn, tk, vmem_limit = 512, 1024, 40 * 1024 * 1024
    try:
        info = pltpu.get_tpu_info()
        vmem_cap = getattr(info, "vmem_capacity_bytes", None)
        if vmem_cap is not None and vmem_cap >= 100 * 1024 * 1024:
            tn, tk, vmem_limit = 512, 2048, 64 * 1024 * 1024
    except Exception:
        pass  # conservative (v7x-safe) defaults
    return tn, tk, vmem_limit


def _noisy_linear_kernel(x_ref, wmu_ref, wsig_ref, eps_out_ref, eps_in_ref,
                         bias_ref, o_ref, acc_ref):
    k = pl.program_id(2)

    @pl.when(k == 0)
    def _():
        acc_ref[...] = jnp.zeros_like(acc_ref)

    # Upcast bf16 weight tiles to f32 and fuse the rank-1 noise on the VPU
    # (explicit f32 fuse: v5e's VPU has no bf16; this is free filler under the
    # weight DMA on all generations).
    eps = eps_out_ref[...] * eps_in_ref[...]                      # [tn,1]*[1,tk]
    w = wmu_ref[...].astype(jnp.float32) + wsig_ref[...].astype(jnp.float32) * eps

    # x: [tm, tk], w: [tn, tk] -> contract both on their last (lane) dim.
    # No transpose / relayout before the MXU.
    acc_ref[...] += lax.dot_general(
        x_ref[...], w,
        dimension_numbers=(((1,), (1,)), ((), ())),
        preferred_element_type=jnp.float32)

    @pl.when(k == pl.num_programs(2) - 1)
    def _():
        o_ref[...] = (acc_ref[...] + bias_ref[...]).astype(o_ref.dtype)


def noisy_linear(x, weight_mu, weight_sigma, eps_in, eps_out,
                 bias_mu, bias_sigma, *, tm=None, tn=None, tk=None,
                 weight_dtype=jnp.bfloat16):
    """Pallas forward of NoisyLinear.

    x:               [B, in_features]                     (float32)
    weight_mu/sigma: [out_features, in_features]
    eps_in:          [in_features]   (factorised noise, input factor)
    eps_out:         [out_features]  (factorised noise, output factor; bias eps)
    bias_mu/sigma:   [out_features]
    """
    B, in_f = x.shape
    out_f, _ = weight_mu.shape

    tn_def, tk_def, vmem_limit = _chip_defaults()
    if tn is None:
        tn = tn_def
    if tk is None:
        tk = tk_def
    if tm is None:
        # Scale tm with batch (up to 512) so each extra batch tile doesn't
        # re-stream the full 2*N*K weight bytes; clamp down when B is tiny.
        tm = 512

    # Tile sizes: multiples of (8, 128); shrink to the (padded) problem if small.
    tm = min(tm, _round_up(B, 8))
    tn = min(tn, _round_up(out_f, 128))
    tk = min(tk, _round_up(in_f, 128))

    # Ensure the parallel (i, j) grid has >= 2 output tiles so v7x's two
    # TensorCores each stream a disjoint half of the weights (harmless on
    # single-TC chips: worst case one extra ~0.35 us grid step).
    def _n_parallel_tiles(tm_, tn_):
        return (_round_up(B, tm_) // tm_) * (_round_up(out_f, tn_) // tn_)

    while tn > 128 and _n_parallel_tiles(tm, tn) < 2:
        tn = max(128, tn // 2)

    Bp = _round_up(B, tm)
    Np = _round_up(out_f, tn)
    Kp = _round_up(in_f, tk)

    # Zero-pad to tile multiples. Padded x columns / weight rows contribute
    # zero; padded output columns/rows are sliced off below.
    xp = jnp.pad(x, ((0, Bp - B), (0, Kp - in_f)))
    # Weights streamed in bf16 (halves HBM weight traffic); fuse/acc stay f32.
    wmu = jnp.pad(weight_mu, ((0, Np - out_f), (0, Kp - in_f))).astype(weight_dtype)
    wsig = jnp.pad(weight_sigma, ((0, Np - out_f), (0, Kp - in_f))).astype(weight_dtype)
    eps_out_col = jnp.pad(eps_out, (0, Np - out_f)).reshape(Np, 1)   # column factor
    eps_in_row = jnp.pad(eps_in, (0, Kp - in_f)).reshape(1, Kp)      # row factor
    # Precompute the noisy bias once in the wrapper: b_mu + b_sigma * eps_out.
    bias = jnp.pad(bias_mu + bias_sigma * eps_out, (0, Np - out_f)).reshape(1, Np)

    grid = (Bp // tm, Np // tn, Kp // tk)
    m_tiles, n_tiles = grid[0], grid[1]
    w_bytes = jnp.dtype(weight_dtype).itemsize

    out = pl.pallas_call(
        _noisy_linear_kernel,
        out_shape=jax.ShapeDtypeStruct((Bp, Np), x.dtype),
        grid_spec=pltpu.PrefetchScalarGridSpec(
            num_scalar_prefetch=0,
            grid=grid,
            in_specs=[
                pl.BlockSpec((tm, tk), lambda i, j, k: (i, k)),   # x
                pl.BlockSpec((tn, tk), lambda i, j, k: (j, k)),   # W_mu   (bf16)
                pl.BlockSpec((tn, tk), lambda i, j, k: (j, k)),   # W_sigma(bf16)
                pl.BlockSpec((tn, 1), lambda i, j, k: (j, 0)),    # eps_out (column)
                pl.BlockSpec((1, tk), lambda i, j, k: (0, k)),    # eps_in  (row)
                pl.BlockSpec((1, tn), lambda i, j, k: (0, j)),    # fused bias
            ],
            out_specs=pl.BlockSpec((tm, tn), lambda i, j, k: (i, j)),
            scratch_shapes=[pltpu.VMEM((tm, tn), jnp.float32)],
        ),
        compiler_params=pltpu.CompilerParams(
            # Shard batch/out tiles across TensorCores; reduction axis last.
            dimension_semantics=("parallel", "parallel", "arbitrary"),
            vmem_limit_bytes=vmem_limit,
        ),
        cost_estimate=pl.CostEstimate(
            flops=2 * Bp * Np * Kp,
            transcendentals=0,
            # Weights re-streamed per batch tile, x re-streamed per output tile.
            bytes_accessed=(m_tiles * 2 * Np * Kp * w_bytes
                            + n_tiles * Bp * Kp * 4
                            + Bp * Np * 4),
        ),
    )(xp, wmu, wsig, eps_out_col, eps_in_row, bias)

    return out[:B, :out_f]


def _scale_noise(key, size):
    # x.sign() * sqrt(|x|) with x ~ N(0, 1)   (factorised Gaussian noise)
    x = jax.random.normal(key, (size,), dtype=jnp.float32)
    return jnp.sign(x) * jnp.sqrt(jnp.abs(x))


def make_noisy_linear_params(key, in_features, out_features, std_init=0.4):
    """Deterministic re-implementation of reset_parameters() + reset_noise().

    Returns the factorised noise vectors (eps_in, eps_out) rather than the
    materialized [out, in] weight_epsilon buffer.
    """
    k_wmu, k_bmu, k_eps_in, k_eps_out = jax.random.split(key, 4)
    mu_range = 1.0 / math.sqrt(in_features)

    weight_mu = jax.random.uniform(
        k_wmu, (out_features, in_features), jnp.float32, -mu_range, mu_range)
    weight_sigma = jnp.full((out_features, in_features),
                            std_init / math.sqrt(in_features), jnp.float32)
    bias_mu = jax.random.uniform(
        k_bmu, (out_features,), jnp.float32, -mu_range, mu_range)
    bias_sigma = jnp.full((out_features,),
                          std_init / math.sqrt(out_features), jnp.float32)

    eps_in = _scale_noise(k_eps_in, in_features)
    eps_out = _scale_noise(k_eps_out, out_features)

    return weight_mu, weight_sigma, eps_in, eps_out, bias_mu, bias_sigma


def _reference(x, w_mu, w_sig, eps_in, eps_out, b_mu, b_sig, weight_dtype=None):
    """Plain-JAX forward (optionally with the same bf16 weight rounding)."""
    if weight_dtype is not None:
        w_mu = w_mu.astype(weight_dtype).astype(jnp.float32)
        w_sig = w_sig.astype(weight_dtype).astype(jnp.float32)
    w_eps = jnp.outer(eps_out, eps_in)     # epsilon_out.ger(epsilon_in)
    return x @ (w_mu + w_sig * w_eps).T + (b_mu + b_sig * eps_out)


if __name__ == "__main__":
    key = jax.random.PRNGKey(0)
    k_params, k_x = jax.random.split(key)

    # DQN-fc-sized demo shapes, small enough to run instantly.
    batch, in_features, out_features = 16, 1024, 512
    params = make_noisy_linear_params(k_params, in_features, out_features)
    x = jax.random.normal(k_x, (batch, in_features), dtype=jnp.float32)

    # 1) Chip-aware default tiles (also exercises the ">=2 parallel tiles" path).
    y = noisy_linear(x, *params)
    jax.block_until_ready(y)

    # 2) Small explicit tiles to exercise multi-step (M, N, K) accumulation grid.
    y_small = noisy_linear(x, *params, tm=8, tn=128, tk=256)
    jax.block_until_ready(y_small)

    # Tight check against a reference using the same bf16-rounded weights.
    y_ref_bf16w = _reference(x, *params, weight_dtype=jnp.bfloat16)
    # Looser check against the exact f32 module semantics (bf16 weight rounding).
    y_ref_f32 = _reference(x, *params)

    assert y.shape == (batch, out_features)
    assert jnp.allclose(y, y_ref_bf16w, atol=2e-3, rtol=2e-3), \
        float(jnp.max(jnp.abs(y - y_ref_bf16w)))
    assert jnp.allclose(y_small, y_ref_bf16w, atol=2e-3, rtol=2e-3), \
        float(jnp.max(jnp.abs(y_small - y_ref_bf16w)))
    assert jnp.allclose(y, y_ref_f32, atol=3e-2, rtol=3e-2), \
        float(jnp.max(jnp.abs(y - y_ref_f32)))

    print("KERNEL_OK")
</pallas_src>

<mosaic_0001>
module attributes {stable_mosaic.version = 11 : i64} {
  func.func @_noisy_linear_kernel(%arg0: i32, %arg1: i32, %arg2: i32, %arg3: memref<16x1024xf32, #tpu.memory_space<vmem>>, %arg4: memref<256x1024xbf16, #tpu.memory_space<vmem>>, %arg5: memref<256x1024xbf16, #tpu.memory_space<vmem>>, %arg6: memref<256x1xf32, #tpu.memory_space<vmem>>, %arg7: memref<1x1024xf32, #tpu.memory_space<vmem>>, %arg8: memref<1x256xf32, #tpu.memory_space<vmem>>, %arg9: memref<16x256xf32, #tpu.memory_space<vmem>>, %arg10: memref<16x256xf32, #tpu.memory_space<vmem>>) attributes {dimension_semantics = [#tpu.dimension_semantics<parallel>, #tpu.dimension_semantics<parallel>, #tpu.dimension_semantics<arbitrary>], iteration_bounds = array<i64: 1, 2, 1>, scalar_prefetch = 0 : i64, scratch_operands = 1 : i64, tpu.core_type = #tpu.core_type<tc>, window_params = [{transform_indices = @transform_0, window_bounds = array<i64: 16, 1024>}, {transform_indices = @transform_1, window_bounds = array<i64: 256, 1024>}, {transform_indices = @transform_2, window_bounds = array<i64: 256, 1024>}, {transform_indices = @transform_3, window_bounds = array<i64: 256, 1>}, {transform_indices = @transform_4, window_bounds = array<i64: 1, 1024>}, {transform_indices = @transform_5, window_bounds = array<i64: 1, 256>}, {transform_indices = @transform_6, window_bounds = array<i64: 16, 256>}]} {
    %c0_i32 = arith.constant 0 : i32
    %0 = arith.cmpi eq, %arg2, %c0_i32 : i32
    %1 = arith.extui %0 : i1 to i32
    %c0_i32_0 = arith.constant 0 : i32
    %2 = arith.cmpi ne, %1, %c0_i32_0 : i32
    scf.if %2 {
      %cst_16 = arith.constant 0.000000e+00 : f32
      %22 = vector.broadcast %cst_16 : f32 to vector<16x256xf32>
      %c0_17 = arith.constant 0 : index
      %c0_18 = arith.constant 0 : index
      %23 = vector.load %arg10[%c0_17, %c0_18] : memref<16x256xf32, #tpu.memory_space<vmem>>, vector<16x256xf32>
      tpu.vector_store %arg10[%c0_17, %c0_18], %22 {strides = array<i32>} : memref<16x256xf32, #tpu.memory_space<vmem>>, vector<16x256xf32>,
    } else {
    }
    %c0 = arith.constant 0 : index
    %c0_1 = arith.constant 0 : index
    %3 = vector.load %arg6[%c0, %c0_1] : memref<256x1xf32, #tpu.memory_space<vmem>>, vector<256x1xf32>
    %c0_2 = arith.constant 0 : index
    %c0_3 = arith.constant 0 : index
    %4 = vector.load %arg7[%c0_2, %c0_3] : memref<1x1024xf32, #tpu.memory_space<vmem>>, vector<1x1024xf32>
    %5 = vector.broadcast %3 : vector<256x1xf32> to vector<256x1024xf32>
    %6 = vector.broadcast %4 : vector<1x1024xf32> to vector<256x1024xf32>
    %7 = arith.mulf %5, %6 : vector<256x1024xf32>
    %c0_4 = arith.constant 0 : index
    %c0_5 = arith.constant 0 : index
    %8 = vector.load %arg4[%c0_4, %c0_5] : memref<256x1024xbf16, #tpu.memory_space<vmem>>, vector<256x1024xbf16>
    %9 = arith.extf %8 : vector<256x1024xbf16> to vector<256x1024xf32>
    %c0_6 = arith.constant 0 : index
    %c0_7 = arith.constant 0 : index
    %10 = vector.load %arg5[%c0_6, %c0_7] : memref<256x1024xbf16, #tpu.memory_space<vmem>>, vector<256x1024xbf16>
    %11 = arith.extf %10 : vector<256x1024xbf16> to vector<256x1024xf32>
    %12 = arith.mulf %11, %7 : vector<256x1024xf32>
    %13 = arith.addf %9, %12 : vector<256x1024xf32>
    %c0_8 = arith.constant 0 : index
    %c0_9 = arith.constant 0 : index
    %14 = vector.load %arg10[%c0_8, %c0_9] : memref<16x256xf32, #tpu.memory_space<vmem>>, vector<16x256xf32>
    %c0_10 = arith.constant 0 : index
    %c0_11 = arith.constant 0 : index
    %15 = vector.load %arg3[%c0_10, %c0_11] : memref<16x1024xf32, #tpu.memory_space<vmem>>, vector<16x1024xf32>
    %cst = arith.constant dense<0.000000e+00> : vector<16x256xf32>
    %16 = tpu.matmul %15, %13, %cst {dimension_numbers = #tpu.dot_dimension_numbers<[1], [1], [0], [0], [0, 0, 1, 0], [], []>} : vector<16x1024xf32>, vector<256x1024xf32>, vector<16x256xf32> -> vector<16x256xf32>
    %17 = arith.addf %14, %16 : vector<16x256xf32>
    %c0_12 = arith.constant 0 : index
    %c0_13 = arith.constant 0 : index
    %18 = vector.load %arg10[%c0_12, %c0_13] : memref<16x256xf32, #tpu.memory_space<vmem>>, vector<16x256xf32>
    tpu.vector_store %arg10[%c0_12, %c0_13], %17 {strides = array<i32>} : memref<16x256xf32, #tpu.memory_space<vmem>>, vector<16x256xf32>,
    %c0_i32_14 = arith.constant 0 : i32
    %19 = arith.cmpi eq, %arg2, %c0_i32_14 : i32
    %20 = arith.extui %19 : i1 to i32
    %c0_i32_15 = arith.constant 0 : i32
    %21 = arith.cmpi ne, %20, %c0_i32_15 : i32
    scf.if %21 {
      %c0_16 = arith.constant 0 : index
      %c0_17 = arith.constant 0 : index
      %22 = vector.load %arg10[%c0_16, %c0_17] : memref<16x256xf32, #tpu.memory_space<vmem>>, vector<16x256xf32>
      %c0_18 = arith.constant 0 : index
      %c0_19 = arith.constant 0 : index
      %23 = vector.load %arg8[%c0_18, %c0_19] : memref<1x256xf32, #tpu.memory_space<vmem>>, vector<1x256xf32>
      %24 = vector.broadcast %23 : vector<1x256xf32> to vector<16x256xf32>
      %25 = arith.addf %22, %24 : vector<16x256xf32>
      %c0_20 = arith.constant 0 : index
      %c0_21 = arith.constant 0 : index
      %26 = vector.load %arg9[%c0_20, %c0_21] : memref<16x256xf32, #tpu.memory_space<vmem>>, vector<16x256xf32>
      tpu.vector_store %arg9[%c0_20, %c0_21], %25 {strides = array<i32>} : memref<16x256xf32, #tpu.memory_space<vmem>>, vector<16x256xf32>,
    } else {
    }
    return
  }
  func.func @transform_0(%arg0: i32, %arg1: i32, %arg2: i32) -> (i32, i32) {
    %c0_i32 = arith.constant 0 : i32
    return %arg0, %arg2 : i32, i32
  }
  func.func @transform_1(%arg0: i32, %arg1: i32, %arg2: i32) -> (i32, i32) {
    %c0_i32 = arith.constant 0 : i32
    return %arg1, %arg2 : i32, i32
  }
  func.func @transform_2(%arg0: i32, %arg1: i32, %arg2: i32) -> (i32, i32) {
    %c0_i32 = arith.constant 0 : i32
    return %arg1, %arg2 : i32, i32
  }
  func.func @transform_3(%arg0: i32, %arg1: i32, %arg2: i32) -> (i32, i32) {
    %c0_i32 = arith.constant 0 : i32
    %c0_i32_0 = arith.constant 0 : i32
    return %arg1, %c0_i32 : i32, i32
  }
  func.func @transform_4(%arg0: i32, %arg1: i32, %arg2: i32) -> (i32, i32) {
    %c0_i32 = arith.constant 0 : i32
    %c0_i32_0 = arith.constant 0 : i32
    return %c0_i32, %arg2 : i32, i32
  }
  func.func @transform_5(%arg0: i32, %arg1: i32, %arg2: i32) -> (i32, i32) {
    %c0_i32 = arith.constant 0 : i32
    %c0_i32_0 = arith.constant 0 : i32
    return %c0_i32, %arg1 : i32, i32
  }
  func.func @transform_6(%arg0: i32, %arg1: i32, %arg2: i32) -> (i32, i32) {
    %c0_i32 = arith.constant 0 : i32
    return %arg0, %arg1 : i32, i32
  }
}

</mosaic_0001>

<bundles_post_ra>
// kernel: tpu_custom_call.1
= control target key start
LH: loop header
LB: loop body
LE: loop exit
PB: predicated region body
PF: predicated region fallthrough
CT: control target
= control target key end

     0   :  { %s6006_s0 = inlined_call_operand.vmem [shape: f32[16,1024], index: 0, kind: input, shape index: {}]   ;;  %s6007_s1 = inlined_call_operand.hbm [shape: bf16[512,1024], index: 1, kind: input, shape index: {}]   ;;  %s6008_s2 = inlined_call_operand.hbm [shape: bf16[512,1024], index: 2, kind: input, shape index: {}]   ;;  %s6009_s3 = inlined_call_operand.vmem [shape: f32[512,1], index: 3, kind: input, shape index: {}]   ;;  %s6010_s4 = inlined_call_operand.vmem [shape: f32[1,1024], index: 4, kind: input, shape index: {}]   ;;  %s6011_s5 = inlined_call_operand.vmem [shape: f32[1,512], index: 5, kind: input, shape index: {}]   ;;  %s6012_s6 = inlined_call_operand.hbm [shape: f32[16,512], index: 6, kind: output, shape index: {}]  }
   0x1   :  { %6264 = sst [smem:[#allocation119_spill]] %s6007_s1 }
   0x2   :  { %11 = vsyncpa [#allocation4], 0 }
   0x3   :  { %13 = vsyncpa [#allocation4 + $0x1], 0 }
   0x4   :  { %14 = vsyncpa [#allocation7], 0 }
   0x5   :  { %16 = vsyncpa [#allocation7 + $0x1], 0 }
   0x6   :  { %17 = vsyncpa [#allocation5], 0 }
   0x7   :  { %19 = vsyncpa [#allocation5 + $0x1], 0  ;;  %s3342_s21 = smov 0   ;;  %s3344_s22 = smov 0  }
   0x8   :  { %s3346_s23 = smov 0   ;;  %s3348_s24 = smov 0  }
   0x9   :  { %s3350_s25 = smov 0   ;;  %s3352_s26 = smov 0  }
   0xa LB: > { %s2776_s27 = sadd.s32 4294967295, %s3296_s26   ;;  %s2777_s28 = sadd.s32 4294967294, %s3296_s26   ;;  %s3296_s26 = sphi %s3352_s26, %s25_s26   ;;  %s3292_s25 = sphi %s3350_s25, %s6834_s25   ;;  %s3288_s24 = sphi %s3348_s24, %s6833_s24   ;;  %s3284_s23 = sphi %s3346_s23, %s6832_s23   ;;  %s3280_s22 = sphi %s3344_s22, %s6831_s22   ;;  %s3276_s21 = sphi %s3342_s21, %s6830_s21  }
   0xb   : > { %s40_s29 = sadd.s32 1, %s3292_s25  ;;  %s81_s30 = sadd.s32 1, %s3284_s23 }
   0xc   : > { %p42_p0 = scmp.ge.s32.totalorder %s40_s29, 2  ;;  %p88_p1 = scmp.ne.s32.totalorder %s3284_s23, %s3280_s22 }
   0xd   : > { %p89_p2 = scmp.eq.s32.totalorder %s3296_s26, 0  ;;  %p94_p3 = scmp.ne.s32.totalorder %s3280_s22, %s3276_s21 }
   0xe   : > { %s6836_s29 = smov (%p42_p0, %s40_s29), 0  ;;  %p95_p5 = scmp.eq.s32.totalorder %s2776_s27, 0 }
   0xf   : > { %6265 = sst [smem:[#allocation12_spill]] %s6836_s29  ;;  %p3383_p4 = por %p89_p2, %p88_p1 }
  0x10   : > { %s76_s8 = ssub.s32 %s3292_s25, %s6836_s29  ;;  %p226_p6 = scmp.eq.s32.totalorder %s2776_s27, 1 }
  0x11   : > { %p79_p7 = scmp.eq.s32.totalorder %s76_s8, 0  ;;  %p3389_p8 = por %p95_p5, %p94_p3 }
  0x12   : > { %p3393_p9 = por %p226_p6, %p88_p1  ;;  %p232_p10 = scmp.eq.s32.totalorder %s2777_s28, 1 }
  0x13   : > { %s6267_s9 = scalar_select %p3389_p8, 1, 0 }
  0x14   : > { %s6268_s10 = scalar_select %p3393_p9, 1, 0 }
  0x15   : > { %s3398_s11 = scalar_select %p79_p7, %s3284_s23, %s81_s30  }
  0x16   : > { %p3400_p11 = por %p232_p10, %p94_p3  ;;  %p3092_p13 = scmp.lt.s32.totalorder %s3296_s26, 2 }
  0x17   : > { %s3407_s13 = sand.u32 1, %s3284_s23   ;;  %s2803_s15 = sshll.u32 %s3292_s25, 14 }
  0x18   : > { %s6269_s12 = scalar_select %p3400_p11, 1, 0 }
  0x19   : > { %s6013_s14 = sshll.u32 %s3407_s13, 10  ;;  %s6270_s1 = sld [smem:[#allocation119_spill]] }
  0x1a   : > { %s279_s19 = scalar_lea.vmem [#allocation3], %s6013_s14  ;;  %p3424_p0 = pnand %p3092_p13, %p3383_p4 }
  0x1b   : > { %s289_s20 = sshll.u32 %s279_s19, 4  ;;  %s276_s28 = scalar_lea.sflag [#allocation4], %s3407_s13  ;;  %s3420_s20 = int_to_ptr.vmem [resolvable:$true] %s289_s20 }
  0x1c   : > { %p3152_p3 = pneg %p3424_p0 }
  0x1f   : > { %s3416_s18 = scalar_lea.hbm %s6270_s1, %s2803_s15  ;;  %s3155_s7 = scalar_lea.hbm %s6270_s1, 32768 }
  0x20   : > { %s3150_s30 = scalar_lea.hbm %s3416_s18, 16384  ;;  %p3156_p4 = scmp.lt.u32.totalorder %s3416_s18, %s6270_s1 }
  0x21   : > { %p3151_p2 = scmp.ne.s32.totalorder %s3416_s18, %s3150_s30  ;;  %p3157_p7 = scmp.lt.u32.totalorder %s3155_s7, %s3150_s30 }
  0x22   : > { %p3159_p13 = scmp.lt.u32.totalorder %s3150_s30, %s3416_s18 }
  0x23   : > { %p3153_p5 = pnand %p3152_p3, %p3151_p2  ;;  %p3158_p10 = por %p3157_p7, %p3156_p4 }
  0x25   : > { %p3154_p6 = pneg %p3153_p5  ;;  %p3160_p12 = por %p3159_p13, %p3158_p10 }
  0x27   : > { %p3161_p1 = pnand %p3160_p12, %p3154_p6 }
  0x29   : > { %3164 = shalt.err (!%p3161_p1)
}
  0x2a   : > { %s3165_s14 = scalar_lea.vmem %s3420_s20, 16384  ;;  %s3298_s8 = smov [#allocation3]  }
  0x2b   : > { %p3166_p2 = scmp.ne.s32.totalorder %s3420_s20, %s3165_s14  ;;  %s3170_s16 = sshll.u32 %s3298_s8, 4  ;;  %s3171_s16 = int_to_ptr.vmem [resolvable:$false] %s3170_s16 }
  0x2c   : > { %s3172_s17 = scalar_lea.vmem %s3171_s16, 32768  ;;  %p3173_p9 = scmp.lt.s32.totalorder %s3420_s20, %s3171_s16 }
  0x2d   : > { %p3168_p5 = pnand %p3166_p2, %p3152_p3  ;;  %p3174_p4 = scmp.lt.s32.totalorder %s3172_s17, %s3165_s14 }
  0x2f   : > { %p3169_p11 = pneg %p3168_p5  ;;  %p3175_p7 = por %p3174_p4, %p3173_p9 }
  0x31   : > { %p3176_p10 = pnand %p3175_p7, %p3169_p11 }
  0x33   : > { %3179 = shalt.err (!%p3176_p10)
}
  0x34   : > { %s6016_s30 = smov 512   ;;  %s3300_s7 = smov 32  }
  0x35   : > { %3084 = dma.hbm_to_vmem [thread:$0]  (!%p3424_p0), %s3416_s18, 16384, %s3420_s20, %s276_s28, %s6016_s30, %s6016_s30, %s3300_s7  }
  0x36   : > { %p338_p9 = scmp.lt.s32.totalorder %s3296_s26, 3  ;;  %s3466_s8 = scalar_lea.hbm %s6008_s2, %s2803_s15 }
  0x37   : > { %p6272_p11 = scmp.ge.s32.totalorder %s3296_s26, 1  ;;  %s6274_s17 = sshll.u32 %s3407_s13, 10 }
  0x38   : > { %s303_s1 = scalar_lea.vmem [#allocation6], %s6274_s17  ;;  %s300_s18 = scalar_lea.sflag [#allocation7], %s3407_s13 }
  0x39   : > { %p3470_p12 = pnand %p6272_p11, %p338_p9  ;;  %s313_s29 = sshll.u32 %s303_s1, 4  ;;  %s3476_s29 = int_to_ptr.vmem [resolvable:$true] %s313_s29 }
  0x3a   : > { %s3180_s20 = scalar_lea.hbm %s3466_s8, 16384  ;;  %s3185_s14 = scalar_lea.hbm %s6008_s2, 32768 }
  0x3b   : > { %p3181_p1 = scmp.ne.s32.totalorder %s3466_s8, %s3180_s20  ;;  %p3186_p2 = scmp.lt.u32.totalorder %s3466_s8, %s6008_s2 }
  0x3c   : > { %p3187_p5 = scmp.lt.u32.totalorder %s3185_s14, %s3180_s20  ;;  %p3189_p7 = scmp.lt.u32.totalorder %s3180_s20, %s3466_s8 }
  0x3d   : > { %p3183_p6 = pnand %p3181_p1, %p3152_p3 }
  0x3e   : > { %p3188_p4 = por %p3187_p5, %p3186_p2 }
  0x3f   : > { %p3184_p13 = pneg %p3183_p6 }
  0x40   : > { %p3190_p10 = por %p3189_p7, %p3188_p4 }
  0x42   : > { %p3191_p9 = pnand %p3190_p10, %p3184_p13 }
  0x44   : > { %3194 = shalt.err (!%p3191_p9)
}
  0x45   : > { %s3195_s1 = scalar_lea.vmem %s3476_s29, 16384  ;;  %s3301_s17 = smov [#allocation6]  }
  0x46   : > { %p3196_p11 = scmp.ne.s32.totalorder %s3476_s29, %s3195_s1  ;;  %s3200_s15 = sshll.u32 %s3301_s17, 4  ;;  %s3201_s15 = int_to_ptr.vmem [resolvable:$false] %s3200_s15 }
  0x47   : > { %s3202_s30 = scalar_lea.vmem %s3201_s15, 32768  ;;  %p3203_p8 = scmp.lt.s32.totalorder %s3476_s29, %s3201_s15 }
  0x48   : > { %p3198_p1 = pnand %p3196_p11, %p3152_p3  ;;  %p3204_p2 = scmp.lt.s32.totalorder %s3202_s30, %s3195_s1 }
  0x4a   : > { %p3199_p6 = pneg %p3198_p1  ;;  %p3205_p5 = por %p3204_p2, %p3203_p8 }
  0x4c   : > { %p3206_p4 = pnand %p3205_p5, %p3199_p6 }
  0x4e   : > { %3209 = shalt.err (!%p3206_p4)
}
  0x4f   : > { %s6275_s20 = smov 512   ;;  %342 = sbr.rel (%p3470_p12) target bundleno = 826 (0x33a), region = 44 }
  0x50   : > { %3087 = dma.hbm_to_vmem [thread:$0]  (!%p3424_p0), %s3466_s8, 16384, %s3476_s29, %s300_s18, %s6275_s20, %s6275_s20, %s3300_s7  }
  0x56   : > { %s3510_s28 = sand.u32 1, %s3280_s22   ;;  %p6276_p8 = scmp.ne.s32.totalorder %s6267_s9, 0 }
  0x57   : > { %s2791_s14 = sshll.u32 %s3510_s28, 10  ;;  %s345_s19 = scalar_lea.sflag [#allocation4], %s3510_s28 }
  0x58   : > { %s3514_s27 = scalar_lea.vmem [#allocation3], %s2791_s14 }
  0x59   : > { %3263 = dma.done.wait (%p6276_p8), %s345_s19, 16384  }
  0x5a   : > { %3265 = vsyncadd (%p6276_p8), %s345_s19, 4294950912  ;;  %s354_s29 = scalar_lea.sflag [#allocation7], %s3510_s28  ;;  %s3521_s13 = scalar_lea.vmem [#allocation6], %s2791_s14 }
  0x5b   : > { %3267 = dma.done.wait (%p6276_p8), %s354_s29, 16384  }
  0x5c   : > { %3269 = vsyncadd (%p6276_p8), %s354_s29, 4294950912  ;;  %s2794_s7 = sshll.u32 %s3288_s24, 5  ;;  %v3302_v0 = vmov 0   ;;  %v650_v27 = vlaneseq  ;;  %v3571_v36 = vld [vmem:[%s6010_s4] sm:$0xff]  ;;  %v3588_v43 = vld [vmem:[%s3514_s27 + $0x10] sm:$0xff]  ;;  %s2796_s19 = sshll.u32 %s3288_s24, 1 }
  0x5d   : > { %3149 = vset.pattern.permute.xlu1 %v3302_v0  ;;  %3148 = vset.pattern.permute.xlu0 %v3302_v0  ;;  %p431_p0 = scmp.lt.s32.totalorder %s2794_s7, 63  ;;  %v3576_v39 = vld [vmem:[%s3514_s27] sm:$0xff]  ;;  %v3591_v44 = vld [vmem:[%s3514_s27 + $0x30] sm:$0xff]  ;;  %p442_p3 = scmp.lt.s32.totalorder %s2796_s19, 3 }
  0x5e   : > { %v3561_v30 = vshrl.u32 %v650_v27, 7  ;;  %v3579_v40 = vld [vmem:[%s3514_s27 + $0x20] sm:$0xff]  ;;  %v3603_v48 = vld [vmem:[%s3521_s13 + $0x10] sm:$0xff]  ;;  %s2806_s18 = sshll.u32 %s3288_s24, 8  ;;  %s2590_s24 = scalar_lea.sflag [#allocation5], %s3510_s28 }
  0x5f   : > { %s6838_s7 = smov (!%p431_p0, %s2794_s7), 63  ;;  %v3582_v41 = vld [vmem:[%s3521_s13] sm:$0xff]  ;;  %v3606_v49 = vld [vmem:[%s3521_s13 + $0x30] sm:$0xff]  ;;  %s6840_s19 = smov (!%p442_p3, %s2796_s19), 3 }
  0x60   : > { %s2795_s8 = sshll.u32 %s6838_s7, 3  ;;  %6277 = vst [vmem:[#allocation13_spill] sm:$0xff] %v3561_v30  ;;  %v6018_v33 = vsub.s32 1, %v3561_v30  ;;  %v672_v34 = vsub.s32 5, %v3561_v30  ;;  %v6019_v35 = vsub.s32 0, %v3561_v30  ;;  %v668_v37 = vsub.s32 4, %v3561_v30  ;;  %s5957_s17 = scalar_lea.hbm %s6012_s6, %s2806_s18 }
  0x61   : > { %s3531_s1 = scalar_lea.vmem %s6009_s3, %s2795_s8  ;;  %v3585_v42 = vld [vmem:[%s3521_s13 + $0x20] sm:$0xff]  ;;  %v3680_v27 = vld [vmem:[%s3514_s27 + $0x90] sm:$0xff]  ;;  %p6826_p13 = scmp.ne.s32.totalorder %s6268_s10, 0 }
  0x62   : > { %v458_v1 = vld [vmem:[%s3531_s1 + $0x10] sm:$0xff]  ;;  %v456_v2 = vld [vmem:[%s3531_s1] sm:$0xff]  ;;  %v459_v3 = vld [vmem:[%s3531_s1 + $0x18] sm:$0xff]  ;;  %v3597_v46 = vrot.slane %v3571_v36, %v6018_v33  ;;  %v3600_v47 = vrot.slane %v3571_v36, %v672_v34  ;;  %v3611_v50 = vrot.slane %v3571_v36, %v6019_v35  ;;  %v3617_v54 = vrot.slane %v3571_v36, %v668_v37  ;;  %s3303_s30 = smov [#allocation8]  }
  0x63   : > { %501 = vperm.xlu1 %3149, %v458_v1   ;;  %491 = vperm.xlu0 %3148, %v456_v2   ;;  %v457_v4 = vld [vmem:[%s3531_s1 + $0x8] sm:$0xff]  ;;  %v460_v6 = vld [vmem:[%s3531_s1 + $0x20] sm:$0xff]  ;;  %v463_v7 = vld [vmem:[%s3531_s1 + $0x38] sm:$0xff]  ;;  %s3214_s20 = sshll.u32 %s3303_s30, 4  ;;  %s3215_s20 = int_to_ptr.vmem [resolvable:$false] %s3214_s20 }
  0x64   : > { %v461_v5 = vld [vmem:[%s3531_s1 + $0x28] sm:$0xff]  ;;  %v462_v8 = vld [vmem:[%s3531_s1 + $0x30] sm:$0xff]  ;;  %v464_v10 = vld [vmem:[%s3531_s1 + $0x40] sm:$0xff]  ;;  %s3216_s14 = scalar_lea.vmem %s3215_s20, 1024 }
  0x65   : > { %v465_v9 = vld [vmem:[%s3531_s1 + $0x48] sm:$0xff]  ;;  %v467_v11 = vld [vmem:[%s3531_s1 + $0x58] sm:$0xff]  ;;  %v466_v12 = vld [vmem:[%s3531_s1 + $0x50] sm:$0xff] }
  0x66   : > { %v469_v13 = vld [vmem:[%s3531_s1 + $0x68] sm:$0xff]  ;;  %v468_v14 = vld [vmem:[%s3531_s1 + $0x60] sm:$0xff]  ;;  %v471_v15 = vld [vmem:[%s3531_s1 + $0x78] sm:$0xff] }
  0x67   : > { %506 = vperm.xlu1 %3149, %v459_v3   ;;  %496 = vperm.xlu0 %3148, %v457_v4   ;;  %v470_v16 = vld [vmem:[%s3531_s1 + $0x70] sm:$0xff]  ;;  %v473_v17 = vld [vmem:[%s3531_s1 + $0x88] sm:$0xff]  ;;  %v472_v18 = vld [vmem:[%s3531_s1 + $0x80] sm:$0xff] }
  0x68   : > { %v475_v19 = vld [vmem:[%s3531_s1 + $0x98] sm:$0xff]  ;;  %v474_v20 = vld [vmem:[%s3531_s1 + $0x90] sm:$0xff]  ;;  %v477_v21 = vld [vmem:[%s3531_s1 + $0xa8] sm:$0xff] }
  0x69   : > { %v476_v22 = vld [vmem:[%s3531_s1 + $0xa0] sm:$0xff]  ;;  %v479_v23 = vld [vmem:[%s3531_s1 + $0xb8] sm:$0xff]  ;;  %v478_v24 = vld [vmem:[%s3531_s1 + $0xb0] sm:$0xff] }
  0x6a   : > { %v481_v25 = vld [vmem:[%s3531_s1 + $0xc8] sm:$0xff]  ;;  %v480_v26 = vld [vmem:[%s3531_s1 + $0xc0] sm:$0xff]  ;;  %v483_v28 = vld [vmem:[%s3531_s1 + $0xd8] sm:$0xff] }
  0x6b   : > { %516 = vperm.xlu1 %3149, %v461_v5   ;;  %511 = vperm.xlu0 %3148, %v460_v6   ;;  %v482_v29 = vld [vmem:[%s3531_s1 + $0xd0] sm:$0xff]  ;;  %v485_v31 = vld [vmem:[%s3531_s1 + $0xe8] sm:$0xff]  ;;  %v484_v32 = vld [vmem:[%s3531_s1 + $0xe0] sm:$0xff] }
  0x6c   : > { %v487_v38 = vld [vmem:[%s3531_s1 + $0xf8] sm:$0xff]  ;;  %v486_v45 = vld [vmem:[%s3531_s1 + $0xf0] sm:$0xff]  ;;  %v3620_v55 = vld [vmem:[%s3514_s27 + $0x40] sm:$0xff] }
  0x6d   : > { %v3627_v60 = vld [vmem:[%s3514_s27 + $0x60] sm:$0xff]  ;;  %v3640_v3 = vld [vmem:[%s3514_s27 + $0x50] sm:$0xff] }
  0x6e   : > { %v3630_v61 = vld [vmem:[%s3521_s13 + $0x40] sm:$0xff]  ;;  %v3643_v4 = vld [vmem:[%s3514_s27 + $0x70] sm:$0xff] }
  0x6f   : > { %526 = vperm.xlu1 %3149, %v463_v7   ;;  %521 = vperm.xlu0 %3148, %v462_v8   ;;  %v3633_v62 = vld [vmem:[%s3521_s13 + $0x60] sm:$0xff]  ;;  %v3646_v5 = vld [vmem:[%s3521_s13 + $0x50] sm:$0xff] }
  0x70   : > { %v3710_v33 = vld [vmem:[%s3521_s13 + $0xd0] sm:$0xff]  ;;  %v3720_v34 = vld [vmem:[%s3514_s27 + $0xe0] sm:$0xff] }
  0x71   : > { %v3747_v1 = vld [vmem:[%s3521_s13 + $0x120] sm:$0xff]  ;;  %v3763_v52 = vld [vmem:[%s3521_s13 + $0x130] sm:$0xff] }
  0x72   : > { %6278 = vst [vmem:[#allocation14_spill] sm:$0xff] %v3763_v52  ;;  %v3770_v8 = vld [vmem:[%s3514_s27 + $0x110] sm:$0xff]  ;;  %v3780_v7 = vld [vmem:[%s3521_s13 + $0x140] sm:$0xff] }
  0x73   : > { %536 = vperm.xlu1 %3149, %v465_v9   ;;  %531 = vperm.xlu0 %3148, %v464_v10   ;;  %v3653_v10 = vld [vmem:[%s3521_s13 + $0x70] sm:$0xff]  ;;  %6279 = vst [vmem:[#allocation15_spill] sm:$0xff] %v3770_v8  ;;  %6281 = vst [vmem:[#allocation17_spill] sm:$0xff] %v3780_v7  ;;  %v3787_v57 = vld [vmem:[%s3521_s13 + $0x160] sm:$0xff] }
  0x74   : > { %v3773_v35 = vld [vmem:[%s3514_s27 + $0x130] sm:$0xff]  ;;  %6282 = vst [vmem:[#allocation18_spill] sm:$0xff] %v3787_v57  ;;  %v3803_v59 = vld [vmem:[%s3514_s27 + $0x160] sm:$0xff] }
  0x75   : > { %6280 = vst [vmem:[#allocation16_spill] sm:$0xff] %v3773_v35  ;;  %v3790_v56 = vld [vmem:[%s3521_s13 + $0x150] sm:$0xff]  ;;  %6286 = vst [vmem:[#allocation22_spill] sm:$0xff] %v3803_v59  ;;  %v3824_v63 = vld [vmem:[%s3521_s13 + $0x180] sm:$0xff] }
  0x76   : > { %6283 = vst [vmem:[#allocation19_spill] sm:$0xff] %v3790_v56  ;;  %v3793_v51 = vld [vmem:[%s3521_s13 + $0x170] sm:$0xff]  ;;  %6289 = vst [vmem:[#allocation25_spill] sm:$0xff] %v3824_v63  ;;  %v3827_v58 = vld [vmem:[%s3521_s13 + $0x1a0] sm:$0xff] }
  0x77   : > { %546 = vperm.xlu1 %3149, %v467_v11   ;;  %541 = vperm.xlu0 %3148, %v466_v12   ;;  %v3760_v11 = vld [vmem:[%s3514_s27 + $0x120] sm:$0xff]  ;;  %6284 = vst [vmem:[#allocation20_spill] sm:$0xff] %v3793_v51  ;;  %v3806_v0 = vld [vmem:[%s3514_s27 + $0x150] sm:$0xff]  ;;  %6290 = vst [vmem:[#allocation26_spill] sm:$0xff] %v3827_v58 }
  0x78   : > { %6287 = vst [vmem:[#allocation23_spill] sm:$0xff] %v3806_v0  ;;  %v3813_v37 = vld [vmem:[%s3514_s27 + $0x170] sm:$0xff]  ;;  %v3837_v53 = vld [vmem:[%s3514_s27 + $0x180] sm:$0xff] }
  0x79   : > { %6288 = vst [vmem:[#allocation24_spill] sm:$0xff] %v3813_v37  ;;  %6292 = vst [vmem:[#allocation28_spill] sm:$0xff] %v3837_v53  ;;  %v3840_v6 = vld [vmem:[%s3514_s27 + $0x1a0] sm:$0xff]  ;;  %v3843_v12 = vld [vmem:[%s3521_s13 + $0x1b0] sm:$0xff]  ;;  %v6389_v53 = vunpack.c.l.bf16 %v3630_v61 }
  0x7a   : > { %6293 = vst [vmem:[#allocation29_spill] sm:$0xff] %v3840_v6  ;;  %6294 = vst [vmem:[#allocation30_spill] sm:$0xff] %v3843_v12  ;;  %v3850_v7 = vld [vmem:[%s3514_s27 + $0x190] sm:$0xff]  ;;  %v3863_v0 = vld [vmem:[%s3521_s13 + $0x1c0] sm:$0xff] }
  0x7b   : > { %556 = vperm.xlu1 %3149, %v469_v13   ;;  %551 = vperm.xlu0 %3148, %v468_v14   ;;  %v3704_v13 = vld [vmem:[%s3521_s13 + $0xc0] sm:$0xff]  ;;  %v3830_v14 = vld [vmem:[%s3521_s13 + $0x190] sm:$0xff]  ;;  %6295 = vst [vmem:[#allocation31_spill] sm:$0xff] %v3850_v7  ;;  %6297 = vst [vmem:[#allocation33_spill] sm:$0xff] %v3863_v0 }
  0x7c   : > { %6291 = vst [vmem:[#allocation27_spill] sm:$0xff] %v3830_v14  ;;  %v3866_v51 = vld [vmem:[%s3521_s13 + $0x1e0] sm:$0xff]  ;;  %v3877_v37 = vld [vmem:[%s3521_s13 + $0x1d0] sm:$0xff] }
  0x7d   : > { %6298 = vst [vmem:[#allocation34_spill] sm:$0xff] %v3866_v51  ;;  %v3874_v9 = vld [vmem:[%s3514_s27 + $0x1c0] sm:$0xff]  ;;  %6300 = vst [vmem:[#allocation36_spill] sm:$0xff] %v3877_v37  ;;  %v3880_v2 = vld [vmem:[%s3521_s13 + $0x1f0] sm:$0xff] }
  0x7e   : > { %6299 = vst [vmem:[#allocation35_spill] sm:$0xff] %v3874_v9  ;;  %6301 = vst [vmem:[#allocation37_spill] sm:$0xff] %v3880_v2  ;;  %v3887_v57 = vld [vmem:[%s3514_s27 + $0x1e0] sm:$0xff]  ;;  %v3890_v35 = vld [vmem:[%s3514_s27 + $0x1d0] sm:$0xff] }
  0x7f   : > { %566 = vperm.xlu1 %3149, %v471_v15   ;;  %561 = vperm.xlu0 %3148, %v470_v16   ;;  %v3660_v15 = vld [vmem:[%s3514_s27 + $0x80] sm:$0xff]  ;;  %v3750_v16 = vld [vmem:[%s3521_s13 + $0x110] sm:$0xff]  ;;  %6302 = vst [vmem:[#allocation38_spill] sm:$0xff] %v3887_v57  ;;  %6303 = vst [vmem:[#allocation39_spill] sm:$0xff] %v3890_v35 }
  0x80   : > { %v3893_v8 = vld [vmem:[%s3514_s27 + $0x1f0] sm:$0xff]  ;;  %v3903_v6 = vld [vmem:[%s3521_s13 + $0x200] sm:$0xff] }
  0x81   : > { %6304 = vst [vmem:[#allocation40_spill] sm:$0xff] %v3893_v8  ;;  %6305 = vst [vmem:[#allocation41_spill] sm:$0xff] %v3903_v6  ;;  %v3913_v59 = vld [vmem:[%s3521_s13 + $0x220] sm:$0xff]  ;;  %v3916_v56 = vld [vmem:[%s3521_s13 + $0x210] sm:$0xff] }
  0x82   : > { %6307 = vst [vmem:[#allocation43_spill] sm:$0xff] %v3913_v59  ;;  %6308 = vst [vmem:[#allocation44_spill] sm:$0xff] %v3916_v56  ;;  %v3919_v12 = vld [vmem:[%s3521_s13 + $0x230] sm:$0xff]  ;;  %v3946_v35 = vld [vmem:[%s3521_s13 + $0x240] sm:$0xff] }
  0x83   : > { %576 = vperm.xlu1 %3149, %v473_v17   ;;  %571 = vperm.xlu0 %3148, %v472_v18   ;;  %v3730_v18 = vld [vmem:[%s3514_s27 + $0xd0] sm:$0xff]  ;;  %v3744_v17 = vld [vmem:[%s3521_s13 + $0x100] sm:$0xff]  ;;  %6309 = vst [vmem:[#allocation45_spill] sm:$0xff] %v3919_v12  ;;  %6314 = vst [vmem:[#allocation50_spill] sm:$0xff] %v3946_v35 }
  0x84   : > { %v3932_v52 = vld [vmem:[%s3514_s27 + $0x210] sm:$0xff]  ;;  %v3956_v37 = vld [vmem:[%s3514_s27 + $0x240] sm:$0xff] }
  0x85   : > { %6312 = vst [vmem:[#allocation48_spill] sm:$0xff] %v3932_v52  ;;  %v3939_v63 = vld [vmem:[%s3514_s27 + $0x230] sm:$0xff]  ;;  %6316 = vst [vmem:[#allocation52_spill] sm:$0xff] %v3956_v37  ;;  %v3969_v57 = vld [vmem:[%s3514_s27 + $0x260] sm:$0xff] }
  0x86   : > { %6313 = vst [vmem:[#allocation49_spill] sm:$0xff] %v3939_v63  ;;  %v3959_v2 = vld [vmem:[%s3521_s13 + $0x250] sm:$0xff]  ;;  %6319 = vst [vmem:[#allocation55_spill] sm:$0xff] %v3969_v57  ;;  %v3986_v56 = vld [vmem:[%s3521_s13 + $0x280] sm:$0xff] }
  0x87   : > { %586 = vperm.xlu1 %3149, %v475_v19   ;;  %581 = vperm.xlu0 %3148, %v474_v20   ;;  %v3667_v20 = vld [vmem:[%s3514_s27 + $0xa0] sm:$0xff]  ;;  %v3853_v19 = vld [vmem:[%s3514_s27 + $0x1b0] sm:$0xff]  ;;  %6317 = vst [vmem:[#allocation53_spill] sm:$0xff] %v3959_v2  ;;  %6322 = vst [vmem:[#allocation58_spill] sm:$0xff] %v3986_v56 }
  0x88   : > { %6296 = vst [vmem:[#allocation32_spill] sm:$0xff] %v3853_v19  ;;  %v3949_v19 = vld [vmem:[%s3521_s13 + $0x260] sm:$0xff]  ;;  %v3962_v9 = vld [vmem:[%s3521_s13 + $0x270] sm:$0xff] }
  0x89   : > { %6315 = vst [vmem:[#allocation51_spill] sm:$0xff] %v3949_v19  ;;  %6318 = vst [vmem:[#allocation54_spill] sm:$0xff] %v3962_v9  ;;  %v3972_v8 = vld [vmem:[%s3514_s27 + $0x250] sm:$0xff]  ;;  %v3993_v6 = vld [vmem:[%s3521_s13 + $0x2a0] sm:$0xff] }
  0x8a   : > { %6320 = vst [vmem:[#allocation56_spill] sm:$0xff] %v3972_v8  ;;  %v3975_v58 = vld [vmem:[%s3514_s27 + $0x270] sm:$0xff]  ;;  %6323 = vst [vmem:[#allocation59_spill] sm:$0xff] %v3993_v6  ;;  %v4006_v52 = vld [vmem:[%s3514_s27 + $0x280] sm:$0xff] }
  0x8b   : > { %596 = vperm.xlu1 %3149, %v477_v21   ;;  %591 = vperm.xlu0 %3148, %v476_v22   ;;  %v3670_v21 = vld [vmem:[%s3521_s13 + $0x80] sm:$0xff]  ;;  %6321 = vst [vmem:[#allocation57_spill] sm:$0xff] %v3975_v58  ;;  %v3999_v63 = vld [vmem:[%s3521_s13 + $0x2b0] sm:$0xff]  ;;  %6326 = vst [vmem:[#allocation62_spill] sm:$0xff] %v4006_v52 }
  0x8c   : > { %v3673_v22 = vld [vmem:[%s3521_s13 + $0xa0] sm:$0xff]  ;;  %6325 = vst [vmem:[#allocation61_spill] sm:$0xff] %v3999_v63  ;;  %v4012_v51 = vld [vmem:[%s3514_s27 + $0x290] sm:$0xff] }
  0x8d   : > { %v4009_v0 = vld [vmem:[%s3514_s27 + $0x2a0] sm:$0xff]  ;;  %6328 = vst [vmem:[#allocation64_spill] sm:$0xff] %v4012_v51  ;;  %v4019_v59 = vld [vmem:[%s3514_s27 + $0x2b0] sm:$0xff] }
  0x8e   : > { %6327 = vst [vmem:[#allocation63_spill] sm:$0xff] %v4009_v0  ;;  %6329 = vst [vmem:[#allocation65_spill] sm:$0xff] %v4019_v59  ;;  %v4026_v8 = vld [vmem:[%s3521_s13 + $0x2c0] sm:$0xff]  ;;  %v4036_v57 = vld [vmem:[%s3521_s13 + $0x2d0] sm:$0xff] }
  0x8f   : > { %606 = vperm.xlu1 %3149, %v479_v23   ;;  %601 = vperm.xlu0 %3148, %v478_v24   ;;  %v3717_v24 = vld [vmem:[%s3514_s27 + $0xc0] sm:$0xff]  ;;  %6330 = vst [vmem:[#allocation66_spill] sm:$0xff] %v4026_v8  ;;  %6332 = vst [vmem:[#allocation68_spill] sm:$0xff] %v4036_v57  ;;  %v4039_v9 = vld [vmem:[%s3521_s13 + $0x2f0] sm:$0xff]  ;;  %v680_v57 = vsub.s32 7, %v3561_v30 }
  0x90   : > { %v3800_v23 = vld [vmem:[%s3514_s27 + $0x140] sm:$0xff]  ;;  %6333 = vst [vmem:[#allocation69_spill] sm:$0xff] %v4039_v9  ;;  %v4052_v7 = vld [vmem:[%s3514_s27 + $0x2d0] sm:$0xff] }
  0x91   : > { %6285 = vst [vmem:[#allocation21_spill] sm:$0xff] %v3800_v23  ;;  %v3926_v23 = vld [vmem:[%s3514_s27 + $0x200] sm:$0xff]  ;;  %6336 = vst [vmem:[#allocation72_spill] sm:$0xff] %v4052_v7  ;;  %v4076_v0 = vld [vmem:[%s3521_s13 + $0x310] sm:$0xff] }
  0x92   : > { %6310 = vst [vmem:[#allocation46_spill] sm:$0xff] %v3926_v23  ;;  %v4033_v58 = vld [vmem:[%s3521_s13 + $0x2e0] sm:$0xff]  ;;  %6340 = vst [vmem:[#allocation76_spill] sm:$0xff] %v4076_v0  ;;  %v4079_v63 = vld [vmem:[%s3521_s13 + $0x330] sm:$0xff] }
  0x93   : > { %616 = vperm.xlu1 %3149, %v481_v25   ;;  %611 = vperm.xlu0 %3148, %v480_v26   ;;  %v3757_v25 = vld [vmem:[%s3514_s27 + $0x100] sm:$0xff]  ;;  %v664_v26 = vsub.s32 3, %v3561_v30  ;;  %6331 = vst [vmem:[#allocation67_spill] sm:$0xff] %v4033_v58  ;;  %6341 = vst [vmem:[#allocation77_spill] sm:$0xff] %v4079_v63  ;;  %v4092_v37 = vld [vmem:[%s3514_s27 + $0x310] sm:$0xff] }
  0x94   : > { %v4046_v56 = vld [vmem:[%s3514_s27 + $0x2c0] sm:$0xff]  ;;  %6344 = vst [vmem:[#allocation80_spill] sm:$0xff] %v4092_v37  ;;  %v4099_v2 = vld [vmem:[%s3514_s27 + $0x330] sm:$0xff] }
  0x95   : > { %v3906_v14 = vrot.slane %v3571_v36, %v664_v26  ;;  %v3996_v26 = vld [vmem:[%s3521_s13 + $0x290] sm:$0xff]  ;;  %6334 = vst [vmem:[#allocation70_spill] sm:$0xff] %v4046_v56  ;;  %v4049_v23 = vld [vmem:[%s3514_s27 + $0x2e0] sm:$0xff]  ;;  %6345 = vst [vmem:[#allocation81_spill] sm:$0xff] %v4099_v2 }
  0x96   : > { %6324 = vst [vmem:[#allocation60_spill] sm:$0xff] %v3996_v26  ;;  %6335 = vst [vmem:[#allocation71_spill] sm:$0xff] %v4049_v23  ;;  %v4066_v51 = vld [vmem:[%s3521_s13 + $0x300] sm:$0xff]  ;;  %v4116_v23 = vld [vmem:[%s3521_s13 + $0x350] sm:$0xff] }
  0x97   : > { %626 = vperm.xlu1 %3149, %v483_v28   ;;  %621 = vperm.xlu0 %3148, %v482_v29   ;;  %v3683_v28 = vld [vmem:[%s3514_s27 + $0xb0] sm:$0xff]  ;;  %6306 = vst [vmem:[#allocation42_spill] sm:$0xff] %v3906_v14  ;;  %v3929_v14 = vld [vmem:[%s3514_s27 + $0x220] sm:$0xff]  ;;  %6338 = vst [vmem:[#allocation74_spill] sm:$0xff] %v4066_v51 }
  0x98   : > { %v3686_v29 = vld [vmem:[%s3521_s13 + $0x90] sm:$0xff]  ;;  %6311 = vst [vmem:[#allocation47_spill] sm:$0xff] %v3929_v14  ;;  %v4073_v59 = vld [vmem:[%s3521_s13 + $0x320] sm:$0xff]  ;;  %6348 = vst [vmem:[#allocation84_spill] sm:$0xff] %v4116_v23 }
  0x99   : > { %v4059_v14 = vld [vmem:[%s3514_s27 + $0x2f0] sm:$0xff]  ;;  %6339 = vst [vmem:[#allocation75_spill] sm:$0xff] %v4073_v59  ;;  %v4086_v8 = vld [vmem:[%s3514_s27 + $0x300] sm:$0xff]  ;;  %v676_v59 = vsub.s32 6, %v3561_v30  ;;  %v4259_v23 = vld [vmem:[%s3514_s27 + $0x18] sm:$0xff] }
  0x9a   : > { %6337 = vst [vmem:[#allocation73_spill] sm:$0xff] %v4059_v14  ;;  %6342 = vst [vmem:[#allocation78_spill] sm:$0xff] %v4086_v8  ;;  %v4089_v35 = vld [vmem:[%s3514_s27 + $0x320] sm:$0xff]  ;;  %v4119_v9 = vld [vmem:[%s3521_s13 + $0x370] sm:$0xff] }
  0x9b   : > { %636 = vperm.xlu1 %3149, %v485_v31   ;;  %631 = vperm.xlu0 %3148, %v484_v32   ;;  %v3723_v31 = vld [vmem:[%s3521_s13 + $0xf0] sm:$0xff]  ;;  %6343 = vst [vmem:[#allocation79_spill] sm:$0xff] %v4089_v35  ;;  %v4106_v7 = vld [vmem:[%s3521_s13 + $0x340] sm:$0xff]  ;;  %6349 = vst [vmem:[#allocation85_spill] sm:$0xff] %v4119_v9 }
  0x9c   : > { %v3733_v32 = vld [vmem:[%s3514_s27 + $0xf0] sm:$0xff]  ;;  %6346 = vst [vmem:[#allocation82_spill] sm:$0xff] %v4106_v7  ;;  %v4113_v14 = vld [vmem:[%s3521_s13 + $0x360] sm:$0xff]  ;;  %v4244_v8 = vld [vmem:[%s3521_s13 + $0x28] sm:$0xff] }
  0x9d   : > { %6347 = vst [vmem:[#allocation83_spill] sm:$0xff] %v4113_v14  ;;  %v4126_v51 = vld [vmem:[%s3514_s27 + $0x340] sm:$0xff]  ;;  %v4132_v19 = vld [vmem:[%s3514_s27 + $0x350] sm:$0xff]  ;;  %6372 = vst [vmem:[#allocation108_spill] sm:$0xff] %v4244_v8 }
  0x9e   : > { %6350 = vst [vmem:[#allocation86_spill] sm:$0xff] %v4126_v51  ;;  %v4129_v6 = vld [vmem:[%s3514_s27 + $0x360] sm:$0xff]  ;;  %6352 = vst [vmem:[#allocation88_spill] sm:$0xff] %v4132_v19  ;;  %v4139_v52 = vld [vmem:[%s3514_s27 + $0x370] sm:$0xff] }
  0x9f   : > { %646 = vperm.xlu1 %3149, %v487_v38   ;;  %641 = vperm.xlu0 %3148, %v486_v45   ;;  %v3693_v38 = vld [vmem:[%s3521_s13 + $0xb0] sm:$0xff]  ;;  %v3707_v45 = vld [vmem:[%s3521_s13 + $0xe0] sm:$0xff]  ;;  %6351 = vst [vmem:[#allocation87_spill] sm:$0xff] %v4129_v6  ;;  %6353 = vst [vmem:[#allocation89_spill] sm:$0xff] %v4139_v52 }
  0xa0   : > { %v4146_v37 = vld [vmem:[%s3521_s13 + $0x380] sm:$0xff]  ;;  %v4156_v35 = vld [vmem:[%s3521_s13 + $0x390] sm:$0xff]  ;;  %6376 = vst [vmem:[#allocation112_spill] sm:$0xff] %v4259_v23  ;;  %v4268_v14 = vld [vmem:[%s3521_s13 + $0x38] sm:$0xff] }
  0xa1   : > { %6354 = vst [vmem:[#allocation90_spill] sm:$0xff] %v4146_v37  ;;  %v4153_v2 = vld [vmem:[%s3521_s13 + $0x3a0] sm:$0xff]  ;;  %6356 = vst [vmem:[#allocation92_spill] sm:$0xff] %v4156_v35  ;;  %v4159_v63 = vld [vmem:[%s3521_s13 + $0x3b0] sm:$0xff] }
  0xa2   : > { %6355 = vst [vmem:[#allocation91_spill] sm:$0xff] %v4153_v2  ;;  %6357 = vst [vmem:[#allocation93_spill] sm:$0xff] %v4159_v63  ;;  %v4166_v7 = vld [vmem:[%s3514_s27 + $0x380] sm:$0xff]  ;;  %v4172_v26 = vld [vmem:[%s3514_s27 + $0x390] sm:$0xff]  ;;  %v4256_v2 = vrot.slane %v3571_v36, %v680_v57 }
  0xa3   : > { %6358 = vst [vmem:[#allocation94_spill] sm:$0xff] %v4166_v7  ;;  %v4169_v58 = vld [vmem:[%s3514_s27 + $0x3a0] sm:$0xff]  ;;  %6360 = vst [vmem:[#allocation96_spill] sm:$0xff] %v4172_v26  ;;  %v4179_v56 = vld [vmem:[%s3514_s27 + $0x3b0] sm:$0xff]  ;;  %v660_v26 = vsub.s32 2, %v3561_v30 }
  0xa4   : > { %6359 = vst [vmem:[#allocation95_spill] sm:$0xff] %v4169_v58  ;;  %6361 = vst [vmem:[#allocation97_spill] sm:$0xff] %v4179_v56  ;;  %v4186_v12 = vld [vmem:[%s3521_s13 + $0x3c0] sm:$0xff]  ;;  %v4196_v6 = vld [vmem:[%s3521_s13 + $0x3d0] sm:$0xff] }
  0xa5   : > { %6362 = vst [vmem:[#allocation98_spill] sm:$0xff] %v4186_v12  ;;  %v4193_v0 = vld [vmem:[%s3521_s13 + $0x3e0] sm:$0xff]  ;;  %6364 = vst [vmem:[#allocation100_spill] sm:$0xff] %v4196_v6  ;;  %v4199_v51 = vld [vmem:[%s3521_s13 + $0x3f0] sm:$0xff] }
  0xa6   : > { %6363 = vst [vmem:[#allocation99_spill] sm:$0xff] %v4193_v0  ;;  %6365 = vst [vmem:[#allocation101_spill] sm:$0xff] %v4199_v51  ;;  %v4206_v52 = vld [vmem:[%s3514_s27 + $0x3c0] sm:$0xff]  ;;  %v4216_v9 = vld [vmem:[%s3514_s27 + $0x3d0] sm:$0xff]  ;;  %v6382_v51 = vunpack.c.h.bf16 %v3582_v41 }
  0xa7   : > { %6366 = vst [vmem:[#allocation102_spill] sm:$0xff] %v4206_v52  ;;  %v4212_v19 = vld [vmem:[%s3514_s27 + $0x3e0] sm:$0xff]  ;;  %6368 = vst [vmem:[#allocation104_spill] sm:$0xff] %v4216_v9  ;;  %v4219_v37 = vld [vmem:[%s3514_s27 + $0x3f0] sm:$0xff]  ;;  %v4271_v9 = vrot.slane %v3571_v36, %v660_v26  ;;  %v6388_v52 = vunpack.c.h.bf16 %v3646_v5 }
  0xa8   : > { %6367 = vst [vmem:[#allocation103_spill] sm:$0xff] %v4212_v19  ;;  %6369 = vst [vmem:[#allocation105_spill] sm:$0xff] %v4219_v37  ;;  %v4229_v56 = vld [vmem:[%s3521_s13 + $0x8] sm:$0xff]  ;;  %v4247_v35 = vld [vmem:[%s3521_s13 + $0x18] sm:$0xff] }
  0xa9   : > { %6370 = vst [vmem:[#allocation106_spill] sm:$0xff] %v4229_v56  ;;  %v4236_v63 = vld [vmem:[%s3514_s27 + $0x8] sm:$0xff]  ;;  %6373 = vst [vmem:[#allocation109_spill] sm:$0xff] %v4247_v35  ;;  %v4265_v19 = vld [vmem:[%s3514_s27 + $0x38] sm:$0xff] }
  0xaa   : > { %6371 = vst [vmem:[#allocation107_spill] sm:$0xff] %v4236_v63  ;;  %v4251_v58 = vld [vmem:[%s3514_s27 + $0x28] sm:$0xff]  ;;  %6375 = vst [vmem:[#allocation111_spill] sm:$0xff] %v4256_v2  ;;  %v4277_v2 = vrot.slane %v3571_v36, %v676_v59 }
  0xab   : > { %6374 = vst [vmem:[#allocation110_spill] sm:$0xff] %v4251_v58  ;;  %6377 = vst [vmem:[#allocation113_spill] sm:$0xff] %v4268_v14  ;;  %v6383_v14 = vunpack.c.h.bf16 %v3603_v48  ;;  %v6384_v58 = vunpack.c.l.bf16 %v3582_v41 }
  0xac   : > { %6378 = vst [vmem:[#allocation114_spill] sm:$0xff] %v4271_v9  ;;  %6379 = vst [vmem:[#allocation115_spill] sm:$0xff] %v4277_v2  ;;  %v6385_v9 = vunpack.c.l.bf16 %v3603_v48  ;;  %v6391_v48 = vunpack.c.h.bf16 %v3576_v39 }
  0xe2   : > { %v4283_v56 = vpop.permute.xlu1 %501  ;;  %v4285_v26 = vpop.permute.xlu0 %491 }
  0xe3   : > { %6380 = vst [vmem:[#allocation116_spill] sm:$0xff] %v4283_v56  ;;  %6381 = vst [vmem:[#allocation117_spill] sm:$0xff] %v4285_v26  ;;  %v691_v59 = vmul.f32 %v3597_v46, %v4285_v26  ;;  %v695_v0 = vmul.f32 %v3600_v47, %v4285_v26  ;;  %v690_v12 = vmul.f32 %v3611_v50, %v4285_v26 }
  0xe4   : > { %v694_v63 = vmul.f32 %v3617_v54, %v4285_v26  ;;  %v707_v30 = vmul.f32 %v3597_v46, %v4283_v56  ;;  %v711_v57 = vmul.f32 %v3600_v47, %v4283_v56  ;;  %v706_v7 = vmul.f32 %v3611_v50, %v4283_v56 }
  0xe5   : > { %v710_v36 = vmul.f32 %v3617_v54, %v4283_v56  ;;  %v1715_v23 = vmul.f32 %v6382_v51, %v691_v59  ;;  %v1719_v35 = vmul.f32 %v6383_v14, %v695_v0  ;;  %v1714_v2 = vmul.f32 %v6384_v58, %v690_v12 }
  0xe6   : > { %v1718_v8 = vmul.f32 %v6385_v9, %v694_v63  ;;  %v4315_v37 = vpop.permute.xlu0 %496  ;;  %v6387_v26 = vunpack.c.h.bf16 %v3630_v61  ;;  %v1735_v56 = vmul.f32 %v6388_v52, %v711_v57  ;;  %v1730_v51 = vmul.f32 %v6389_v53, %v706_v7  ;;  %v4333_v12 = vpop.permute.xlu1 %506 }
  0xe7   : > { %6386 = vst [vmem:[#allocation118_spill] sm:$0xff] %v4315_v37  ;;  %v6390_v59 = vunpack.c.l.bf16 %v3646_v5  ;;  %v699_v41 = vmul.f32 %v3597_v46, %v4315_v37  ;;  %v1971_v58 = vadd.f32 %v1715_v23, %v6391_v48  ;;  %v703_v63 = vmul.f32 %v3600_v47, %v4315_v37 }
  0xe8   : > { %v1731_v6 = vmul.f32 %v6387_v26, %v707_v30  ;;  %v6392_v30 = vunpack.c.h.bf16 %v3588_v43  ;;  %v698_v52 = vmul.f32 %v3611_v50, %v4315_v37  ;;  %v6393_v53 = vunpack.c.l.bf16 %v3576_v39  ;;  %v2231_v39 = vld [vmem:[%s6006_s0 + $0x8] sm:$0xff] }
  0xe9   : > { %v1734_v0 = vmul.f32 %v6390_v59, %v710_v36  ;;  %v702_v5 = vmul.f32 %v3617_v54, %v4315_v37  ;;  %v6394_v7 = vunpack.c.l.bf16 %v3588_v43  ;;  %v6395_v23 = vunpack.c.h.bf16 %v3585_v42  ;;  %v2235_v43 = vld [vmem:[%s6006_s0 + $0x28] sm:$0xff]  ;;  %2310 = vmatprep.mubr.f32.mxu1 %v2231_v39 }
  0xea   : > { %v1975_v9 = vadd.f32 %v1719_v35, %v6392_v30  ;;  %v1970_v61 = vadd.f32 %v1714_v2, %v6393_v53  ;;  %v6396_v26 = vunpack.c.h.bf16 %v3606_v49  ;;  %v715_v36 = vmul.f32 %v3597_v46, %v4333_v12  ;;  %2464 = vmatprep.mubr.f32.mxu0 %v2235_v43 }
  0xeb   : > { %v1974_v14 = vadd.f32 %v1718_v8, %v6394_v7  ;;  %v1723_v57 = vmul.f32 %v6395_v23, %v699_v41  ;;  %v6397_v59 = vunpack.c.h.bf16 %v3620_v55  ;;  %v6398_v2 = vunpack.c.l.bf16 %v3585_v42 }
  0xec   : > { %v1727_v35 = vmul.f32 %v6396_v26, %v703_v63  ;;  %v6399_v41 = vunpack.c.l.bf16 %v3606_v49  ;;  %v719_v30 = vmul.f32 %v3600_v47, %v4333_v12  ;;  %v6400_v53 = vunpack.c.h.bf16 %v3640_v3 }
  0xed   : > { %v1987_v48 = vadd.f32 %v1731_v6, %v6397_v59  ;;  %v1722_v8 = vmul.f32 %v6398_v2, %v698_v52  ;;  %v6401_v7 = vunpack.c.h.bf16 %v3579_v40  ;;  %v6402_v26 = vunpack.c.h.bf16 %v3591_v44 }
  0xee   : > { %v1726_v63 = vmul.f32 %v6399_v41, %v702_v5  ;;  %v1991_v6 = vadd.f32 %v1735_v56, %v6400_v53  ;;  %v6403_v42 = vunpack.c.h.bf16 %v3633_v62  ;;  %v714_v49 = vmul.f32 %v3611_v50, %v4333_v12 }
  0xef   : > { %v1979_v23 = vadd.f32 %v1723_v57, %v6401_v7  ;;  %v1983_v59 = vadd.f32 %v1727_v35, %v6402_v26  ;;  %v6404_v5 = vunpack.c.l.bf16 %v3579_v40  ;;  %v6405_v56 = vunpack.c.l.bf16 %v3591_v44  ;;  %v4381_v35 = vpop.permute.xlu0 %511  ;;  %v4390_v44 = vpop.permute.xlu1 %516 }
  0xf0   : > { %v1739_v52 = vmul.f32 %v6403_v42, %v715_v36  ;;  %v6406_v39 = vunpack.c.h.bf16 %v3653_v10  ;;  %v6407_v57 = vunpack.c.l.bf16 %v3620_v55  ;;  %v6408_v42 = vunpack.c.h.bf16 %v3627_v60 }
  0xf1   : > { %v1978_v2 = vadd.f32 %v1722_v8, %v6404_v5  ;;  %v1982_v41 = vadd.f32 %v1726_v63, %v6405_v56  ;;  %v2807_v26 = vpack.c.bf16 %v1979_v23, %v1971_v58  ;;  %v2935_v36 = vpack.c.bf16 %v1983_v59, %v1975_v9  ;;  %v4388_v8 = vld [vmem:[%s3514_s27 + $0x48] sm:$0xff]  ;;  %v6542_v56 = vld [vmem:[#allocation43_spill] sm:$0xff] }
  0xf2   : > { %v1743_v53 = vmul.f32 %v6406_v39, %v719_v30  ;;  %v1986_v7 = vadd.f32 %v1730_v51, %v6407_v57  ;;  %v1995_v37 = vadd.f32 %v1739_v52, %v6408_v42  ;;  %v6409_v43 = vunpack.c.l.bf16 %v3633_v62 }
  0xf3   : > { %v2809_v63 = vpack.c.bf16 %v1978_v2, %v1970_v61  ;;  %v2937_v5 = vpack.c.bf16 %v1982_v41, %v1974_v14  ;;  %v6410_v30 = vunpack.c.h.bf16 %v3643_v4  ;;  %v718_v51 = vmul.f32 %v3617_v54, %v4333_v12  ;;  %2808 = vmatprep.subr.bf16.mxu1 %v2807_v26  ;;  %2936 = vmatprep.subr.bf16.mxu0 %v2935_v36  ;;  %v4420_v57 = vpop.permute.xlu0 %521 }
  0xf4   : > { %v1738_v40 = vmul.f32 %v6409_v43, %v714_v49  ;;  %v2811_v58 = vpack.c.bf16 %v1995_v37, %v1987_v48  ;;  %v6411_v9 = vunpack.c.l.bf16 %v3627_v60  ;;  %v6412_v62 = vunpack.c.l.bf16 %v3640_v3 }
  0xf5   : > { %v1999_v55 = vadd.f32 %v1743_v53, %v6410_v30  ;;  %2810 = vmatpush1.bf16.xpose.msra.mxu1 %v2809_v63  ;;  %2938 = vmatpush1.bf16.xpose.msra.mxu0 %v2937_v5  ;;  %v6413_v14 = vunpack.c.l.bf16 %v3653_v10  ;;  %v723_v2 = vmul.f32 %v3597_v46, %v4381_v35  ;;  %v731_v60 = vmul.f32 %v3597_v46, %v4390_v44  ;;  %v4430_v63 = vpop.permute.xlu1 %526 }
  0xf6   : > { %v1994_v23 = vadd.f32 %v1738_v40, %v6411_v9  ;;  %v1990_v59 = vadd.f32 %v1734_v0, %v6412_v62  ;;  %2812 = vmatprep.subr.bf16.mxu1 %v2811_v58  ;;  %v727_v3 = vmul.f32 %v3600_v47, %v4381_v35  ;;  %v735_v0 = vmul.f32 %v3600_v47, %v4390_v44 }
  0xf7   : > { %v2939_v61 = vpack.c.bf16 %v1999_v55, %v1991_v6  ;;  %v1742_v49 = vmul.f32 %v6413_v14, %v718_v51  ;;  %v6414_v10 = vunpack.c.l.bf16 %v3643_v4  ;;  %v6415_v6 = vunpack.c.h.bf16 %v3670_v21 }
  0xf8   : > { %v2813_v37 = vpack.c.bf16 %v1994_v23, %v1986_v7  ;;  %v722_v39 = vmul.f32 %v3611_v50, %v4381_v35  ;;  %v730_v53 = vmul.f32 %v3611_v50, %v4390_v44  ;;  %v6416_v7 = vunpack.c.h.bf16 %v3673_v22 }
  0xf9   : > { %2940 = vmatprep.subr.bf16.mxu0 %v2939_v61  ;;  %v1998_v48 = vadd.f32 %v1742_v49, %v6414_v10  ;;  %v1747_v41 = vmul.f32 %v6415_v6, %v723_v2  ;;  %v6417_v36 = vunpack.c.h.bf16 %v3686_v29  ;;  %v6418_v4 = vunpack.c.h.bf16 %v3693_v38 }
  0xfa   : > { %v1755_v26 = vmul.f32 %v6416_v7, %v731_v60  ;;  %v726_v40 = vmul.f32 %v3617_v54, %v4381_v35  ;;  %v6419_v30 = vunpack.c.h.bf16 %v3660_v15  ;;  %v6420_v51 = vunpack.c.l.bf16 %v3670_v21 }
  0xfb   : > { %v1751_v42 = vmul.f32 %v6417_v36, %v727_v3  ;;  %v1759_v43 = vmul.f32 %v6418_v4, %v735_v0  ;;  %v2941_v5 = vpack.c.bf16 %v1998_v48, %v1990_v59  ;;  %v6421_v9 = vunpack.c.l.bf16 %v3673_v22 }
  0xfc   : > { %v2003_v55 = vadd.f32 %v1747_v41, %v6419_v30  ;;  %v1746_v58 = vmul.f32 %v6420_v51, %v722_v39  ;;  %v6422_v62 = vunpack.c.h.bf16 %v3667_v20  ;;  %v6423_v14 = vunpack.c.h.bf16 %v3680_v27  ;;  %v4455_v41 = vld [vmem:[%s3514_s27 + $0x68] sm:$0xff] }
  0xfd   : > { %v1754_v23 = vmul.f32 %v6421_v9, %v730_v53  ;;  %v6424_v2 = vunpack.c.h.bf16 %v3683_v28  ;;  %v734_v59 = vmul.f32 %v3617_v54, %v4390_v44  ;;  %v6425_v3 = vunpack.c.l.bf16 %v3660_v15  ;;  %2814 = vmatpush1.bf16.xpose.msra.mxu1 %v2813_v37  ;;  %2942 = vmatpush1.bf16.xpose.msra.mxu0 %v2941_v5 }
  0xfe   : > { %v2011_v61 = vadd.f32 %v1755_v26, %v6422_v62  ;;  %v2007_v49 = vadd.f32 %v1751_v42, %v6423_v14  ;;  %v6426_v21 = vunpack.c.l.bf16 %v3667_v20  ;;  %v6427_v22 = vunpack.c.l.bf16 %v3686_v29 }
  0xff   : > { %v2015_v60 = vadd.f32 %v1759_v43, %v6424_v2  ;;  %v2002_v0 = vadd.f32 %v1746_v58, %v6425_v3  ;;  %v739_v6 = vmul.f32 %v3597_v46, %v4420_v57  ;;  %v6428_v7 = vunpack.c.l.bf16 %v3693_v38 }
 0x100   : > { %v2010_v10 = vadd.f32 %v1754_v23, %v6426_v21  ;;  %v1750_v48 = vmul.f32 %v6427_v22, %v726_v40  ;;  %v2815_v39 = vpack.c.bf16 %v2011_v61, %v2003_v55  ;;  %v747_v15 = vmul.f32 %v3597_v46, %v4430_v63 }
 0x101   : > { %v2943_v53 = vpack.c.bf16 %v2015_v60, %v2007_v49  ;;  %v1758_v26 = vmul.f32 %v6428_v7, %v734_v59  ;;  %v6429_v36 = vunpack.c.l.bf16 %v3680_v27  ;;  %v6430_v42 = vunpack.c.h.bf16 %v3704_v13  ;;  %v4473_v27 = vpop.permute.xlu0 %531  ;;  %v4489_v59 = vpop.permute.xlu1 %536 }
 0x102   : > { %v2817_v20 = vpack.c.bf16 %v2010_v10, %v2002_v0  ;;  %2816 = vmatprep.subr.bf16.mxu1 %v2815_v39  ;;  %v6431_v40 = vunpack.c.l.bf16 %v3683_v28  ;;  %v6432_v30 = vunpack.c.h.bf16 %v3707_v45  ;;  %v743_v37 = vmul.f32 %v3600_v47, %v4420_v57 }
 0x103   : > { %v2006_v29 = vadd.f32 %v1750_v48, %v6429_v36  ;;  %v1763_v4 = vmul.f32 %v6430_v42, %v739_v6  ;;  %2944 = vmatprep.subr.bf16.mxu0 %v2943_v53  ;;  %v6433_v51 = vunpack.c.h.bf16 %v3717_v24  ;;  %v751_v9 = vmul.f32 %v3600_v47, %v4430_v63 }
 0x104   : > { %v2014_v38 = vadd.f32 %v1758_v26, %v6431_v40  ;;  %v1771_v55 = vmul.f32 %v6432_v30, %v747_v15  ;;  %v738_v28 = vmul.f32 %v3611_v50, %v4420_v57  ;;  %v746_v23 = vmul.f32 %v3611_v50, %v4430_v63 }
 0x105   : > { %v2019_v58 = vadd.f32 %v1763_v4, %v6433_v51  ;;  %v6434_v61 = vunpack.c.h.bf16 %v3720_v34  ;;  %v6435_v49 = vunpack.c.h.bf16 %v3710_v33  ;;  %v742_v60 = vmul.f32 %v3617_v54, %v4420_v57  ;;  %2818 = vmatpush1.bf16.xpose.msra.mxu1 %v2817_v20 }
 0x106   : > { %v2945_v62 = vpack.c.bf16 %v2014_v38, %v2006_v29  ;;  %v6436_v3 = vunpack.c.h.bf16 %v3723_v31  ;;  %v6437_v21 = vunpack.c.l.bf16 %v3704_v13  ;;  %v6438_v22 = vunpack.c.l.bf16 %v3707_v45 }
 0x107   : > { %v2027_v14 = vadd.f32 %v1771_v55, %v6434_v61  ;;  %v1767_v2 = vmul.f32 %v6435_v49, %v743_v37  ;;  %v750_v6 = vmul.f32 %v3617_v54, %v4430_v63  ;;  %v6439_v53 = vunpack.c.h.bf16 %v3730_v18 }
 0x108   : > { %v1775_v0 = vmul.f32 %v6436_v3, %v751_v9  ;;  %v1762_v10 = vmul.f32 %v6437_v21, %v738_v28  ;;  %v1770_v48 = vmul.f32 %v6438_v22, %v746_v23  ;;  %v6440_v26 = vunpack.c.l.bf16 %v3710_v33  ;;  %2946 = vmatpush1.bf16.xpose.msra.mxu0 %v2945_v62  ;;  %v4534_v3 = vpop.permute.xlu1 %546  ;;  %v6570_v23 = vld [vmem:[#allocation53_spill] sm:$0xff] }
 0x109   : > { %v2819_v39 = vpack.c.bf16 %v2027_v14, %v2019_v58  ;;  %v2023_v7 = vadd.f32 %v1767_v2, %v6439_v53  ;;  %v755_v36 = vmul.f32 %v3597_v46, %v4473_v27  ;;  %v6441_v29 = vunpack.c.h.bf16 %v3733_v32 }
 0x10a   : > { %v1766_v15 = vmul.f32 %v6440_v26, %v742_v60  ;;  %v6442_v42 = vunpack.c.l.bf16 %v3717_v24  ;;  %v6443_v4 = vunpack.c.l.bf16 %v3720_v34  ;;  %v6444_v38 = vunpack.c.l.bf16 %v3723_v31 }
 0x10b   : > { %v2031_v13 = vadd.f32 %v1775_v0, %v6441_v29  ;;  %v6445_v55 = vunpack.c.l.bf16 %v3730_v18  ;;  %v763_v33 = vmul.f32 %v3597_v46, %v4489_v59  ;;  %v6446_v51 = vunpack.c.h.bf16 %v3744_v17  ;;  %v4524_v18 = vpop.permute.xlu0 %541  ;;  %2820 = vmatprep.subr.bf16.mxu1 %v2819_v39 }
 0x10c   : > { %v2018_v45 = vadd.f32 %v1762_v10, %v6442_v42  ;;  %v2026_v40 = vadd.f32 %v1770_v48, %v6443_v4  ;;  %v1774_v30 = vmul.f32 %v6444_v38, %v750_v6  ;;  %v759_v9 = vmul.f32 %v3600_v47, %v4473_v27  ;;  %v6452_v6 = vld [vmem:[#allocation14_spill] sm:$0xff] }
 0x10d   : > { %v2022_v37 = vadd.f32 %v1766_v15, %v6445_v55  ;;  %v1779_v58 = vmul.f32 %v6446_v51, %v755_v36  ;;  %v2947_v24 = vpack.c.bf16 %v2031_v13, %v2023_v7  ;;  %v6447_v28 = vunpack.c.l.bf16 %v3733_v32  ;;  %v6454_v7 = vld [vmem:[#allocation15_spill] sm:$0xff]  ;;  %v6459_v55 = vld [vmem:[#allocation16_spill] sm:$0xff] }
 0x10e   : > { %v2821_v34 = vpack.c.bf16 %v2026_v40, %v2018_v45  ;;  %v6448_v61 = vunpack.c.h.bf16 %v3747_v1  ;;  %v6449_v49 = vunpack.c.h.bf16 %v3757_v25  ;;  %v767_v20 = vmul.f32 %v3600_v47, %v4489_v59 }
 0x10f   : > { %v2030_v31 = vadd.f32 %v1774_v30, %v6447_v28  ;;  %v6450_v62 = vunpack.c.h.bf16 %v3750_v16  ;;  %2948 = vmatprep.subr.bf16.mxu0 %v2947_v24  ;;  %v754_v0 = vmul.f32 %v3611_v50, %v4473_v27  ;;  %v762_v21 = vmul.f32 %v3611_v50, %v4489_v59 }
 0x110   : > { %v1787_v14 = vmul.f32 %v6448_v61, %v763_v33  ;;  %v2035_v2 = vadd.f32 %v1779_v58, %v6449_v49  ;;  %v758_v10 = vmul.f32 %v3617_v54, %v4473_v27  ;;  %v6451_v22 = vunpack.c.h.bf16 %v3760_v11  ;;  %2822 = vmatpush1.bf16.xpose.msra.mxu1 %v2821_v34  ;;  %v6607_v34 = vld [vmem:[#allocation64_spill] sm:$0xff] }
 0x111   : > { %v1783_v60 = vmul.f32 %v6450_v62, %v759_v9  ;;  %v2949_v32 = vpack.c.bf16 %v2030_v31, %v2022_v37  ;;  %v6453_v39 = vunpack.c.h.bf16 %v6452_v6  ;;  %v6455_v26 = vunpack.c.h.bf16 %v6454_v7  ;;  %v4565_v9 = vld [vmem:[%s3521_s13 + $0x48] sm:$0xff] }
 0x112   : > { %v2043_v48 = vadd.f32 %v1787_v14, %v6451_v22  ;;  %v766_v36 = vmul.f32 %v3617_v54, %v4489_v59  ;;  %v6456_v29 = vunpack.c.l.bf16 %v3744_v17  ;;  %v6457_v42 = vunpack.c.l.bf16 %v3747_v1  ;;  %v6465_v14 = vld [vmem:[#allocation17_spill] sm:$0xff]  ;;  %v4581_v22 = vpop.permute.xlu0 %551 }
 0x113   : > { %v1791_v53 = vmul.f32 %v6453_v39, %v767_v20  ;;  %v2039_v15 = vadd.f32 %v1783_v60, %v6455_v26  ;;  %v6458_v4 = vunpack.c.l.bf16 %v3750_v16  ;;  %v771_v38 = vmul.f32 %v3597_v46, %v4524_v18  ;;  %2950 = vmatpush1.bf16.xpose.msra.mxu0 %v2949_v32  ;;  %v4593_v32 = vpop.permute.xlu1 %556 }
 0x114   : > { %v1778_v13 = vmul.f32 %v6456_v29, %v754_v0  ;;  %v1786_v45 = vmul.f32 %v6457_v42, %v762_v21  ;;  %v2823_v30 = vpack.c.bf16 %v2043_v48, %v2035_v2  ;;  %v6460_v37 = vunpack.c.h.bf16 %v6459_v55  ;;  %v6468_v0 = vld [vmem:[#allocation18_spill] sm:$0xff]  ;;  %v6470_v48 = vld [vmem:[#allocation21_spill] sm:$0xff] }
 0x115   : > { %v1782_v40 = vmul.f32 %v6458_v4, %v758_v10  ;;  %v6461_v51 = vunpack.c.l.bf16 %v6452_v6  ;;  %v779_v17 = vmul.f32 %v3597_v46, %v4534_v3  ;;  %v6462_v1 = vunpack.c.l.bf16 %v3757_v25  ;;  %v6476_v4 = vld [vmem:[#allocation20_spill] sm:$0xff] }
 0x116   : > { %v2047_v33 = vadd.f32 %v1791_v53, %v6460_v37  ;;  %v6463_v16 = vunpack.c.l.bf16 %v3760_v11  ;;  %v6464_v31 = vunpack.c.l.bf16 %v6454_v7  ;;  %v6466_v49 = vunpack.c.h.bf16 %v6465_v14  ;;  %2824 = vmatprep.subr.bf16.mxu1 %v2823_v30 }
 0x117   : > { %v1790_v58 = vmul.f32 %v6461_v51, %v766_v36  ;;  %v2034_v24 = vadd.f32 %v1778_v13, %v6462_v1  ;;  %v6467_v62 = vunpack.c.l.bf16 %v6459_v55  ;;  %v6469_v21 = vunpack.c.h.bf16 %v6468_v0  ;;  %v6474_v13 = vld [vmem:[#allocation19_spill] sm:$0xff] }
 0x118   : > { %v2042_v28 = vadd.f32 %v1786_v45, %v6463_v16  ;;  %v2038_v61 = vadd.f32 %v1782_v40, %v6464_v31  ;;  %v1795_v2 = vmul.f32 %v6466_v49, %v771_v38  ;;  %v2951_v20 = vpack.c.bf16 %v2047_v33, %v2039_v15  ;;  %v6472_v15 = vld [vmem:[#allocation22_spill] sm:$0xff]  ;;  %v6478_v51 = vld [vmem:[#allocation23_spill] sm:$0xff]  ;;  %v6480_v16 = vld [vmem:[#allocation24_spill] sm:$0xff] }
 0x119   : > { %v2046_v60 = vadd.f32 %v1790_v58, %v6467_v62  ;;  %v1803_v10 = vmul.f32 %v6469_v21, %v779_v17  ;;  %v775_v25 = vmul.f32 %v3600_v47, %v4524_v18  ;;  %v6471_v6 = vunpack.c.h.bf16 %v6470_v48 }
 0x11a   : > { %v2825_v11 = vpack.c.bf16 %v2042_v28, %v2034_v24  ;;  %v783_v53 = vmul.f32 %v3600_v47, %v4534_v3  ;;  %2952 = vmatprep.subr.bf16.mxu0 %v2951_v20  ;;  %v6473_v36 = vunpack.c.h.bf16 %v6472_v15  ;;  %v6475_v42 = vunpack.c.h.bf16 %v6474_v13 }
 0x11b   : > { %v2051_v39 = vadd.f32 %v1795_v2, %v6471_v6  ;;  %v2953_v26 = vpack.c.bf16 %v2046_v60, %v2038_v61  ;;  %v6477_v40 = vunpack.c.h.bf16 %v6476_v4  ;;  %v770_v55 = vmul.f32 %v3611_v50, %v4524_v18  ;;  %v6486_v6 = vld [vmem:[#allocation25_spill] sm:$0xff] }
 0x11c   : > { %v2059_v29 = vadd.f32 %v1803_v10, %v6473_v36  ;;  %v1799_v45 = vmul.f32 %v6475_v42, %v775_v25  ;;  %v778_v30 = vmul.f32 %v3611_v50, %v4534_v3  ;;  %v774_v37 = vmul.f32 %v3617_v54, %v4524_v18  ;;  %2826 = vmatpush1.bf16.xpose.msra.mxu1 %v2825_v11 }
 0x11d   : > { %v1807_v38 = vmul.f32 %v6477_v40, %v783_v53  ;;  %v6479_v58 = vunpack.c.h.bf16 %v6478_v51  ;;  %v782_v1 = vmul.f32 %v3617_v54, %v4534_v3  ;;  %v787_v24 = vmul.f32 %v3597_v46, %v4581_v22  ;;  %2954 = vmatpush1.bf16.xpose.msra.mxu0 %v2953_v26 }
 0x11e   : > { %v2827_v33 = vpack.c.bf16 %v2059_v29, %v2051_v39  ;;  %v6481_v28 = vunpack.c.h.bf16 %v6480_v16  ;;  %v6482_v61 = vunpack.c.l.bf16 %v6465_v14  ;;  %v6483_v2 = vunpack.c.l.bf16 %v6468_v0  ;;  %v4626_v14 = vld [vmem:[%s3521_s13 + $0x68] sm:$0xff] }
 0x11f   : > { %v2055_v17 = vadd.f32 %v1799_v45, %v6479_v58  ;;  %v6484_v62 = vunpack.c.l.bf16 %v6474_v13  ;;  %v6485_v21 = vunpack.c.l.bf16 %v6476_v4  ;;  %v795_v25 = vmul.f32 %v3597_v46, %v4593_v32 }
 0x120   : > { %v2063_v31 = vadd.f32 %v1807_v38, %v6481_v28  ;;  %v1794_v49 = vmul.f32 %v6482_v61, %v770_v55  ;;  %v1802_v20 = vmul.f32 %v6483_v2, %v778_v30  ;;  %v6487_v39 = vunpack.c.h.bf16 %v6486_v6  ;;  %v6492_v30 = vld [vmem:[#allocation26_spill] sm:$0xff]  ;;  %v4649_v2 = vpop.permute.xlu1 %566  ;;  %2828 = vmatprep.subr.bf16.mxu1 %v2827_v33 }
 0x121   : > { %v1798_v60 = vmul.f32 %v6484_v62, %v774_v37  ;;  %v1806_v10 = vmul.f32 %v6485_v21, %v782_v1  ;;  %v791_v36 = vmul.f32 %v3600_v47, %v4581_v22  ;;  %v6488_v0 = vunpack.c.l.bf16 %v6470_v48  ;;  %v6494_v1 = vld [vmem:[#allocation28_spill] sm:$0xff]  ;;  %v4642_v48 = vpop.permute.xlu0 %561  ;;  %6499 = vst [vmem:[#allocation15_spill] sm:$0xff] %v4649_v2  ;;  %v6500_v62 = vld [vmem:[#allocation29_spill] sm:$0xff] }
 0x122   : > { %v1811_v53 = vmul.f32 %v6487_v39, %v787_v24  ;;  %v2955_v29 = vpack.c.bf16 %v2063_v31, %v2055_v17  ;;  %v6489_v13 = vunpack.c.l.bf16 %v6472_v15  ;;  %v6490_v4 = vunpack.c.l.bf16 %v6478_v51  ;;  %6496 = vst [vmem:[#allocation14_spill] sm:$0xff] %v4642_v48  ;;  %v6497_v31 = vld [vmem:[#allocation27_spill] sm:$0xff] }
 0x123   : > { %v2050_v42 = vadd.f32 %v1794_v49, %v6488_v0  ;;  %v6491_v38 = vunpack.c.l.bf16 %v6480_v16  ;;  %v6493_v37 = vunpack.c.h.bf16 %v6492_v30  ;;  %v6495_v24 = vunpack.c.h.bf16 %v6494_v1  ;;  %v6504_v39 = vld [vmem:[#allocation31_spill] sm:$0xff] }
 0x124   : > { %v2058_v45 = vadd.f32 %v1802_v20, %v6489_v13  ;;  %v2054_v40 = vadd.f32 %v1798_v60, %v6490_v4  ;;  %v799_v17 = vmul.f32 %v3600_v47, %v4593_v32  ;;  %v6498_v51 = vunpack.c.h.bf16 %v6497_v31  ;;  %2956 = vmatprep.subr.bf16.mxu0 %v2955_v29 }
 0x125   : > { %v2062_v55 = vadd.f32 %v1806_v10, %v6491_v38  ;;  %v1819_v58 = vmul.f32 %v6493_v37, %v795_v25  ;;  %v2067_v28 = vadd.f32 %v1811_v53, %v6495_v24  ;;  %v786_v16 = vmul.f32 %v3611_v50, %v4581_v22  ;;  %v6502_v10 = vld [vmem:[#allocation30_spill] sm:$0xff] }
 0x126   : > { %v2829_v15 = vpack.c.bf16 %v2058_v45, %v2050_v42  ;;  %v1815_v61 = vmul.f32 %v6498_v51, %v791_v36  ;;  %v6501_v60 = vunpack.c.h.bf16 %v6500_v62  ;;  %v6503_v11 = vunpack.c.h.bf16 %v6502_v10  ;;  %v6507_v45 = vld [vmem:[#allocation32_spill] sm:$0xff] }
 0x127   : > { %v2957_v20 = vpack.c.bf16 %v2062_v55, %v2054_v40  ;;  %v6505_v53 = vunpack.c.h.bf16 %v6504_v39  ;;  %v794_v0 = vmul.f32 %v3611_v50, %v4593_v32  ;;  %v6506_v42 = vunpack.c.l.bf16 %v6486_v6 }
 0x128   : > { %v2075_v21 = vadd.f32 %v1819_v58, %v6501_v60  ;;  %v1823_v26 = vmul.f32 %v6503_v11, %v799_v17  ;;  %v790_v29 = vmul.f32 %v3617_v54, %v4581_v22  ;;  %v6508_v4 = vunpack.c.h.bf16 %v6507_v45  ;;  %2830 = vmatpush1.bf16.xpose.msra.mxu1 %v2829_v15  ;;  %v6556_v15 = vld [vmem:[#allocation48_spill] sm:$0xff] }
 0x129   : > { %v2071_v36 = vadd.f32 %v1815_v61, %v6505_v53  ;;  %v1810_v33 = vmul.f32 %v6506_v42, %v786_v16  ;;  %v798_v38 = vmul.f32 %v3617_v54, %v4593_v32  ;;  %v803_v55 = vmul.f32 %v3597_v46, %v4642_v48  ;;  %v4685_v53 = vld [vmem:[%s3514_s27 + $0x58] sm:$0xff]  ;;  %2958 = vmatpush1.bf16.xpose.msra.mxu0 %v2957_v20 }
 0x12a   : > { %v2831_v13 = vpack.c.bf16 %v2075_v21, %v2067_v28  ;;  %v2079_v40 = vadd.f32 %v1823_v26, %v6508_v4  ;;  %v6509_v37 = vunpack.c.l.bf16 %v6492_v30  ;;  %v6510_v24 = vunpack.c.l.bf16 %v6494_v1  ;;  %v6513_v21 = vld [vmem:[#allocation33_spill] sm:$0xff] }
 0x12b   : > { %v6511_v17 = vunpack.c.l.bf16 %v6497_v31  ;;  %v811_v28 = vmul.f32 %v3597_v46, %v4649_v2  ;;  %v6512_v16 = vunpack.c.l.bf16 %v6502_v10  ;;  %v6514_v11 = vunpack.c.h.bf16 %v6513_v21 }
 0x12c   : > { %v1818_v58 = vmul.f32 %v6509_v37, %v794_v0  ;;  %v2066_v6 = vadd.f32 %v1810_v33, %v6510_v24  ;;  %v2959_v61 = vpack.c.bf16 %v2079_v40, %v2071_v36  ;;  %v807_v30 = vmul.f32 %v3600_v47, %v4642_v48  ;;  %v6517_v33 = vld [vmem:[#allocation34_spill] sm:$0xff]  ;;  %v6522_v24 = vld [vmem:[#allocation36_spill] sm:$0xff]  ;;  %2832 = vmatprep.subr.bf16.mxu1 %v2831_v13 }
 0x12d   : > { %v1814_v51 = vmul.f32 %v6511_v17, %v790_v29  ;;  %v1822_v60 = vmul.f32 %v6512_v16, %v798_v38  ;;  %v1827_v26 = vmul.f32 %v6514_v11, %v803_v55  ;;  %v6515_v1 = vunpack.c.l.bf16 %v6500_v62  ;;  %v6520_v38 = vld [vmem:[#allocation35_spill] sm:$0xff] }
 0x12e   : > { %v6516_v31 = vunpack.c.l.bf16 %v6504_v39  ;;  %v6518_v29 = vunpack.c.h.bf16 %v6517_v33  ;;  %v815_v10 = vmul.f32 %v3600_v47, %v4649_v2  ;;  %v6519_v4 = vunpack.c.l.bf16 %v6507_v45  ;;  %v4703_v39 = vpop.permute.xlu1 %576  ;;  %2960 = vmatprep.subr.bf16.mxu0 %v2959_v61 }
 0x12f   : > { %v2074_v0 = vadd.f32 %v1818_v58, %v6515_v1  ;;  %v6521_v55 = vunpack.c.h.bf16 %v6520_v38  ;;  %v6523_v17 = vunpack.c.h.bf16 %v6522_v24  ;;  %v802_v62 = vmul.f32 %v3611_v50, %v4642_v48  ;;  %6524 = vst [vmem:[#allocation16_spill] sm:$0xff] %v4703_v39  ;;  %v4705_v58 = vpop.permute.xlu0 %571 }
 0x130   : > { %v2070_v42 = vadd.f32 %v1814_v51, %v6516_v31  ;;  %v1835_v36 = vmul.f32 %v6518_v29, %v811_v28  ;;  %v2078_v40 = vadd.f32 %v1822_v60, %v6519_v4  ;;  %6525 = vst [vmem:[#allocation17_spill] sm:$0xff] %v4705_v58  ;;  %v6526_v28 = vld [vmem:[#allocation38_spill] sm:$0xff]  ;;  %v6528_v60 = vld [vmem:[#allocation37_spill] sm:$0xff]  ;;  %v6530_v29 = vld [vmem:[#allocation39_spill] sm:$0xff]  ;;  %v806_v13 = vmul.f32 %v3617_v54, %v4642_v48 }
 0x131   : > { %v2083_v37 = vadd.f32 %v1827_v26, %v6521_v55  ;;  %v1831_v16 = vmul.f32 %v6523_v17, %v807_v30  ;;  %v2833_v51 = vpack.c.bf16 %v2074_v0, %v2066_v6  ;;  %v6527_v11 = vunpack.c.h.bf16 %v6526_v28  ;;  %v6532_v6 = vld [vmem:[#allocation40_spill] sm:$0xff] }
 0x132   : > { %v6529_v1 = vunpack.c.h.bf16 %v6528_v60  ;;  %v2961_v30 = vpack.c.bf16 %v2078_v40, %v2070_v42  ;;  %v6531_v4 = vunpack.c.h.bf16 %v6530_v29  ;;  %v810_v17 = vmul.f32 %v3611_v50, %v4649_v2 }
 0x133   : > { %v2091_v45 = vadd.f32 %v1835_v36, %v6527_v11  ;;  %v6533_v0 = vunpack.c.h.bf16 %v6532_v6  ;;  %v6535_v61 = vunpack.c.l.bf16 %v6517_v33  ;;  %v814_v40 = vmul.f32 %v3617_v54, %v4649_v2  ;;  %2834 = vmatpush1.bf16.xpose.msra.mxu1 %v2833_v51 }
 0x134   : > { %v1839_v31 = vmul.f32 %v6529_v1, %v815_v10  ;;  %v2087_v55 = vadd.f32 %v1831_v16, %v6531_v4  ;;  %v6534_v10 = vunpack.c.l.bf16 %v6513_v21  ;;  %v819_v16 = vmul.f32 %v3597_v46, %v4705_v58  ;;  %2962 = vmatpush1.bf16.xpose.msra.mxu0 %v2961_v30  ;;  %v6559_v30 = vld [vmem:[#allocation49_spill] sm:$0xff] }
 0x135   : > { %v2835_v20 = vpack.c.bf16 %v2091_v45, %v2083_v37  ;;  %v1834_v42 = vmul.f32 %v6535_v61, %v810_v17  ;;  %v827_v37 = vmul.f32 %v3597_v46, %v4703_v39  ;;  %v6536_v1 = vunpack.c.l.bf16 %v6520_v38  ;;  %v6540_v61 = vld [vmem:[#allocation41_spill] sm:$0xff]  ;;  %v4746_v38 = vld [vmem:[%s3514_s27 + $0x78] sm:$0xff] }
 0x136   : > { %v2095_v36 = vadd.f32 %v1839_v31, %v6533_v0  ;;  %v1826_v11 = vmul.f32 %v6534_v10, %v802_v62  ;;  %v6537_v62 = vunpack.c.l.bf16 %v6522_v24  ;;  %v823_v33 = vmul.f32 %v3600_v47, %v4705_v58 }
 0x137   : > { %v6538_v4 = vunpack.c.l.bf16 %v6526_v28  ;;  %v6539_v0 = vunpack.c.l.bf16 %v6528_v60  ;;  %v6541_v26 = vunpack.c.h.bf16 %v6540_v61  ;;  %v6544_v24 = vunpack.c.l.bf16 %v6530_v29  ;;  %2836 = vmatprep.subr.bf16.mxu1 %v2835_v20 }
 0x138   : > { %v2963_v45 = vpack.c.bf16 %v2095_v36, %v2087_v55  ;;  %v2082_v21 = vadd.f32 %v1826_v11, %v6536_v1  ;;  %v1830_v31 = vmul.f32 %v6537_v62, %v806_v13  ;;  %v6543_v55 = vunpack.c.h.bf16 %v6542_v56  ;;  %v6545_v1 = vld [vmem:[#allocation44_spill] sm:$0xff]  ;;  %v6548_v62 = vld [vmem:[#allocation46_spill] sm:$0xff] }
 0x139   : > { %v2090_v17 = vadd.f32 %v1834_v42, %v6538_v4  ;;  %v1838_v10 = vmul.f32 %v6539_v0, %v814_v40  ;;  %v1843_v5 = vmul.f32 %v6541_v26, %v819_v16  ;;  %v831_v13 = vmul.f32 %v3600_v47, %v4703_v39  ;;  %v6550_v0 = vld [vmem:[#allocation47_spill] sm:$0xff] }
 0x13a   : > { %v1851_v36 = vmul.f32 %v6543_v55, %v827_v37  ;;  %v2086_v11 = vadd.f32 %v1830_v31, %v6544_v24  ;;  %v6546_v28 = vunpack.c.h.bf16 %v6545_v1  ;;  %v818_v60 = vmul.f32 %v3611_v50, %v4705_v58  ;;  %v4762_v31 = vpop.permute.xlu1 %586  ;;  %v4764_v24 = vpop.permute.xlu0 %581  ;;  %2964 = vmatprep.subr.bf16.mxu0 %v2963_v45 }
 0x13b   : > { %v2837_v40 = vpack.c.bf16 %v2090_v17, %v2082_v21  ;;  %v6547_v26 = vunpack.c.l.bf16 %v6532_v6  ;;  %v6549_v37 = vunpack.c.h.bf16 %v6548_v62  ;;  %v6551_v55 = vunpack.c.h.bf16 %v6550_v0  ;;  %6552 = vst [vmem:[#allocation18_spill] sm:$0xff] %v4762_v31  ;;  %6553 = vst [vmem:[#allocation21_spill] sm:$0xff] %v4764_v24 }
 0x13c   : > { %v1847_v42 = vmul.f32 %v6546_v28, %v823_v33  ;;  %v6554_v33 = vld [vmem:[#allocation45_spill] sm:$0xff]  ;;  %v6557_v21 = vunpack.c.h.bf16 %v6556_v15  ;;  %v826_v6 = vmul.f32 %v3611_v50, %v4703_v39  ;;  %v830_v20 = vmul.f32 %v3617_v54, %v4703_v39 }
 0x13d   : > { %v2094_v16 = vadd.f32 %v1838_v10, %v6547_v26  ;;  %v2099_v4 = vadd.f32 %v1843_v5, %v6549_v37  ;;  %v2107_v29 = vadd.f32 %v1851_v36, %v6551_v55  ;;  %v6555_v28 = vunpack.c.h.bf16 %v6554_v33  ;;  %2838 = vmatpush1.bf16.xpose.msra.mxu1 %v2837_v40 }
 0x13e   : > { %v2103_v17 = vadd.f32 %v1847_v42, %v6557_v21  ;;  %v6558_v26 = vunpack.c.l.bf16 %v6540_v61  ;;  %v6560_v55 = vunpack.c.h.bf16 %v6559_v30  ;;  %v822_v21 = vmul.f32 %v3617_v54, %v4705_v58 }
 0x13f   : > { %v1855_v49 = vmul.f32 %v6555_v28, %v831_v13  ;;  %v2965_v10 = vpack.c.bf16 %v2094_v16, %v2086_v11  ;;  %v2839_v36 = vpack.c.bf16 %v2107_v29, %v2099_v4  ;;  %v6561_v28 = vunpack.c.l.bf16 %v6542_v56 }
 0x140   : > { %v1842_v37 = vmul.f32 %v6558_v26, %v818_v60  ;;  %v6562_v45 = vunpack.c.l.bf16 %v6548_v62  ;;  %v835_v61 = vmul.f32 %v3597_v46, %v4764_v24  ;;  %v843_v60 = vmul.f32 %v3597_v46, %v4762_v31 }
 0x141   : > { %v2111_v13 = vadd.f32 %v1855_v49, %v6560_v55  ;;  %v1850_v42 = vmul.f32 %v6561_v28, %v826_v6  ;;  %v839_v56 = vmul.f32 %v3600_v47, %v4764_v24  ;;  %v6563_v16 = vunpack.c.l.bf16 %v6550_v0  ;;  %v4807_v0 = vld [vmem:[%s3521_s13 + $0x58] sm:$0xff]  ;;  %2966 = vmatpush1.bf16.xpose.msra.mxu0 %v2965_v10  ;;  %2840 = vmatprep.subr.bf16.mxu1 %v2839_v36 }
 0x142   : > { %v2098_v11 = vadd.f32 %v1842_v37, %v6562_v45  ;;  %v6564_v29 = vunpack.c.l.bf16 %v6545_v1  ;;  %v6565_v26 = vunpack.c.l.bf16 %v6554_v33  ;;  %v6566_v37 = vld [vmem:[#allocation50_spill] sm:$0xff]  ;;  %v6568_v45 = vld [vmem:[#allocation51_spill] sm:$0xff]  ;;  %v847_v7 = vmul.f32 %v3600_v47, %v4762_v31 }
 0x143   : > { %v2967_v49 = vpack.c.bf16 %v2111_v13, %v2103_v17  ;;  %v2106_v4 = vadd.f32 %v1850_v42, %v6563_v16  ;;  %v6567_v55 = vunpack.c.h.bf16 %v6566_v37  ;;  %v6569_v5 = vunpack.c.h.bf16 %v6568_v45  ;;  %v4815_v16 = vpop.permute.xlu0 %591 }
 0x144   : > { %v1846_v6 = vmul.f32 %v6564_v29, %v822_v21  ;;  %v1854_v62 = vmul.f32 %v6565_v26, %v830_v20  ;;  %v6571_v17 = vunpack.c.h.bf16 %v6570_v23  ;;  %v6572_v1 = vunpack.c.l.bf16 %v6556_v15  ;;  %6574 = vst [vmem:[#allocation22_spill] sm:$0xff] %v4815_v16  ;;  %v6577_v26 = vld [vmem:[#allocation55_spill] sm:$0xff] }
 0x145   : > { %v1859_v28 = vmul.f32 %v6567_v55, %v835_v61  ;;  %v1867_v51 = vmul.f32 %v6569_v5, %v843_v60  ;;  %v2841_v42 = vpack.c.bf16 %v2106_v4, %v2098_v11  ;;  %v6573_v33 = vunpack.c.l.bf16 %v6559_v30  ;;  %v6575_v5 = vld [vmem:[#allocation52_spill] sm:$0xff]  ;;  %2968 = vmatprep.subr.bf16.mxu0 %v2967_v49 }
 0x146   : > { %v1863_v13 = vmul.f32 %v6571_v17, %v839_v56  ;;  %v2102_v21 = vadd.f32 %v1846_v6, %v6572_v1  ;;  %v834_v61 = vmul.f32 %v3611_v50, %v4764_v24  ;;  %v6576_v60 = vunpack.c.h.bf16 %v6575_v5  ;;  %v6579_v17 = vld [vmem:[#allocation54_spill] sm:$0xff]  ;;  %v6581_v4 = vld [vmem:[#allocation56_spill] sm:$0xff]  ;;  %v4825_v1 = vpop.permute.xlu1 %596 }
 0x147   : > { %v2110_v20 = vadd.f32 %v1854_v62, %v6573_v33  ;;  %v6578_v55 = vunpack.c.h.bf16 %v6577_v26  ;;  %v6580_v43 = vunpack.c.h.bf16 %v6579_v17  ;;  %v6582_v15 = vunpack.c.h.bf16 %v6581_v4  ;;  %6583 = vst [vmem:[#allocation19_spill] sm:$0xff] %v4825_v1  ;;  %2842 = vmatpush1.bf16.xpose.msra.mxu1 %v2841_v42  ;;  %v6625_v42 = vld [vmem:[#allocation69_spill] sm:$0xff] }
 0x148   : > { %v2115_v29 = vadd.f32 %v1859_v28, %v6576_v60  ;;  %v842_v62 = vmul.f32 %v3611_v50, %v4762_v31  ;;  %v6584_v33 = vunpack.c.l.bf16 %v6566_v37  ;;  %v6587_v10 = vunpack.c.l.bf16 %v6568_v45  ;;  %v6597_v60 = vld [vmem:[#allocation60_spill] sm:$0xff] }
 0x149   : > { %v2123_v56 = vadd.f32 %v1867_v51, %v6578_v55  ;;  %v1871_v11 = vmul.f32 %v6580_v43, %v847_v7  ;;  %v2119_v6 = vadd.f32 %v1863_v13, %v6582_v15  ;;  %v2969_v30 = vpack.c.bf16 %v2110_v20, %v2102_v21  ;;  %v6585_v43 = vld [vmem:[#allocation57_spill] sm:$0xff] }
 0x14a   : > { %v1858_v28 = vmul.f32 %v6584_v33, %v834_v61  ;;  %v6586_v7 = vunpack.c.h.bf16 %v6585_v43  ;;  %v838_v13 = vmul.f32 %v3617_v54, %v4764_v24  ;;  %v1866_v21 = vmul.f32 %v6587_v10, %v842_v62 }
 0x14b   : > { %v2843_v51 = vpack.c.bf16 %v2123_v56, %v2115_v29  ;;  %v6588_v20 = vunpack.c.l.bf16 %v6575_v5  ;;  %v846_v36 = vmul.f32 %v3617_v54, %v4762_v31  ;;  %v851_v49 = vmul.f32 %v3597_v46, %v4815_v16  ;;  %2970 = vmatpush1.bf16.xpose.msra.mxu0 %v2969_v30 }
 0x14c   : > { %v2127_v55 = vadd.f32 %v1871_v11, %v6586_v7  ;;  %v6589_v29 = vunpack.c.l.bf16 %v6570_v23  ;;  %v859_v11 = vmul.f32 %v3597_v46, %v4825_v1  ;;  %v855_v45 = vmul.f32 %v3600_v47, %v4815_v16 }
 0x14d   : > { %v4841_v37 = vadd.f32 %v1858_v28, %v6588_v20  ;;  %v6590_v5 = vunpack.c.l.bf16 %v6577_v26  ;;  %v6591_v62 = vunpack.c.l.bf16 %v6579_v17  ;;  %v6592_v28 = vld [vmem:[#allocation58_spill] sm:$0xff]  ;;  %v6594_v23 = vunpack.c.l.bf16 %v6581_v4  ;;  %v4870_v17 = vld [vmem:[%s3521_s13 + $0x78] sm:$0xff]  ;;  %2844 = vmatprep.subr.bf16.mxu1 %v2843_v51 }
 0x14e   : > { %v2971_v61 = vpack.c.bf16 %v2127_v55, %v2119_v6  ;;  %v1862_v56 = vmul.f32 %v6589_v29, %v838_v13  ;;  %v6593_v7 = vunpack.c.h.bf16 %v6592_v28  ;;  %v863_v6 = vmul.f32 %v3600_v47, %v4825_v1  ;;  %v6595_v13 = vld [vmem:[#allocation59_spill] sm:$0xff] }
 0x14f   : > { %v2122_v15 = vadd.f32 %v1866_v21, %v6590_v5  ;;  %v1870_v33 = vmul.f32 %v6591_v62, %v846_v36  ;;  %v6596_v20 = vunpack.c.h.bf16 %v6595_v13  ;;  %v6598_v40 = vunpack.c.h.bf16 %v6597_v60  ;;  %v6600_v5 = vld [vmem:[#allocation62_spill] sm:$0xff] }
 0x150   : > { %v1875_v10 = vmul.f32 %v6593_v7, %v851_v49  ;;  %v2118_v55 = vadd.f32 %v1862_v56, %v6594_v23  ;;  %v850_v26 = vmul.f32 %v3611_v50, %v4815_v16  ;;  %v6599_v36 = vunpack.c.l.bf16 %v6585_v43  ;;  %v6602_v56 = vld [vmem:[#allocation61_spill] sm:$0xff]  ;;  %2972 = vmatprep.subr.bf16.mxu0 %v2971_v61 }
 0x151   : > { %v1883_v29 = vmul.f32 %v6596_v20, %v859_v11  ;;  %v1879_v25 = vmul.f32 %v6598_v40, %v855_v45  ;;  %v2845_v21 = vpack.c.bf16 %v2122_v15, %v4841_v37  ;;  %v6601_v62 = vunpack.c.h.bf16 %v6600_v5  ;;  %v4879_v11 = vpop.permute.xlu0 %601  ;;  %v6605_v20 = vld [vmem:[#allocation63_spill] sm:$0xff] }
 0x152   : > { %v2126_v49 = vadd.f32 %v1870_v33, %v6599_v36  ;;  %v6603_v7 = vunpack.c.h.bf16 %v6602_v56  ;;  %6604 = vst [vmem:[#allocation20_spill] sm:$0xff] %v4879_v11  ;;  %v6606_v40 = vunpack.c.h.bf16 %v6605_v20  ;;  %v6608_v52 = vunpack.c.h.bf16 %v6607_v34  ;;  %v4889_v33 = vpop.permute.xlu1 %606 }
 0x153   : > { %v2131_v4 = vadd.f32 %v1875_v10, %v6601_v62  ;;  %v858_v37 = vmul.f32 %v3611_v50, %v4825_v1  ;;  %v6609_v43 = vunpack.c.l.bf16 %v6592_v28  ;;  %6610 = vst [vmem:[#allocation23_spill] sm:$0xff] %v4889_v33  ;;  %v867_v51 = vmul.f32 %v3597_v46, %v4879_v11  ;;  %2846 = vmatpush1.bf16.xpose.msra.mxu1 %v2845_v21 }
 0x154   : > { %v1887_v23 = vmul.f32 %v6603_v7, %v863_v6  ;;  %v2139_v45 = vadd.f32 %v1883_v29, %v6606_v40  ;;  %v2135_v31 = vadd.f32 %v1879_v25, %v6608_v52  ;;  %v2973_v10 = vpack.c.bf16 %v2126_v49, %v2118_v55  ;;  %v6611_v6 = vld [vmem:[#allocation65_spill] sm:$0xff] }
 0x155   : > { %v1874_v15 = vmul.f32 %v6609_v43, %v850_v26  ;;  %v6612_v36 = vunpack.c.h.bf16 %v6611_v6  ;;  %v854_v29 = vmul.f32 %v3617_v54, %v4815_v16  ;;  %v6613_v25 = vunpack.c.l.bf16 %v6595_v13 }
 0x156   : > { %v2847_v52 = vpack.c.bf16 %v2139_v45, %v2131_v4  ;;  %v6614_v26 = vunpack.c.l.bf16 %v6600_v5  ;;  %v862_v55 = vmul.f32 %v3617_v54, %v4825_v1  ;;  %v6615_v49 = vunpack.c.l.bf16 %v6597_v60  ;;  %v6635_v1 = vld [vmem:[#allocation72_spill] sm:$0xff]  ;;  %2974 = vmatpush1.bf16.xpose.msra.mxu0 %v2973_v10 }
 0x157   : > { %v2143_v62 = vadd.f32 %v1887_v23, %v6612_v36  ;;  %v1882_v28 = vmul.f32 %v6613_v25, %v858_v37  ;;  %v6616_v61 = vunpack.c.l.bf16 %v6605_v20  ;;  %v875_v5 = vmul.f32 %v3597_v46, %v4889_v33  ;;  %v6621_v25 = vld [vmem:[#allocation67_spill] sm:$0xff] }
 0x158   : > { %v4900_v40 = vadd.f32 %v1874_v15, %v6614_v26  ;;  %v1878_v23 = vmul.f32 %v6615_v49, %v854_v29  ;;  %v871_v4 = vmul.f32 %v3600_v47, %v4879_v11  ;;  %v6617_v45 = vunpack.c.l.bf16 %v6602_v56  ;;  %v6619_v15 = vld [vmem:[#allocation66_spill] sm:$0xff]  ;;  %v6623_v49 = vld [vmem:[#allocation68_spill] sm:$0xff]  ;;  %2848 = vmatprep.subr.bf16.mxu1 %v2847_v52 }
 0x159   : > { %v2975_v30 = vpack.c.bf16 %v2143_v62, %v2135_v31  ;;  %v2138_v13 = vadd.f32 %v1882_v28, %v6616_v61  ;;  %v879_v31 = vmul.f32 %v3600_v47, %v4889_v33  ;;  %v6618_v60 = vunpack.c.l.bf16 %v6607_v34 }
 0x15a   : > { %v1886_v37 = vmul.f32 %v6617_v45, %v862_v55  ;;  %v6620_v36 = vunpack.c.h.bf16 %v6619_v15  ;;  %v866_v20 = vmul.f32 %v3611_v50, %v4879_v11  ;;  %v6622_v28 = vunpack.c.h.bf16 %v6621_v25  ;;  %v4933_v45 = vld [vmem:[%s3514_s27 + $0x88] sm:$0xff] }
 0x15b   : > { %v2134_v43 = vadd.f32 %v1878_v23, %v6618_v60  ;;  %v2849_v29 = vpack.c.bf16 %v2138_v13, %v4900_v40  ;;  %v6624_v61 = vunpack.c.h.bf16 %v6623_v49  ;;  %v6626_v56 = vunpack.c.h.bf16 %v6625_v42  ;;  %2976 = vmatprep.subr.bf16.mxu0 %v2975_v30 }
 0x15c   : > { %v1891_v62 = vmul.f32 %v6620_v36, %v867_v51  ;;  %v1899_v26 = vmul.f32 %v6622_v28, %v875_v5  ;;  %v6627_v34 = vunpack.c.l.bf16 %v6611_v6  ;;  %v6628_v51 = vld [vmem:[#allocation70_spill] sm:$0xff]  ;;  %v874_v40 = vmul.f32 %v3611_v50, %v4889_v33  ;;  %v4943_v28 = vpop.permute.xlu1 %616 }
 0x15d   : > { %v1895_v7 = vmul.f32 %v6624_v61, %v871_v4  ;;  %v1903_v55 = vmul.f32 %v6626_v56, %v879_v31  ;;  %v6629_v60 = vunpack.c.h.bf16 %v6628_v51  ;;  %v6630_v13 = vunpack.c.l.bf16 %v6619_v15  ;;  %6631 = vst [vmem:[#allocation24_spill] sm:$0xff] %v4943_v28  ;;  %v4945_v4 = vpop.permute.xlu0 %611  ;;  %v6633_v61 = vld [vmem:[#allocation71_spill] sm:$0xff]  ;;  %2850 = vmatpush1.bf16.xpose.msra.mxu1 %v2849_v29 }
 0x15e   : > { %v2142_v23 = vadd.f32 %v1886_v37, %v6627_v34  ;;  %6632 = vst [vmem:[#allocation25_spill] sm:$0xff] %v4945_v4  ;;  %v6634_v31 = vunpack.c.h.bf16 %v6633_v61  ;;  %v6636_v16 = vunpack.c.h.bf16 %v6635_v1  ;;  %v6637_v37 = vld [vmem:[#allocation73_spill] sm:$0xff]  ;;  %v6641_v10 = vunpack.c.l.bf16 %v6633_v61 }
 0x15f   : > { %v2147_v36 = vadd.f32 %v1891_v62, %v6629_v60  ;;  %v1890_v5 = vmul.f32 %v6630_v13, %v866_v20  ;;  %v6638_v34 = vunpack.c.h.bf16 %v6637_v37  ;;  %v870_v62 = vmul.f32 %v3617_v54, %v4879_v11  ;;  %v6663_v11 = vld [vmem:[#allocation81_spill] sm:$0xff] }
 0x160   : > { %v2155_v56 = vadd.f32 %v1899_v26, %v6634_v31  ;;  %v2151_v6 = vadd.f32 %v1895_v7, %v6636_v16  ;;  %v2977_v15 = vpack.c.bf16 %v2142_v23, %v2134_v43  ;;  %v6639_v20 = vunpack.c.l.bf16 %v6621_v25 }
 0x161   : > { %v2159_v24 = vadd.f32 %v1903_v55, %v6638_v34  ;;  %v6640_v13 = vunpack.c.l.bf16 %v6628_v51  ;;  %v878_v55 = vmul.f32 %v3617_v54, %v4889_v33  ;;  %v6642_v25 = vunpack.c.l.bf16 %v6623_v49 }
 0x162   : > { %v1898_v60 = vmul.f32 %v6639_v20, %v874_v40  ;;  %v2851_v16 = vpack.c.bf16 %v2155_v56, %v2147_v36  ;;  %v883_v51 = vmul.f32 %v3597_v46, %v4945_v4  ;;  %v891_v52 = vmul.f32 %v3597_v46, %v4943_v28  ;;  %v6645_v56 = vld [vmem:[#allocation74_spill] sm:$0xff]  ;;  %2978 = vmatpush1.bf16.xpose.msra.mxu0 %v2977_v15 }
 0x163   : > { %v4959_v39 = vadd.f32 %v1890_v5, %v6640_v13  ;;  %v2979_v7 = vpack.c.bf16 %v2159_v24, %v2151_v6  ;;  %v1894_v23 = vmul.f32 %v6642_v25, %v870_v62  ;;  %v6643_v24 = vunpack.c.l.bf16 %v6625_v42  ;;  %v6647_v42 = vld [vmem:[#allocation75_spill] sm:$0xff] }
 0x164   : > { %v4967_v43 = vadd.f32 %v1898_v60, %v6641_v10  ;;  %v887_v36 = vmul.f32 %v3600_v47, %v4945_v4  ;;  %v895_v40 = vmul.f32 %v3600_v47, %v4943_v28  ;;  %v882_v49 = vmul.f32 %v3611_v50, %v4945_v4  ;;  %2852 = vmatprep.subr.bf16.mxu1 %v2851_v16 }
 0x165   : > { %v1902_v30 = vmul.f32 %v6643_v24, %v878_v55  ;;  %v6644_v61 = vunpack.c.l.bf16 %v6635_v1  ;;  %v6646_v6 = vunpack.c.h.bf16 %v6645_v56  ;;  %v6648_v62 = vunpack.c.h.bf16 %v6647_v42  ;;  %v6650_v55 = vld [vmem:[#allocation76_spill] sm:$0xff]  ;;  %v6652_v24 = vld [vmem:[#allocation77_spill] sm:$0xff]  ;;  %v5000_v1 = vld [vmem:[%s3514_s27 + $0xa8] sm:$0xff]  ;;  %2980 = vmatprep.subr.bf16.mxu0 %v2979_v7 }
 0x166   : > { %v2853_v5 = vpack.c.bf16 %v4967_v43, %v4959_v39  ;;  %v6649_v60 = vunpack.c.l.bf16 %v6637_v37  ;;  %v6651_v10 = vunpack.c.h.bf16 %v6650_v55  ;;  %v6653_v26 = vunpack.c.h.bf16 %v6652_v24  ;;  %v6654_v43 = vld [vmem:[#allocation78_spill] sm:$0xff] }
 0x167   : > { %v2150_v31 = vadd.f32 %v1894_v23, %v6644_v61  ;;  %v1907_v34 = vmul.f32 %v6646_v6, %v883_v51  ;;  %v1915_v20 = vmul.f32 %v6648_v62, %v891_v52  ;;  %v890_v39 = vmul.f32 %v3611_v50, %v4943_v28  ;;  %v6656_v61 = vld [vmem:[#allocation79_spill] sm:$0xff]  ;;  %v5010_v62 = vpop.permute.xlu1 %626 }
 0x168   : > { %v2158_v13 = vadd.f32 %v1902_v30, %v6649_v60  ;;  %v1911_v25 = vmul.f32 %v6651_v10, %v887_v36  ;;  %v1919_v21 = vmul.f32 %v6653_v26, %v895_v40  ;;  %v6655_v23 = vunpack.c.h.bf16 %v6654_v43  ;;  %6659 = vst [vmem:[#allocation26_spill] sm:$0xff] %v5010_v62  ;;  %v5012_v26 = vpop.permute.xlu0 %621  ;;  %v6661_v60 = vld [vmem:[#allocation80_spill] sm:$0xff]  ;;  %2854 = vmatpush1.bf16.xpose.msra.mxu1 %v2853_v5 }
 0x169   : > { %v6657_v6 = vunpack.c.h.bf16 %v6656_v61  ;;  %v6658_v37 = vunpack.c.l.bf16 %v6645_v56  ;;  %v886_v36 = vmul.f32 %v3617_v54, %v4945_v4  ;;  %6660 = vst [vmem:[#allocation28_spill] sm:$0xff] %v5012_v26  ;;  %v6662_v10 = vunpack.c.h.bf16 %v6661_v60  ;;  %v6689_v4 = vld [vmem:[#allocation89_spill] sm:$0xff] }
 0x16a   : > { %v2163_v51 = vadd.f32 %v1907_v34, %v6655_v23  ;;  %v2981_v40 = vpack.c.bf16 %v2158_v13, %v2150_v31  ;;  %v6664_v58 = vunpack.c.h.bf16 %v6663_v11  ;;  %v6665_v23 = vunpack.c.l.bf16 %v6647_v42  ;;  %v6686_v42 = vld [vmem:[#allocation88_spill] sm:$0xff] }
 0x16b   : > { %v2171_v52 = vadd.f32 %v1915_v20, %v6657_v6  ;;  %v1906_v30 = vmul.f32 %v6658_v37, %v882_v49  ;;  %v2167_v33 = vadd.f32 %v1911_v25, %v6662_v10  ;;  %v6666_v56 = vunpack.c.l.bf16 %v6654_v43 }
 0x16c   : > { %v2175_v34 = vadd.f32 %v1919_v21, %v6664_v58  ;;  %v1914_v20 = vmul.f32 %v6665_v23, %v890_v39  ;;  %v894_v37 = vmul.f32 %v3617_v54, %v4943_v28  ;;  %v6667_v58 = vunpack.c.l.bf16 %v6656_v61  ;;  %v6674_v23 = vld [vmem:[#allocation83_spill] sm:$0xff]  ;;  %v5077_v28 = vpop.permute.xlu1 %636  ;;  %2982 = vmatpush1.bf16.xpose.msra.mxu0 %v2981_v40 }
 0x16d   : > { %v2855_v49 = vpack.c.bf16 %v2171_v52, %v2163_v51  ;;  %v5022_v6 = vadd.f32 %v1906_v30, %v6666_v56  ;;  %v6668_v29 = vunpack.c.l.bf16 %v6650_v55  ;;  %v6669_v25 = vunpack.c.l.bf16 %v6652_v24  ;;  %6688 = vst [vmem:[#allocation29_spill] sm:$0xff] %v5077_v28 }
 0x16e   : > { %v2983_v13 = vpack.c.bf16 %v2175_v34, %v2167_v33  ;;  %v5029_v21 = vadd.f32 %v1914_v20, %v6667_v58  ;;  %v899_v43 = vmul.f32 %v3597_v46, %v5012_v26  ;;  %v907_v16 = vmul.f32 %v3597_v46, %v5010_v62 }
 0x16f   : > { %v1910_v15 = vmul.f32 %v6668_v29, %v886_v36  ;;  %v1918_v39 = vmul.f32 %v6669_v25, %v894_v37  ;;  %v903_v33 = vmul.f32 %v3600_v47, %v5012_v26  ;;  %v6670_v55 = vunpack.c.l.bf16 %v6661_v60  ;;  %v6672_v36 = vld [vmem:[#allocation82_spill] sm:$0xff]  ;;  %v6676_v37 = vld [vmem:[#allocation84_spill] sm:$0xff]  ;;  %v5058_v60 = vpop.permute.xlu0 %631  ;;  %2856 = vmatprep.subr.bf16.mxu1 %v2855_v49 }
 0x170   : > { %v2857_v7 = vpack.c.bf16 %v5029_v21, %v5022_v6  ;;  %v911_v24 = vmul.f32 %v3600_v47, %v5010_v62  ;;  %v898_v61 = vmul.f32 %v3611_v50, %v5012_v26  ;;  %v6671_v52 = vunpack.c.l.bf16 %v6663_v11  ;;  %6678 = vst [vmem:[#allocation27_spill] sm:$0xff] %v5058_v60  ;;  %v6679_v21 = vld [vmem:[#allocation85_spill] sm:$0xff]  ;;  %2984 = vmatprep.subr.bf16.mxu0 %v2983_v13 }
 0x171   : > { %v2166_v51 = vadd.f32 %v1910_v15, %v6670_v55  ;;  %v6673_v10 = vunpack.c.h.bf16 %v6672_v36  ;;  %v6675_v20 = vunpack.c.h.bf16 %v6674_v23  ;;  %v6677_v6 = vunpack.c.h.bf16 %v6676_v37  ;;  %v5069_v55 = vld [vmem:[%s3521_s13 + $0x88] sm:$0xff] }
 0x172   : > { %v2174_v30 = vadd.f32 %v1918_v39, %v6671_v52  ;;  %v6680_v29 = vunpack.c.h.bf16 %v6679_v21  ;;  %v906_v25 = vmul.f32 %v3611_v50, %v5010_v62  ;;  %v6681_v11 = vunpack.c.l.bf16 %v6672_v36  ;;  %v6682_v52 = vld [vmem:[#allocation86_spill] sm:$0xff]  ;;  %2858 = vmatpush1.bf16.xpose.msra.mxu1 %v2857_v7 }
 0x173   : > { %v1923_v34 = vmul.f32 %v6673_v10, %v899_v43  ;;  %v1931_v56 = vmul.f32 %v6675_v20, %v907_v16  ;;  %v1927_v58 = vmul.f32 %v6677_v6, %v903_v33  ;;  %v902_v43 = vmul.f32 %v3617_v54, %v5012_v26  ;;  %v6684_v20 = vld [vmem:[#allocation87_spill] sm:$0xff] }
 0x174   : > { %v1935_v15 = vmul.f32 %v6680_v29, %v911_v24  ;;  %v1922_v39 = vmul.f32 %v6681_v11, %v898_v61  ;;  %v2985_v16 = vpack.c.bf16 %v2174_v30, %v2166_v51  ;;  %v6683_v10 = vunpack.c.h.bf16 %v6682_v52 }
 0x175   : > { %v6685_v6 = vunpack.c.h.bf16 %v6684_v20  ;;  %v6687_v24 = vunpack.c.h.bf16 %v6686_v42  ;;  %v6690_v36 = vunpack.c.h.bf16 %v6689_v4  ;;  %v6691_v11 = vunpack.c.l.bf16 %v6674_v23 }
 0x176   : > { %v2179_v33 = vadd.f32 %v1923_v34, %v6683_v10  ;;  %v6692_v2 = vunpack.c.l.bf16 %v6682_v52  ;;  %v910_v30 = vmul.f32 %v3617_v54, %v5010_v62  ;;  %v915_v10 = vmul.f32 %v3597_v46, %v5058_v60  ;;  %v6697_v52 = vld [vmem:[#allocation90_spill] sm:$0xff]  ;;  %2986 = vmatpush1.bf16.xpose.msra.mxu0 %v2985_v16 }
 0x177   : > { %v2187_v31 = vadd.f32 %v1931_v56, %v6685_v6  ;;  %v2183_v29 = vadd.f32 %v1927_v58, %v6687_v24  ;;  %v2191_v61 = vadd.f32 %v1935_v15, %v6690_v36  ;;  %v1930_v26 = vmul.f32 %v6691_v11, %v906_v25  ;;  %v5119_v24 = vpop.permute.xlu0 %641  ;;  %v6703_v11 = vld [vmem:[#allocation94_spill] sm:$0xff] }
 0x178   : > { %v5085_v51 = vadd.f32 %v1922_v39, %v6692_v2  ;;  %v6693_v56 = vunpack.c.l.bf16 %v6676_v37  ;;  %v6694_v2 = vunpack.c.l.bf16 %v6684_v20  ;;  %v6695_v39 = vunpack.c.l.bf16 %v6679_v21  ;;  %6700 = vst [vmem:[#allocation30_spill] sm:$0xff] %v5119_v24 }
 0x179   : > { %v2859_v34 = vpack.c.bf16 %v2187_v31, %v2179_v33  ;;  %v2987_v23 = vpack.c.bf16 %v2191_v61, %v2183_v29  ;;  %v6696_v31 = vunpack.c.l.bf16 %v6686_v42  ;;  %v6698_v49 = vunpack.c.h.bf16 %v6697_v52  ;;  %v6701_v29 = vld [vmem:[#allocation91_spill] sm:$0xff] }
 0x17a   : > { %v1926_v58 = vmul.f32 %v6693_v56, %v902_v43  ;;  %v5096_v25 = vadd.f32 %v1930_v26, %v6694_v2  ;;  %v1934_v5 = vmul.f32 %v6695_v39, %v910_v30  ;;  %v923_v43 = vmul.f32 %v3597_v46, %v5077_v28 }
 0x17b   : > { %v1939_v13 = vmul.f32 %v6698_v49, %v915_v10  ;;  %v919_v26 = vmul.f32 %v3600_v47, %v5058_v60  ;;  %v6699_v33 = vunpack.c.l.bf16 %v6689_v4  ;;  %v927_v42 = vmul.f32 %v3600_v47, %v5077_v28  ;;  %2860 = vmatprep.subr.bf16.mxu1 %v2859_v34  ;;  %2988 = vmatprep.subr.bf16.mxu0 %v2987_v23 }
 0x17c   : > { %v5103_v37 = vadd.f32 %v1926_v58, %v6696_v31  ;;  %v2861_v21 = vpack.c.bf16 %v5096_v25, %v5085_v51  ;;  %v914_v6 = vmul.f32 %v3611_v50, %v5058_v60  ;;  %v6702_v36 = vunpack.c.h.bf16 %v6701_v29  ;;  %v6705_v58 = vld [vmem:[#allocation92_spill] sm:$0xff]  ;;  %v6707_v25 = vld [vmem:[#allocation93_spill] sm:$0xff] }
 0x17d   : > { %v2190_v20 = vadd.f32 %v1934_v5, %v6699_v33  ;;  %v6704_v30 = vunpack.c.h.bf16 %v6703_v11  ;;  %v6706_v10 = vunpack.c.h.bf16 %v6705_v58  ;;  %v922_v4 = vmul.f32 %v3611_v50, %v5077_v28  ;;  %v5137_v33 = vld [vmem:[%s3521_s13 + $0xa8] sm:$0xff] }
 0x17e   : > { %v1947_v61 = vmul.f32 %v6702_v36, %v923_v43  ;;  %v6708_v39 = vunpack.c.h.bf16 %v6707_v25  ;;  %v6709_v31 = vunpack.c.l.bf16 %v6697_v52  ;;  %v918_v43 = vmul.f32 %v3617_v54, %v5058_v60  ;;  %v6711_v36 = vld [vmem:[#allocation95_spill] sm:$0xff]  ;;  %2862 = vmatpush1.bf16.xpose.msra.mxu1 %v2861_v21  ;;  %v6750_v21 = vld [vmem:[#allocation106_spill] sm:$0xff] }
 0x17f   : > { %v2195_v56 = vadd.f32 %v1939_v13, %v6704_v30  ;;  %v1943_v51 = vmul.f32 %v6706_v10, %v919_v26  ;;  %v2989_v2 = vpack.c.bf16 %v2190_v20, %v5103_v37  ;;  %v5139_v13 = vpop.permute.xlu1 %646  ;;  %v6712_v26 = vunpack.c.h.bf16 %v6711_v36  ;;  %v6713_v10 = vld [vmem:[#allocation96_spill] sm:$0xff] }
 0x180   : > { %v1951_v5 = vmul.f32 %v6708_v39, %v927_v42  ;;  %v1938_v49 = vmul.f32 %v6709_v31, %v914_v6  ;;  %6710 = vst [vmem:[#allocation31_spill] sm:$0xff] %v5139_v13  ;;  %v6714_v15 = vunpack.c.h.bf16 %v6713_v10  ;;  %v6715_v37 = vunpack.c.l.bf16 %v6701_v29  ;;  %v6716_v42 = vld [vmem:[#allocation97_spill] sm:$0xff] }
 0x181   : > { %v2203_v30 = vadd.f32 %v1947_v61, %v6712_v26  ;;  %v926_v52 = vmul.f32 %v3617_v54, %v5077_v28  ;;  %v6717_v6 = vunpack.c.h.bf16 %v6716_v42  ;;  %v6718_v31 = vunpack.c.l.bf16 %v6703_v11  ;;  %2990 = vmatpush1.bf16.xpose.msra.mxu0 %v2989_v2  ;;  %v5276_v28 = vld [vmem:[%s3514_s27 + $0xb8] sm:$0xff] }
 0x182   : > { %v2199_v40 = vadd.f32 %v1943_v51, %v6714_v15  ;;  %v1946_v20 = vmul.f32 %v6715_v37, %v922_v4  ;;  %v6719_v62 = vunpack.c.l.bf16 %v6705_v58  ;;  %v931_v61 = vmul.f32 %v3597_v46, %v5119_v24 }
 0x183   : > { %v2207_v39 = vadd.f32 %v1951_v5, %v6717_v6  ;;  %v5153_v60 = vadd.f32 %v1938_v49, %v6718_v31  ;;  %v2863_v15 = vpack.c.bf16 %v2203_v30, %v2195_v56  ;;  %v6720_v29 = vunpack.c.l.bf16 %v6711_v36  ;;  %v6724_v36 = vld [vmem:[#allocation98_spill] sm:$0xff]  ;;  %v6730_v6 = vld [vmem:[#allocation100_spill] sm:$0xff] }
 0x184   : > { %v1942_v48 = vmul.f32 %v6719_v62, %v918_v43  ;;  %v6721_v4 = vunpack.c.l.bf16 %v6707_v25  ;;  %v6722_v62 = vunpack.c.l.bf16 %v6713_v10  ;;  %v939_v7 = vmul.f32 %v3597_v46, %v5139_v13 }
 0x185   : > { %v5161_v51 = vadd.f32 %v1946_v20, %v6720_v29  ;;  %v2991_v49 = vpack.c.bf16 %v2207_v39, %v2199_v40  ;;  %v6723_v25 = vunpack.c.l.bf16 %v6716_v42  ;;  %v6725_v34 = vunpack.c.h.bf16 %v6724_v36  ;;  %v6728_v20 = vld [vmem:[#allocation102_spill] sm:$0xff]  ;;  %v6732_v29 = vld [vmem:[#allocation103_spill] sm:$0xff]  ;;  %2864 = vmatprep.subr.bf16.mxu1 %v2863_v15 }
 0x186   : > { %v1950_v5 = vmul.f32 %v6721_v4, %v926_v52  ;;  %v5168_v58 = vadd.f32 %v1942_v48, %v6722_v62  ;;  %v935_v40 = vmul.f32 %v3600_v47, %v5119_v24  ;;  %v6726_v48 = vld [vmem:[#allocation99_spill] sm:$0xff]  ;;  %v943_v46 = vmul.f32 %v3600_v47, %v5139_v13  ;;  %v6734_v4 = vld [vmem:[#allocation101_spill] sm:$0xff] }
 0x187   : > { %v2865_v56 = vpack.c.bf16 %v5161_v51, %v5153_v60  ;;  %v1955_v23 = vmul.f32 %v6725_v34, %v931_v61  ;;  %v6727_v26 = vunpack.c.h.bf16 %v6726_v48  ;;  %v930_v10 = vmul.f32 %v3611_v50, %v5119_v24  ;;  %v6738_v34 = vld [vmem:[#allocation104_spill] sm:$0xff]  ;;  %2992 = vmatprep.subr.bf16.mxu0 %v2991_v49  ;;  %v6755_v15 = vld [vmem:[#allocation111_spill] sm:$0xff] }
 0x188   : > { %v2206_v43 = vadd.f32 %v1950_v5, %v6723_v25  ;;  %v938_v60 = vmul.f32 %v3611_v50, %v5139_v13  ;;  %v6729_v52 = vunpack.c.h.bf16 %v6728_v20  ;;  %v6731_v39 = vunpack.c.h.bf16 %v6730_v6 }
 0x189   : > { %v1963_v30 = vmul.f32 %v6727_v26, %v939_v7  ;;  %v934_v61 = vmul.f32 %v3617_v54, %v5119_v24  ;;  %v6733_v51 = vunpack.c.h.bf16 %v6732_v29  ;;  %v6735_v5 = vunpack.c.h.bf16 %v6734_v4  ;;  %2866 = vmatpush1.bf16.xpose.msra.mxu1 %v2865_v56 }
 0x18a   : > { %v2993_v37 = vpack.c.bf16 %v2206_v43, %v5168_v58  ;;  %v2211_v42 = vadd.f32 %v1955_v23, %v6729_v52  ;;  %v1959_v31 = vmul.f32 %v6731_v39, %v935_v40  ;;  %v6736_v7 = vunpack.c.l.bf16 %v6724_v36  ;;  %v5205_v43 = vld [vmem:[%s3514_s27 + $0x98] sm:$0xff]  ;;  %v6741_v39 = vld [vmem:[#allocation117_spill] sm:$0xff] }
 0x18b   : > { %v2219_v47 = vadd.f32 %v1963_v30, %v6733_v51  ;;  %v1967_v62 = vmul.f32 %v6735_v5, %v943_v46  ;;  %v6737_v58 = vunpack.c.l.bf16 %v6726_v48  ;;  %v6739_v23 = vunpack.c.h.bf16 %v6738_v34  ;;  %v6742_v51 = vld [vmem:[#allocation42_spill] sm:$0xff]  ;;  %v6743_v36 = vld [vmem:[#allocation105_spill] sm:$0xff] }
 0x18c   : > { %v1954_v50 = vmul.f32 %v6736_v7, %v930_v10  ;;  %v942_v26 = vmul.f32 %v3617_v54, %v5139_v13  ;;  %v6740_v52 = vunpack.c.l.bf16 %v6730_v6  ;;  %v693_v46 = vmul.f32 %v6742_v51, %v6741_v39  ;;  %2994 = vmatpush1.bf16.xpose.msra.mxu0 %v2993_v37 }
 0x18d   : > { %v1962_v25 = vmul.f32 %v6737_v58, %v938_v60  ;;  %v2215_v40 = vadd.f32 %v1959_v31, %v6739_v23  ;;  %v2867_v5 = vpack.c.bf16 %v2219_v47, %v2211_v42  ;;  %v6744_v10 = vunpack.c.h.bf16 %v6743_v36  ;;  %v6749_v42 = vld [vmem:[#allocation118_spill] sm:$0xff] }
 0x18e   : > { %v1958_v30 = vmul.f32 %v6740_v52, %v934_v61  ;;  %v6745_v48 = vunpack.c.l.bf16 %v6728_v20  ;;  %v6746_v58 = vunpack.c.l.bf16 %v6732_v29  ;;  %v6747_v54 = vunpack.c.l.bf16 %v6734_v4 }
 0x18f   : > { %v2223_v7 = vadd.f32 %v1967_v62, %v6744_v10  ;;  %v6748_v61 = vunpack.c.l.bf16 %v6738_v34  ;;  %v701_v47 = vmul.f32 %v6742_v51, %v6749_v42  ;;  %v6751_v2 = vunpack.c.h.bf16 %v6750_v21  ;;  %v6756_v10 = vld [vmem:[#allocation107_spill] sm:$0xff]  ;;  %2868 = vmatprep.subr.bf16.mxu1 %v2867_v5 }
 0x190   : > { %v5219_v60 = vadd.f32 %v1954_v50, %v6745_v48  ;;  %v5223_v31 = vadd.f32 %v1962_v25, %v6746_v58  ;;  %v1966_v6 = vmul.f32 %v6747_v54, %v942_v26  ;;  %v6752_v25 = vunpack.c.l.bf16 %v6743_v36  ;;  %v6753_v26 = vld [vmem:[#allocation108_spill] sm:$0xff]  ;;  %v6759_v54 = vld [vmem:[#allocation115_spill] sm:$0xff] }
 0x191   : > { %v5229_v23 = vadd.f32 %v1958_v30, %v6748_v61  ;;  %v2995_v62 = vpack.c.bf16 %v2223_v7, %v2215_v40  ;;  %v1717_v50 = vmul.f32 %v6751_v2, %v693_v46  ;;  %v6754_v52 = vunpack.c.h.bf16 %v6753_v26  ;;  %v6758_v46 = vld [vmem:[#allocation114_spill] sm:$0xff] }
 0x192   : > { %v5241_v34 = vadd.f32 %v1966_v6, %v6752_v25  ;;  %v697_v49 = vmul.f32 %v6755_v15, %v6741_v39  ;;  %v705_v40 = vmul.f32 %v6755_v15, %v6749_v42  ;;  %v6757_v7 = vunpack.c.h.bf16 %v6756_v10 }
 0x193   : > { %v1725_v30 = vmul.f32 %v6754_v52, %v701_v47  ;;  %v692_v58 = vmul.f32 %v6758_v46, %v6741_v39  ;;  %v700_v36 = vmul.f32 %v6758_v46, %v6749_v42  ;;  %v696_v6 = vmul.f32 %v6759_v54, %v6741_v39  ;;  %v6760_v47 = vld [vmem:[#allocation110_spill] sm:$0xff]  ;;  %v6762_v52 = vld [vmem:[#allocation109_spill] sm:$0xff]  ;;  %2996 = vmatprep.subr.bf16.mxu0 %v2995_v62 }
 0x194   : > { %v5251_v48 = vadd.f32 %v1717_v50, %v6757_v7  ;;  %v2997_v61 = vpack.c.bf16 %v5241_v34, %v5229_v23  ;;  %v6761_v2 = vunpack.c.h.bf16 %v6760_v47  ;;  %v6763_v20 = vunpack.c.h.bf16 %v6762_v52  ;;  %v6764_v50 = vld [vmem:[#allocation113_spill] sm:$0xff] }
 0x195   : > { %v6765_v7 = vunpack.c.h.bf16 %v6764_v50  ;;  %v6766_v16 = vunpack.c.l.bf16 %v6750_v21  ;;  %v6767_v13 = vunpack.c.l.bf16 %v6753_v26  ;;  %v704_v39 = vmul.f32 %v6759_v54, %v6749_v42 }
 0x196   : > { %v1981_v25 = vadd.f32 %v1725_v30, %v6761_v2  ;;  %v1721_v11 = vmul.f32 %v6763_v20, %v697_v49  ;;  %v6768_v23 = vunpack.c.l.bf16 %v6762_v52  ;;  %v6769_v20 = vld [vmem:[#allocation112_spill] sm:$0xff]  ;;  %v6774_v42 = vunpack.c.l.bf16 %v6760_v47  ;;  %2998 = vmatpush1.bf16.xpose.msra.mxu0 %v2997_v61 }
 0x197   : > { %v1729_v4 = vmul.f32 %v6765_v7, %v705_v40  ;;  %v1716_v29 = vmul.f32 %v6766_v16, %v692_v58  ;;  %v1724_v24 = vmul.f32 %v6767_v13, %v700_v36  ;;  %v6770_v49 = vunpack.c.h.bf16 %v6769_v20  ;;  %v6772_v16 = vld [vmem:[#allocation116_spill] sm:$0xff] }
 0x198   : > { %v1720_v34 = vmul.f32 %v6768_v23, %v696_v6  ;;  %v2871_v30 = vpack.c.bf16 %v1981_v25, %v5251_v48  ;;  %v6771_v40 = vunpack.c.h.bf16 %v4265_v19  ;;  %v709_v26 = vmul.f32 %v6742_v51, %v6772_v16 }
 0x199   : > { %v1977_v2 = vadd.f32 %v1721_v11, %v6770_v49  ;;  %v6773_v13 = vunpack.c.l.bf16 %v6756_v10  ;;  %v5291_v36 = vadd.f32 %v1724_v24, %v6774_v42  ;;  %v6775_v6 = vunpack.c.l.bf16 %v6764_v50 }
 0x19a   : > { %v1985_v21 = vadd.f32 %v1729_v4, %v6771_v40  ;;  %v6776_v25 = vunpack.c.l.bf16 %v6769_v20  ;;  %v717_v52 = vmul.f32 %v6742_v51, %v4333_v12  ;;  %v1120_v47 = vunpack.c.l.bf16 %v5276_v28 }
 0x19b   : > { %v5287_v58 = vadd.f32 %v1716_v29, %v6773_v13  ;;  %v1728_v48 = vmul.f32 %v6775_v6, %v704_v39  ;;  %v6777_v29 = vunpack.c.h.bf16 %v4565_v9  ;;  %v6778_v50 = vunpack.c.l.bf16 %v4265_v19 }
 0x19c   : > { %v5297_v11 = vadd.f32 %v1720_v34, %v6776_v25  ;;  %v2999_v4 = vpack.c.bf16 %v1985_v21, %v1977_v2  ;;  %v713_v56 = vmul.f32 %v6755_v15, %v6772_v16  ;;  %v1121_v37 = vunpack.c.h.bf16 %v5276_v28 }
 0x19d   : > { %v1733_v10 = vmul.f32 %v6777_v29, %v709_v26  ;;  %v2873_v24 = vpack.c.bf16 %v5291_v36, %v5287_v58  ;;  %v5308_v7 = vadd.f32 %v1728_v48, %v6778_v50  ;;  %v6779_v39 = vunpack.c.h.bf16 %v4626_v14 }
 0x19e   : > { %v6780_v34 = vunpack.c.h.bf16 %v4388_v8  ;;  %v721_v62 = vmul.f32 %v6755_v15, %v4333_v12  ;;  %v708_v19 = vmul.f32 %v6758_v46, %v6772_v16  ;;  %v6781_v49 = vunpack.c.h.bf16 %v4807_v0  ;;  %3000 = vmatprep.subr.bf16.mxu0 %v2999_v4 }
 0x19f   : > { %v1741_v23 = vmul.f32 %v6779_v39, %v717_v52  ;;  %v3001_v20 = vpack.c.bf16 %v5308_v7, %v5297_v11  ;;  %v716_v40 = vmul.f32 %v6758_v46, %v4333_v12  ;;  %v712_v21 = vmul.f32 %v6759_v54, %v6772_v16  ;;  %v977_v7 = vld [vmem:[%s3514_s27 + $0xf8] sm:$0xff] }
 0x1a0   : > { %v5317_v5 = vadd.f32 %v1733_v10, %v6780_v34  ;;  %v1737_v2 = vmul.f32 %v6781_v49, %v713_v56  ;;  %v6782_v26 = vunpack.c.h.bf16 %v4455_v41  ;;  %v6783_v42 = vunpack.c.h.bf16 %v4870_v17  ;;  %v1349_v34 = vld [vmem:[%s3521_s13 + $0x98] sm:$0xff] }
 0x1a1   : > { %v6784_v48 = vunpack.c.l.bf16 %v4565_v9  ;;  %v720_v52 = vmul.f32 %v6759_v54, %v4333_v12  ;;  %v6785_v29 = vunpack.c.h.bf16 %v4685_v53  ;;  %v6786_v16 = vunpack.c.l.bf16 %v4626_v14 }
 0x1a2   : > { %v5333_v13 = vadd.f32 %v1741_v23, %v6782_v26  ;;  %v1745_v6 = vmul.f32 %v6783_v42, %v721_v62  ;;  %v6787_v56 = vunpack.c.l.bf16 %v4807_v0  ;;  %v725_v23 = vmul.f32 %v6742_v51, %v4381_v35 }
 0x1a3   : > { %v1732_v25 = vmul.f32 %v6784_v48, %v708_v19  ;;  %v5343_v10 = vadd.f32 %v1737_v2, %v6785_v29  ;;  %v1740_v50 = vmul.f32 %v6786_v16, %v716_v40  ;;  %v6788_v62 = vunpack.c.h.bf16 %v4746_v38 }
 0x1a4   : > { %v1736_v39 = vmul.f32 %v6787_v56, %v712_v21  ;;  %v2875_v9 = vpack.c.bf16 %v5333_v13, %v5317_v5  ;;  %v6789_v19 = vunpack.c.l.bf16 %v4388_v8  ;;  %v6790_v14 = vunpack.c.l.bf16 %v4870_v17  ;;  %v1353_v8 = vld [vmem:[%s3521_s13 + $0xb8] sm:$0xff] }
 0x1a5   : > { %v2001_v12 = vadd.f32 %v1745_v6, %v6788_v62  ;;  %v6791_v0 = vunpack.c.l.bf16 %v4455_v41  ;;  %v6792_v21 = vunpack.c.l.bf16 %v4685_v53  ;;  %v733_v5 = vmul.f32 %v6742_v51, %v4390_v44  ;;  %v2230_v62 = vld [vmem:[%s6006_s0] sm:$0xff] }
 0x1a6   : > { %v5358_v49 = vadd.f32 %v1732_v25, %v6789_v19  ;;  %v1744_v2 = vmul.f32 %v6790_v14, %v720_v52  ;;  %v6793_v13 = vunpack.c.h.bf16 %v5069_v55  ;;  %v6794_v6 = vpack.c.bf16 %v5223_v31, %v5219_v60 }
 0x1a7   : > { %v5364_v40 = vadd.f32 %v1740_v50, %v6791_v0  ;;  %v5368_v26 = vadd.f32 %v1736_v39, %v6792_v21  ;;  %v3003_v41 = vpack.c.bf16 %v2001_v12, %v5343_v10  ;;  %v6795_v17 = vunpack.c.l.bf16 %v4746_v38  ;;  %v2234_v12 = vld [vmem:[%s6006_s0 + $0x20] sm:$0xff]  ;;  %v5420_v21 = vld [vmem:[%s3514_s27 + $0xc8] sm:$0xff] }
 0x1a8   : > { %v1749_v42 = vmul.f32 %v6793_v13, %v725_v23  ;;  %2870 = vmatpush1.bf16.xpose.msra.mxu1 %v6794_v6  ;;  %v729_v53 = vmul.f32 %v6755_v15, %v4381_v35  ;;  %v1497_v25 = vunpack.c.h.bf16 %v1349_v34  ;;  %v6796_v29 = vunpack.c.h.bf16 %v5137_v33  ;;  %2465 = vmatmul.mubr.f32.vlgmr.msra.gmra.mrb[0].mxu0 %v2234_v12 }
 0x1a9   : > { %v5381_v48 = vadd.f32 %v1744_v2, %v6795_v17  ;;  %2872 = vmatprep.subr.bf16.mxu1 %v2871_v30  ;;  %v2877_v52 = vpack.c.bf16 %v5364_v40, %v5358_v49  ;;  %v6797_v31 = vunpack.c.h.bf16 %v4933_v45  ;;  %v1496_v38 = vunpack.c.l.bf16 %v1349_v34  ;;  %3002 = vmatpush1.bf16.xpose.msra.mxu0 %v3001_v20  ;;  %v1357_v20 = vld [vmem:[%s3521_s13 + $0xd8] sm:$0xff] }
 0x1aa   : > { %v1757_v60 = vmul.f32 %v6796_v29, %v733_v5  ;;  %v737_v10 = vmul.f32 %v6755_v15, %v4390_v44  ;;  %v1504_v16 = vunpack.c.l.bf16 %v1353_v8  ;;  %v1505_v50 = vunpack.c.h.bf16 %v1353_v8  ;;  %3004 = vmatprep.subr.bf16.mxu0 %v3003_v41 }
 0x1ab   : > { %v5391_v61 = vadd.f32 %v1749_v42, %v6797_v31  ;;  %v1753_v56 = vmul.f32 %v1497_v25, %v729_v53  ;;  %v6798_v30 = vunpack.c.h.bf16 %v5000_v1  ;;  %v724_v39 = vmul.f32 %v6758_v46, %v4381_v35  ;;  %v5429_v53 = vld [vmem:[%s3514_s27 + $0xe8] sm:$0xff] }
 0x1ac   : > { %v732_v23 = vmul.f32 %v6758_v46, %v4390_v44  ;;  %v728_v34 = vmul.f32 %v6759_v54, %v4381_v35  ;;  %v3005_v19 = vpack.c.bf16 %v5381_v48, %v5368_v26  ;;  %v1761_v14 = vmul.f32 %v1505_v50, %v737_v10  ;;  %v1363_v26 = vld [vmem:[%s3521_s13 + $0x108] sm:$0xff] }
 0x1ad   : > { %v5397_v4 = vadd.f32 %v1757_v60, %v6798_v30  ;;  %v6799_v2 = vunpack.c.h.bf16 %v5205_v43  ;;  %v736_v35 = vmul.f32 %v6759_v54, %v4390_v44  ;;  %v6800_v5 = vunpack.c.l.bf16 %v5069_v55  ;;  %v1355_v60 = vld [vmem:[%s3521_s13 + $0xc8] sm:$0xff]  ;;  %v973_v30 = vld [vmem:[%s3514_s27 + $0xd8] sm:$0xff] }
 0x1ae   : > { %v6801_v42 = vunpack.c.l.bf16 %v5137_v33  ;;  %v1752_v6 = vmul.f32 %v1496_v38, %v728_v34  ;;  %v741_v17 = vmul.f32 %v6742_v51, %v4420_v57  ;;  %v2017_v29 = vadd.f32 %v1761_v14, %v1121_v37 }
 0x1af   : > { %v5415_v0 = vadd.f32 %v1753_v56, %v6799_v2  ;;  %v1748_v13 = vmul.f32 %v6800_v5, %v724_v39  ;;  %v2879_v25 = vpack.c.bf16 %v5397_v4, %v5391_v61  ;;  %v1760_v44 = vmul.f32 %v1504_v16, %v736_v35  ;;  %2311 = vmatmul.mubr.f32.vlgmr.msra.gmra.mrb[0].mxu1 %v2230_v62  ;;  %v1359_v16 = vld [vmem:[%s3521_s13 + $0xe8] sm:$0xff] }
 0x1b0   : > { %v1756_v8 = vmul.f32 %v6801_v42, %v732_v23  ;;  %v749_v55 = vmul.f32 %v6742_v51, %v4430_v63  ;;  %v6802_v33 = vunpack.c.l.bf16 %v4933_v45  ;;  %v6803_v38 = vunpack.c.l.bf16 %v5000_v1  ;;  %2874 = vmatpush1.bf16.xpose.msra.mxu1 %v2873_v24  ;;  %v1361_v23 = vld [vmem:[%s3521_s13 + $0xf8] sm:$0xff] }
 0x1b1   : > { %v6804_v50 = vunpack.c.l.bf16 %v5205_v43  ;;  %v1124_v37 = vunpack.c.l.bf16 %v5420_v21  ;;  %v3007_v45 = vpack.c.bf16 %v2017_v29, %v5415_v0  ;;  %v5459_v1 = vadd.f32 %v1760_v44, %v1120_v47  ;;  %2876 = vmatprep.subr.bf16.mxu1 %v2875_v9  ;;  %3006 = vmatpush1.bf16.xpose.msra.mxu0 %v3005_v19 }
 0x1b2   : > { %v5438_v31 = vadd.f32 %v1748_v13, %v6802_v33  ;;  %v5442_v10 = vadd.f32 %v1756_v8, %v6803_v38  ;;  %v1125_v43 = vunpack.c.h.bf16 %v5420_v21  ;;  %v1132_v56 = vunpack.c.l.bf16 %v5429_v53 }
 0x1b3   : > { %v5446_v61 = vadd.f32 %v1752_v6, %v6804_v50  ;;  %v1133_v36 = vunpack.c.h.bf16 %v5429_v53  ;;  %v1508_v11 = vunpack.c.l.bf16 %v1355_v60  ;;  %v1509_v24 = vunpack.c.h.bf16 %v1355_v60  ;;  %v5485_v53 = vld [vmem:[%s3514_s27 + $0x108] sm:$0xff]  ;;  %3008 = vmatprep.subr.bf16.mxu0 %v3007_v45 }
 0x1b4   : > { %v2881_v58 = vpack.c.bf16 %v5442_v10, %v5438_v31  ;;  %v1516_v47 = vunpack.c.l.bf16 %v1359_v16  ;;  %v1517_v4 = vunpack.c.h.bf16 %v1359_v16  ;;  %v745_v39 = vmul.f32 %v6755_v15, %v4420_v57  ;;  %v5499_v16 = vld [vmem:[%s3514_s27 + $0x128] sm:$0xff] }
 0x1b5   : > { %v3009_v28 = vpack.c.bf16 %v5459_v1, %v5446_v61  ;;  %v1765_v9 = vmul.f32 %v1509_v24, %v741_v17  ;;  %v753_v41 = vmul.f32 %v6755_v15, %v4430_v63  ;;  %v1128_v34 = vunpack.c.l.bf16 %v973_v30  ;;  %v5516_v24 = vld [vmem:[%s3514_s27 + $0x118] sm:$0xff] }
 0x1b6   : > { %v1129_v62 = vunpack.c.h.bf16 %v973_v30  ;;  %v1773_v12 = vmul.f32 %v1517_v4, %v749_v55  ;;  %v1137_v14 = vunpack.c.h.bf16 %v977_v7  ;;  %v1512_v2 = vunpack.c.l.bf16 %v1357_v20  ;;  %v985_v4 = vld [vmem:[%s3514_s27 + $0x138] sm:$0xff] }
 0x1b7   : > { %v1513_v0 = vunpack.c.h.bf16 %v1357_v20  ;;  %v5476_v35 = vadd.f32 %v1765_v9, %v1125_v43  ;;  %v1520_v21 = vunpack.c.l.bf16 %v1361_v23  ;;  %v1521_v5 = vunpack.c.h.bf16 %v1361_v23 }
 0x1b8   : > { %v740_v13 = vmul.f32 %v6758_v46, %v4420_v57  ;;  %v2029_v42 = vadd.f32 %v1773_v12, %v1133_v36  ;;  %v748_v6 = vmul.f32 %v6758_v46, %v4430_v63  ;;  %v744_v17 = vmul.f32 %v6759_v54, %v4420_v57  ;;  %2878 = vmatpush1.bf16.xpose.msra.mxu1 %v2877_v52 }
 0x1b9   : > { %v1769_v8 = vmul.f32 %v1513_v0, %v745_v39  ;;  %v1777_v29 = vmul.f32 %v1521_v5, %v753_v41  ;;  %v752_v55 = vmul.f32 %v6759_v54, %v4430_v63  ;;  %v757_v60 = vmul.f32 %v6742_v51, %v4473_v27  ;;  %2880 = vmatprep.subr.bf16.mxu1 %v2879_v25  ;;  %v1367_v25 = vld [vmem:[%s3521_s13 + $0x128] sm:$0xff]  ;;  %v1365_v39 = vld [vmem:[%s3521_s13 + $0x118] sm:$0xff] }
 0x1ba   : > { %v1764_v44 = vmul.f32 %v1508_v11, %v740_v13  ;;  %v2883_v57 = vpack.c.bf16 %v2029_v42, %v5476_v35  ;;  %v1136_v33 = vunpack.c.l.bf16 %v977_v7  ;;  %v1772_v50 = vmul.f32 %v1516_v47, %v748_v6  ;;  %3010 = vmatpush1.bf16.xpose.msra.mxu0 %v3009_v28 }
 0x1bb   : > { %v2025_v38 = vadd.f32 %v1769_v8, %v1129_v62  ;;  %v2033_v63 = vadd.f32 %v1777_v29, %v1137_v14  ;;  %v1768_v49 = vmul.f32 %v1512_v2, %v744_v17  ;;  %v1140_v40 = vunpack.c.l.bf16 %v5485_v53  ;;  %v1369_v62 = vld [vmem:[%s3521_s13 + $0x138] sm:$0xff] }
 0x1bc   : > { %v5501_v43 = vadd.f32 %v1764_v44, %v1124_v37  ;;  %v5505_v48 = vadd.f32 %v1772_v50, %v1132_v56  ;;  %v1776_v52 = vmul.f32 %v1520_v21, %v752_v55  ;;  %v765_v19 = vmul.f32 %v6742_v51, %v4489_v59  ;;  %v5551_v55 = vld [vmem:[%s3514_s27 + $0x168] sm:$0xff] }
 0x1bd   : > { %v1141_v30 = vunpack.c.h.bf16 %v5485_v53  ;;  %v3011_v45 = vpack.c.bf16 %v2033_v63, %v2025_v38  ;;  %v5511_v36 = vadd.f32 %v1768_v49, %v1128_v34  ;;  %v1148_v37 = vunpack.c.l.bf16 %v5499_v16  ;;  %v5542_v53 = vld [vmem:[%s3514_s27 + $0x148] sm:$0xff] }
 0x1be   : > { %v1149_v11 = vunpack.c.h.bf16 %v5499_v16  ;;  %v2885_v56 = vpack.c.bf16 %v5505_v48, %v5501_v43  ;;  %v5520_v7 = vadd.f32 %v1776_v52, %v1136_v33  ;;  %v1524_v20 = vunpack.c.l.bf16 %v1363_v26  ;;  %v2239_v16 = vld [vmem:[%s6006_s0 + $0x48] sm:$0xff] }
 0x1bf   : > { %v1525_v47 = vunpack.c.h.bf16 %v1363_v26  ;;  %v1532_v23 = vunpack.c.l.bf16 %v1367_v25  ;;  %v1533_v9 = vunpack.c.h.bf16 %v1367_v25  ;;  %v761_v41 = vmul.f32 %v6755_v15, %v4473_v27  ;;  %3012 = vmatprep.subr.bf16.mxu0 %v3011_v45  ;;  %2316 = vmatprep.mubr.f32.mxu1 %v2239_v16  ;;  %v2237_v25 = vld [vmem:[%s6006_s0 + $0x38] sm:$0xff] }
 0x1c0   : > { %v769_v34 = vmul.f32 %v6755_v15, %v4489_v59  ;;  %v3013_v12 = vpack.c.bf16 %v5520_v7, %v5511_v36  ;;  %v1144_v2 = vunpack.c.l.bf16 %v5516_v24  ;;  %v1145_v0 = vunpack.c.h.bf16 %v5516_v24  ;;  %2882 = vmatpush1.bf16.xpose.msra.mxu1 %v2881_v58 }
 0x1c1   : > { %v1781_v14 = vmul.f32 %v1525_v47, %v757_v60  ;;  %v1789_v35 = vmul.f32 %v1533_v9, %v765_v19  ;;  %v1153_v21 = vunpack.c.h.bf16 %v985_v4  ;;  %v1528_v5 = vunpack.c.l.bf16 %v1365_v39  ;;  %2884 = vmatprep.subr.bf16.mxu1 %v2883_v57  ;;  %v5554_v60 = vld [vmem:[%s3521_s13 + $0x148] sm:$0xff]  ;;  %v2242_v19 = vld [vmem:[%s6006_s0 + $0x60] sm:$0xff]  ;;  %v989_v9 = vld [vmem:[%s3514_s27 + $0x158] sm:$0xff] }
 0x1c2   : > { %v1529_v13 = vunpack.c.h.bf16 %v1365_v39  ;;  %v1536_v8 = vunpack.c.l.bf16 %v1369_v62  ;;  %v1537_v6 = vunpack.c.h.bf16 %v1369_v62  ;;  %v756_v17 = vmul.f32 %v6758_v46, %v4473_v27  ;;  %3014 = vmatpush1.bf16.xpose.msra.mxu0 %v3013_v12 }
 0x1c3   : > { %v2037_v42 = vadd.f32 %v1781_v14, %v1141_v30  ;;  %v2045_v29 = vadd.f32 %v1789_v35, %v1149_v11  ;;  %v1152_v44 = vunpack.c.l.bf16 %v985_v4  ;;  %v764_v10 = vmul.f32 %v6758_v46, %v4489_v59  ;;  %v2233_v30 = vld [vmem:[%s6006_s0 + $0x18] sm:$0xff] }
 0x1c4   : > { %v1785_v31 = vmul.f32 %v1529_v13, %v761_v41  ;;  %v1793_v61 = vmul.f32 %v1537_v6, %v769_v34  ;;  %v1780_v1 = vmul.f32 %v1524_v20, %v756_v17  ;;  %v760_v58 = vmul.f32 %v6759_v54, %v4473_v27  ;;  %v2243_v27 = vld [vmem:[%s6006_s0 + $0x68] sm:$0xff]  ;;  %v993_v14 = vld [vmem:[%s3514_s27 + $0x178] sm:$0xff] }
 0x1c5   : > { %v768_v28 = vmul.f32 %v6759_v54, %v4489_v59  ;;  %v2887_v57 = vpack.c.bf16 %v2045_v29, %v2037_v42  ;;  %v1788_v38 = vmul.f32 %v1532_v23, %v764_v10  ;;  %v1156_v50 = vunpack.c.l.bf16 %v5542_v53  ;;  %v2238_v59 = vld [vmem:[%s6006_s0 + $0x40] sm:$0xff]  ;;  %v1375_v20 = vld [vmem:[%s3521_s13 + $0x168] sm:$0xff]  ;;  %2470 = vmatprep.mubr.f32.mxu0 %v2243_v27  ;;  %v1377_v13 = vld [vmem:[%s3521_s13 + $0x178] sm:$0xff] }
 0x1c6   : > { %v2041_v33 = vadd.f32 %v1785_v31, %v1145_v0  ;;  %v2049_v63 = vadd.f32 %v1793_v61, %v1153_v21  ;;  %v5566_v49 = vadd.f32 %v1780_v1, %v1140_v40  ;;  %v1784_v26 = vmul.f32 %v1528_v5, %v760_v58  ;;  %2317 = vmatmul.mubr.f32.gmra.mrb[2].mxu1 %v2238_v59  ;;  %v1373_v0 = vld [vmem:[%s3521_s13 + $0x158] sm:$0xff]  ;;  %v5616_v59 = vld [vmem:[%s3514_s27 + $0x1a8] sm:$0xff] }
 0x1c7   : > { %v1792_v52 = vmul.f32 %v1536_v8, %v768_v28  ;;  %v2044_v45 = vadd.f32 %v1788_v38, %v1148_v37  ;;  %v773_v40 = vmul.f32 %v6742_v51, %v4524_v18  ;;  %v781_v11 = vmul.f32 %v6742_v51, %v4534_v3  ;;  %2471 = vmatmul.mubr.f32.gmra.mrb[2].mxu0 %v2242_v19 }
 0x1c8   : > { %v1157_v24 = vunpack.c.h.bf16 %v5542_v53  ;;  %v3015_v47 = vpack.c.bf16 %v2049_v63, %v2041_v33  ;;  %v2040_v4 = vadd.f32 %v1784_v26, %v1144_v2  ;;  %v1164_v23 = vunpack.c.l.bf16 %v5551_v55  ;;  %2387 = vmatprep.mubr.f32.mxu1 %v2233_v30  ;;  %2541 = vmatprep.mubr.f32.mxu0 %v2237_v25 }
 0x1c9   : > { %v2048_v39 = vadd.f32 %v1792_v52, %v1152_v44  ;;  %v2889_v37 = vpack.c.bf16 %v2044_v45, %v5566_v49  ;;  %v1165_v41 = vunpack.c.h.bf16 %v5551_v55  ;;  %v1540_v34 = vunpack.c.l.bf16 %v5554_v60  ;;  %2886 = vmatpush1.bf16.xpose.msra.mxu1 %v2885_v56  ;;  %v1379_v52 = vld [vmem:[%s3521_s13 + $0x188] sm:$0xff] }
 0x1ca   : > { %v1541_v62 = vunpack.c.h.bf16 %v5554_v60  ;;  %v1548_v35 = vunpack.c.l.bf16 %v1375_v20  ;;  %v1549_v21 = vunpack.c.h.bf16 %v1375_v20  ;;  %v777_v5 = vmul.f32 %v6755_v15, %v4524_v18  ;;  %2888 = vmatprep.subr.bf16.mxu1 %v2887_v57  ;;  %3016 = vmatprep.subr.bf16.mxu0 %v3015_v47  ;;  %v5611_v57 = vld [vmem:[%s3514_s27 + $0x188] sm:$0xff] }
 0x1cb   : > { %v3017_v2 = vpack.c.bf16 %v2048_v39, %v2040_v4  ;;  %v785_v8 = vmul.f32 %v6755_v15, %v4534_v3  ;;  %v1160_v6 = vunpack.c.l.bf16 %v989_v9  ;;  %v1161_v43 = vunpack.c.h.bf16 %v989_v9  ;;  %v1383_v45 = vld [vmem:[%s3521_s13 + $0x1a8] sm:$0xff]  ;;  %v1381_v9 = vld [vmem:[%s3521_s13 + $0x198] sm:$0xff] }
 0x1cc   : > { %v1797_v42 = vmul.f32 %v1541_v62, %v773_v40  ;;  %v1805_v48 = vmul.f32 %v1549_v21, %v781_v11  ;;  %v1169_v56 = vunpack.c.h.bf16 %v993_v14  ;;  %v1544_v36 = vunpack.c.l.bf16 %v1373_v0 }
 0x1cd   : > { %v1545_v7 = vunpack.c.h.bf16 %v1373_v0  ;;  %v1552_v17 = vunpack.c.l.bf16 %v1377_v13  ;;  %v1553_v29 = vunpack.c.h.bf16 %v1377_v13  ;;  %v772_v44 = vmul.f32 %v6758_v46, %v4524_v18  ;;  %3018 = vmatpush1.bf16.xpose.msra.mxu0 %v3017_v2 }
 0x1ce   : > { %v2053_v12 = vadd.f32 %v1797_v42, %v1157_v24  ;;  %v2061_v31 = vadd.f32 %v1805_v48, %v1165_v41  ;;  %v780_v61 = vmul.f32 %v6758_v46, %v4534_v3  ;;  %v776_v1 = vmul.f32 %v6759_v54, %v4524_v18  ;;  %v997_v24 = vld [vmem:[%s3514_s27 + $0x198] sm:$0xff] }
 0x1cf   : > { %v1801_v10 = vmul.f32 %v1545_v7, %v777_v5  ;;  %v1168_v58 = vunpack.c.l.bf16 %v993_v14  ;;  %v1809_v28 = vmul.f32 %v1553_v29, %v785_v8  ;;  %v1796_v55 = vmul.f32 %v1540_v34, %v772_v44  ;;  %v1385_v14 = vld [vmem:[%s3521_s13 + $0x1b8] sm:$0xff]  ;;  %v5643_v29 = vld [vmem:[%s3514_s27 + $0x1c8] sm:$0xff] }
 0x1d0   : > { %v784_v60 = vmul.f32 %v6759_v54, %v4534_v3  ;;  %v1804_v38 = vmul.f32 %v1548_v35, %v780_v61  ;;  %v1800_v16 = vmul.f32 %v1544_v36, %v776_v1  ;;  %v789_v27 = vmul.f32 %v6742_v51, %v4581_v22 }
 0x1d1   : > { %v2057_v33 = vadd.f32 %v1801_v10, %v1161_v43  ;;  %v2891_v63 = vpack.c.bf16 %v2061_v31, %v2053_v12  ;;  %v2065_v49 = vadd.f32 %v1809_v28, %v1169_v56  ;;  %v2052_v18 = vadd.f32 %v1796_v55, %v1156_v50  ;;  %2890 = vmatpush1.bf16.xpose.msra.mxu1 %v2889_v37 }
 0x1d2   : > { %v1808_v26 = vmul.f32 %v1552_v17, %v784_v60  ;;  %v2060_v3 = vadd.f32 %v1804_v38, %v1164_v23  ;;  %v2056_v19 = vadd.f32 %v1800_v16, %v1160_v6  ;;  %v797_v30 = vmul.f32 %v6742_v51, %v4593_v32  ;;  %v1001_v23 = vld [vmem:[%s3514_s27 + $0x1b8] sm:$0xff]  ;;  %v5648_v60 = vld [vmem:[%s3514_s27 + $0x1e8] sm:$0xff] }
 0x1d3   : > { %v1172_v25 = vunpack.c.l.bf16 %v5611_v57  ;;  %2892 = vmatprep.subr.bf16.mxu1 %v2891_v63  ;;  %v3019_v40 = vpack.c.bf16 %v2065_v49, %v2057_v33  ;;  %v1173_v50 = vunpack.c.h.bf16 %v5611_v57  ;;  %v1180_v11 = vunpack.c.l.bf16 %v5616_v59  ;;  %v1387_v16 = vld [vmem:[%s3521_s13 + $0x1c8] sm:$0xff]  ;;  %v6806_v49 = vld [vmem:[#allocation15_spill] sm:$0xff] }
 0x1d4   : > { %v2064_v53 = vadd.f32 %v1808_v26, %v1168_v58  ;;  %v2893_v20 = vpack.c.bf16 %v2060_v3, %v2052_v18  ;;  %v1181_v47 = vunpack.c.h.bf16 %v5616_v59  ;;  %v1556_v4 = vunpack.c.l.bf16 %v1379_v52  ;;  %v1391_v26 = vld [vmem:[%s3521_s13 + $0x1e8] sm:$0xff] }
 0x1d5   : > { %v1557_v39 = vunpack.c.h.bf16 %v1379_v52  ;;  %3020 = vmatprep.subr.bf16.mxu0 %v3019_v40  ;;  %v1564_v41 = vunpack.c.l.bf16 %v1383_v45  ;;  %v1565_v34 = vunpack.c.h.bf16 %v1383_v45  ;;  %v793_v62 = vmul.f32 %v6755_v15, %v4581_v22 }
 0x1d6   : > { %v3021_v37 = vpack.c.bf16 %v2064_v53, %v2056_v19  ;;  %v801_v2 = vmul.f32 %v6755_v15, %v4593_v32  ;;  %v1176_v35 = vunpack.c.l.bf16 %v997_v24  ;;  %v1177_v21 = vunpack.c.h.bf16 %v997_v24  ;;  %v1389_v24 = vld [vmem:[%s3521_s13 + $0x1d8] sm:$0xff] }
 0x1d7   : > { %v1813_v0 = vmul.f32 %v1557_v39, %v789_v27  ;;  %v1821_v5 = vmul.f32 %v1565_v34, %v797_v30  ;;  %v1185_v13 = vunpack.c.h.bf16 %v1001_v23  ;;  %v1560_v42 = vunpack.c.l.bf16 %v1381_v9 }
 0x1d8   : > { %v1561_v8 = vunpack.c.h.bf16 %v1381_v9  ;;  %v1568_v43 = vunpack.c.l.bf16 %v1385_v14  ;;  %v1569_v48 = vunpack.c.h.bf16 %v1385_v14  ;;  %v788_v56 = vmul.f32 %v6758_v46, %v4581_v22  ;;  %3022 = vmatpush1.bf16.xpose.msra.mxu0 %v3021_v37 }
 0x1d9   : > { %v2069_v6 = vadd.f32 %v1813_v0, %v1173_v50  ;;  %v2077_v36 = vadd.f32 %v1821_v5, %v1181_v47  ;;  %v796_v12 = vmul.f32 %v6758_v46, %v4593_v32  ;;  %v792_v17 = vmul.f32 %v6759_v54, %v4581_v22  ;;  %2894 = vmatpush1.bf16.xpose.msra.mxu1 %v2893_v20 }
 0x1da   : > { %v1817_v7 = vmul.f32 %v1561_v8, %v793_v62  ;;  %v1184_v44 = vunpack.c.l.bf16 %v1001_v23  ;;  %v1825_v31 = vmul.f32 %v1569_v48, %v801_v2  ;;  %v1812_v10 = vmul.f32 %v1556_v4, %v788_v56  ;;  %v1393_v23 = vld [vmem:[%s3521_s13 + $0x1f8] sm:$0xff] }
 0x1db   : > { %v800_v61 = vmul.f32 %v6759_v54, %v4593_v32  ;;  %v2895_v1 = vpack.c.bf16 %v2077_v36, %v2069_v6  ;;  %v1820_v28 = vmul.f32 %v1564_v41, %v796_v12  ;;  %v1816_v55 = vmul.f32 %v1560_v42, %v792_v17  ;;  %v6805_v32 = vld [vmem:[#allocation14_spill] sm:$0xff] }
 0x1dc   : > { %v2073_v58 = vadd.f32 %v1817_v7, %v1177_v21  ;;  %v2081_v22 = vadd.f32 %v1825_v31, %v1185_v13  ;;  %v2068_v57 = vadd.f32 %v1812_v10, %v1172_v25  ;;  %v1188_v38 = vunpack.c.l.bf16 %v5643_v29  ;;  %v1005_v25 = vld [vmem:[%s3514_s27 + $0x1d8] sm:$0xff]  ;;  %v5677_v12 = vld [vmem:[%s3514_s27 + $0x208] sm:$0xff] }
 0x1dd   : > { %v1824_v33 = vmul.f32 %v1568_v43, %v800_v61  ;;  %2896 = vmatprep.subr.bf16.mxu1 %v2895_v1  ;;  %v2076_v27 = vadd.f32 %v1820_v28, %v1180_v11  ;;  %v2072_v59 = vadd.f32 %v1816_v55, %v1176_v35  ;;  %v805_v63 = vmul.f32 %v6742_v51, %v6805_v32  ;;  %v1009_v11 = vld [vmem:[%s3514_s27 + $0x1f8] sm:$0xff]  ;;  %v5680_v10 = vld [vmem:[%s3514_s27 + $0x228] sm:$0xff]  ;;  %v6807_v28 = vld [vmem:[#allocation17_spill] sm:$0xff] }
 0x1de   : > { %v813_v18 = vmul.f32 %v6742_v51, %v6806_v49  ;;  %v3023_v52 = vpack.c.bf16 %v2081_v22, %v2073_v58  ;;  %v1189_v19 = vunpack.c.h.bf16 %v5643_v29  ;;  %v1196_v30 = vunpack.c.l.bf16 %v5648_v60 }
 0x1df   : > { %v2080_v3 = vadd.f32 %v1824_v33, %v1184_v44  ;;  %v2897_v45 = vpack.c.bf16 %v2076_v27, %v2068_v57  ;;  %v1197_v40 = vunpack.c.h.bf16 %v5648_v60  ;;  %v1572_v53 = vunpack.c.l.bf16 %v1387_v16  ;;  %v1395_v60 = vld [vmem:[%s3521_s13 + $0x208] sm:$0xff]  ;;  %v6808_v33 = vld [vmem:[#allocation16_spill] sm:$0xff] }
 0x1e0   : > { %v1573_v50 = vunpack.c.h.bf16 %v1387_v16  ;;  %3024 = vmatprep.subr.bf16.mxu0 %v3023_v52  ;;  %v1580_v47 = vunpack.c.l.bf16 %v1391_v26  ;;  %v1581_v4 = vunpack.c.h.bf16 %v1391_v26  ;;  %v809_v39 = vmul.f32 %v6755_v15, %v6805_v32 }
 0x1e1   : > { %v3025_v20 = vpack.c.bf16 %v2080_v3, %v2072_v59  ;;  %v817_v37 = vmul.f32 %v6755_v15, %v6806_v49  ;;  %v1192_v41 = vunpack.c.l.bf16 %v1005_v25  ;;  %v1193_v34 = vunpack.c.h.bf16 %v1005_v25  ;;  %2898 = vmatpush1.bf16.xpose.msra.mxu1 %v2897_v45  ;;  %v1399_v59 = vld [vmem:[%s3521_s13 + $0x228] sm:$0xff]  ;;  %v1397_v25 = vld [vmem:[%s3521_s13 + $0x218] sm:$0xff] }
 0x1e2   : > { %v1829_v9 = vmul.f32 %v1573_v50, %v805_v63  ;;  %v1837_v62 = vmul.f32 %v1581_v4, %v813_v18  ;;  %v1201_v14 = vunpack.c.h.bf16 %v1009_v11  ;;  %v1576_v0 = vunpack.c.l.bf16 %v1389_v24  ;;  %v1013_v18 = vld [vmem:[%s3514_s27 + $0x218] sm:$0xff] }
 0x1e3   : > { %3026 = vmatpush1.bf16.xpose.msra.mxu0 %v3025_v20  ;;  %v1577_v2 = vunpack.c.h.bf16 %v1389_v24  ;;  %v1584_v21 = vunpack.c.l.bf16 %v1393_v23  ;;  %v1585_v5 = vunpack.c.h.bf16 %v1393_v23  ;;  %v804_v13 = vmul.f32 %v6758_v46, %v6805_v32 }
 0x1e4   : > { %v2085_v35 = vadd.f32 %v1829_v9, %v1189_v19  ;;  %v2093_v42 = vadd.f32 %v1837_v62, %v1197_v40  ;;  %v812_v6 = vmul.f32 %v6758_v46, %v6806_v49  ;;  %v808_v43 = vmul.f32 %v6759_v54, %v6805_v32 }
 0x1e5   : > { %v1833_v8 = vmul.f32 %v1577_v2, %v809_v39  ;;  %v1200_v48 = vunpack.c.l.bf16 %v1009_v11  ;;  %v1841_v56 = vmul.f32 %v1585_v5, %v817_v37  ;;  %v1828_v36 = vmul.f32 %v1572_v53, %v804_v13  ;;  %v1401_v11 = vld [vmem:[%s3521_s13 + $0x238] sm:$0xff] }
 0x1e6   : > { %v816_v7 = vmul.f32 %v6759_v54, %v6806_v49  ;;  %v2899_v17 = vpack.c.bf16 %v2093_v42, %v2085_v35  ;;  %v1836_v44 = vmul.f32 %v1580_v47, %v812_v6  ;;  %v1832_v31 = vmul.f32 %v1576_v0, %v808_v43  ;;  %v5709_v6 = vld [vmem:[%s3514_s27 + $0x248] sm:$0xff] }
 0x1e7   : > { %v2089_v29 = vadd.f32 %v1833_v8, %v1193_v34  ;;  %v2097_v61 = vadd.f32 %v1841_v56, %v1201_v14  ;;  %v2084_v1 = vadd.f32 %v1828_v36, %v1188_v38  ;;  %v821_v55 = vmul.f32 %v6742_v51, %v6807_v28 }
 0x1e8   : > { %v1840_v58 = vmul.f32 %v1584_v21, %v816_v7  ;;  %2900 = vmatprep.subr.bf16.mxu1 %v2899_v17  ;;  %v2092_v22 = vadd.f32 %v1836_v44, %v1196_v30  ;;  %v2088_v57 = vadd.f32 %v1832_v31, %v1192_v41  ;;  %v829_v16 = vmul.f32 %v6742_v51, %v6808_v33  ;;  %v1017_v30 = vld [vmem:[%s3514_s27 + $0x238] sm:$0xff]  ;;  %v5712_v7 = vld [vmem:[%s3514_s27 + $0x268] sm:$0xff]  ;;  %v6809_v44 = vld [vmem:[#allocation21_spill] sm:$0xff] }
 0x1e9   : > { %v1204_v27 = vunpack.c.l.bf16 %v5677_v12  ;;  %v3027_v32 = vpack.c.bf16 %v2097_v61, %v2089_v29  ;;  %v1205_v38 = vunpack.c.h.bf16 %v5677_v12  ;;  %v1212_v49 = vunpack.c.l.bf16 %v5680_v10 }
 0x1ea   : > { %v2096_v63 = vadd.f32 %v1840_v58, %v1200_v48  ;;  %v2901_v26 = vpack.c.bf16 %v2092_v22, %v2084_v1  ;;  %v1213_v52 = vunpack.c.h.bf16 %v5680_v10  ;;  %v1588_v3 = vunpack.c.l.bf16 %v1395_v60  ;;  %v1403_v10 = vld [vmem:[%s3521_s13 + $0x248] sm:$0xff] }
 0x1eb   : > { %v1589_v19 = vunpack.c.h.bf16 %v1395_v60  ;;  %3028 = vmatprep.subr.bf16.mxu0 %v3027_v32  ;;  %v1596_v40 = vunpack.c.l.bf16 %v1399_v59  ;;  %v1597_v53 = vunpack.c.h.bf16 %v1399_v59  ;;  %v825_v50 = vmul.f32 %v6755_v15, %v6807_v28  ;;  %v6810_v58 = vld [vmem:[#allocation18_spill] sm:$0xff] }
 0x1ec   : > { %v3029_v45 = vpack.c.bf16 %v2096_v63, %v2088_v57  ;;  %2902 = vmatpush1.bf16.xpose.msra.mxu1 %v2901_v26  ;;  %v833_v20 = vmul.f32 %v6755_v15, %v6808_v33  ;;  %v1208_v47 = vunpack.c.l.bf16 %v1013_v18  ;;  %v1209_v4 = vunpack.c.h.bf16 %v1013_v18  ;;  %v1407_v60 = vld [vmem:[%s3521_s13 + $0x268] sm:$0xff]  ;;  %v1405_v18 = vld [vmem:[%s3521_s13 + $0x258] sm:$0xff] }
 0x1ed   : > { %v1845_v24 = vmul.f32 %v1589_v19, %v821_v55  ;;  %v1853_v39 = vmul.f32 %v1597_v53, %v829_v16  ;;  %v1217_v23 = vunpack.c.h.bf16 %v1017_v30  ;;  %v1592_v9 = vunpack.c.l.bf16 %v1397_v25 }
 0x1ee   : > { %3030 = vmatpush1.bf16.xpose.msra.mxu0 %v3029_v45  ;;  %v1593_v37 = vunpack.c.h.bf16 %v1397_v25  ;;  %v1600_v34 = vunpack.c.l.bf16 %v1401_v11  ;;  %v1601_v62 = vunpack.c.h.bf16 %v1401_v11  ;;  %v820_v14 = vmul.f32 %v6758_v46, %v6807_v28 }
 0x1ef   : > { %v2101_v41 = vadd.f32 %v1845_v24, %v1205_v38  ;;  %v2109_v0 = vadd.f32 %v1853_v39, %v1213_v52  ;;  %v828_v35 = vmul.f32 %v6758_v46, %v6808_v33  ;;  %v824_v21 = vmul.f32 %v6759_v54, %v6807_v28 }
 0x1f0   : > { %v1849_v2 = vmul.f32 %v1593_v37, %v825_v50  ;;  %v1216_v5 = vunpack.c.l.bf16 %v1017_v30  ;;  %v1857_v13 = vmul.f32 %v1601_v62, %v833_v20  ;;  %v1844_v42 = vmul.f32 %v1588_v3, %v820_v14  ;;  %v1409_v30 = vld [vmem:[%s3521_s13 + $0x278] sm:$0xff] }
 0x1f1   : > { %v832_v8 = vmul.f32 %v6759_v54, %v6808_v33  ;;  %v2903_v43 = vpack.c.bf16 %v2109_v0, %v2101_v41  ;;  %v1852_v56 = vmul.f32 %v1596_v40, %v828_v35  ;;  %v1848_v36 = vmul.f32 %v1592_v9, %v824_v21  ;;  %v5741_v35 = vld [vmem:[%s3514_s27 + $0x288] sm:$0xff] }
 0x1f2   : > { %v2105_v48 = vadd.f32 %v1849_v2, %v1209_v4  ;;  %v2113_v12 = vadd.f32 %v1857_v13, %v1217_v23  ;;  %v2100_v17 = vadd.f32 %v1844_v42, %v1204_v27  ;;  %v837_v31 = vmul.f32 %v6742_v51, %v6809_v44  ;;  %v1021_v27 = vld [vmem:[%s3514_s27 + $0x258] sm:$0xff] }
 0x1f3   : > { %v1856_v29 = vmul.f32 %v1600_v34, %v832_v8  ;;  %2904 = vmatprep.subr.bf16.mxu1 %v2903_v43  ;;  %v2108_v61 = vadd.f32 %v1852_v56, %v1212_v49  ;;  %v2104_v1 = vadd.f32 %v1848_v36, %v1208_v47  ;;  %v845_v28 = vmul.f32 %v6742_v51, %v6810_v58  ;;  %v1025_v49 = vld [vmem:[%s3514_s27 + $0x278] sm:$0xff]  ;;  %v5744_v8 = vld [vmem:[%s3514_s27 + $0x2a8] sm:$0xff] }
 0x1f4   : > { %v1220_v55 = vunpack.c.l.bf16 %v5709_v6  ;;  %v3031_v22 = vpack.c.bf16 %v2113_v12, %v2105_v48  ;;  %v1221_v33 = vunpack.c.h.bf16 %v5709_v6  ;;  %v1228_v16 = vunpack.c.l.bf16 %v5712_v7  ;;  %v6811_v56 = vld [vmem:[#allocation22_spill] sm:$0xff] }
 0x1f5   : > { %v2112_v57 = vadd.f32 %v1856_v29, %v1216_v5  ;;  %v2905_v59 = vpack.c.bf16 %v2108_v61, %v2100_v17  ;;  %v1229_v32 = vunpack.c.h.bf16 %v5712_v7  ;;  %v1604_v63 = vunpack.c.l.bf16 %v1403_v10  ;;  %v1411_v7 = vld [vmem:[%s3521_s13 + $0x288] sm:$0xff]  ;;  %v6812_v29 = vld [vmem:[#allocation19_spill] sm:$0xff] }
 0x1f6   : > { %v1605_v38 = vunpack.c.h.bf16 %v1403_v10  ;;  %3032 = vmatprep.subr.bf16.mxu0 %v3031_v22  ;;  %v1612_v52 = vunpack.c.l.bf16 %v1407_v60  ;;  %v1613_v3 = vunpack.c.h.bf16 %v1407_v60  ;;  %v841_v19 = vmul.f32 %v6755_v15, %v6809_v44  ;;  %v1415_v10 = vld [vmem:[%s3521_s13 + $0x2a8] sm:$0xff] }
 0x1f7   : > { %v3033_v26 = vpack.c.bf16 %v2112_v57, %v2104_v1  ;;  %2906 = vmatpush1.bf16.xpose.msra.mxu1 %v2905_v59  ;;  %v849_v45 = vmul.f32 %v6755_v15, %v6810_v58  ;;  %v1224_v40 = vunpack.c.l.bf16 %v1021_v27  ;;  %v1225_v53 = vunpack.c.h.bf16 %v1021_v27  ;;  %v1413_v27 = vld [vmem:[%s3521_s13 + $0x298] sm:$0xff] }
 0x1f8   : > { %v1861_v25 = vmul.f32 %v1605_v38, %v837_v31  ;;  %v1869_v50 = vmul.f32 %v1613_v3, %v845_v28  ;;  %v1233_v11 = vunpack.c.h.bf16 %v1025_v49  ;;  %v1608_v24 = vunpack.c.l.bf16 %v1405_v18 }
 0x1f9   : > { %3034 = vmatpush1.bf16.xpose.msra.mxu0 %v3033_v26  ;;  %v1609_v20 = vunpack.c.h.bf16 %v1405_v18  ;;  %v1616_v4 = vunpack.c.l.bf16 %v1409_v30  ;;  %v1617_v39 = vunpack.c.h.bf16 %v1409_v30  ;;  %v836_v23 = vmul.f32 %v6758_v46, %v6809_v44 }
 0x1fa   : > { %v2117_v47 = vadd.f32 %v1861_v25, %v1221_v33  ;;  %v2125_v9 = vadd.f32 %v1869_v50, %v1229_v32  ;;  %v844_v41 = vmul.f32 %v6758_v46, %v6810_v58  ;;  %v840_v34 = vmul.f32 %v6759_v54, %v6809_v44 }
 0x1fb   : > { %v1865_v37 = vmul.f32 %v1609_v20, %v841_v19  ;;  %v1232_v62 = vunpack.c.l.bf16 %v1025_v49  ;;  %v1873_v14 = vmul.f32 %v1617_v39, %v849_v45  ;;  %v1860_v0 = vmul.f32 %v1604_v63, %v836_v23  ;;  %v1417_v49 = vld [vmem:[%s3521_s13 + $0x2b8] sm:$0xff] }
 0x1fc   : > { %v848_v2 = vmul.f32 %v6759_v54, %v6810_v58  ;;  %v2907_v21 = vpack.c.bf16 %v2125_v9, %v2117_v47  ;;  %v1868_v13 = vmul.f32 %v1612_v52, %v844_v41  ;;  %v1864_v42 = vmul.f32 %v1608_v24, %v840_v34  ;;  %v5773_v41 = vld [vmem:[%s3514_s27 + $0x2c8] sm:$0xff] }
 0x1fd   : > { %v2121_v5 = vadd.f32 %v1865_v37, %v1225_v53  ;;  %v2129_v6 = vadd.f32 %v1873_v14, %v1233_v11  ;;  %v2116_v43 = vadd.f32 %v1860_v0, %v1220_v55  ;;  %v853_v36 = vmul.f32 %v6742_v51, %v6811_v56  ;;  %v1029_v55 = vld [vmem:[%s3514_s27 + $0x298] sm:$0xff] }
 0x1fe   : > { %v1872_v48 = vmul.f32 %v1616_v4, %v848_v2  ;;  %2908 = vmatprep.subr.bf16.mxu1 %v2907_v21  ;;  %v2124_v12 = vadd.f32 %v1868_v13, %v1228_v16  ;;  %v2120_v17 = vadd.f32 %v1864_v42, %v1224_v40  ;;  %v861_v44 = vmul.f32 %v6742_v51, %v6812_v29  ;;  %v1033_v16 = vld [vmem:[%s3514_s27 + $0x2b8] sm:$0xff]  ;;  %v5776_v2 = vld [vmem:[%s3514_s27 + $0x2e8] sm:$0xff] }
 0x1ff   : > { %v1236_v31 = vunpack.c.l.bf16 %v5741_v35  ;;  %v3035_v61 = vpack.c.bf16 %v2129_v6, %v2121_v5  ;;  %v1237_v58 = vunpack.c.h.bf16 %v5741_v35  ;;  %v1244_v28 = vunpack.c.l.bf16 %v5744_v8  ;;  %v6813_v13 = vld [vmem:[#allocation20_spill] sm:$0xff] }
 0x200   : > { %v2128_v1 = vadd.f32 %v1872_v48, %v1232_v62  ;;  %v2909_v60 = vpack.c.bf16 %v2124_v12, %v2116_v43  ;;  %v1245_v22 = vunpack.c.h.bf16 %v5744_v8  ;;  %v1620_v57 = vunpack.c.l.bf16 %v1411_v7  ;;  %v1419_v8 = vld [vmem:[%s3521_s13 + $0x2c8] sm:$0xff]  ;;  %v6814_v48 = vld [vmem:[#allocation23_spill] sm:$0xff] }
 0x201   : > { %v1621_v33 = vunpack.c.h.bf16 %v1411_v7  ;;  %3036 = vmatprep.subr.bf16.mxu0 %v3035_v61  ;;  %v1628_v32 = vunpack.c.l.bf16 %v1415_v10  ;;  %v1629_v63 = vunpack.c.h.bf16 %v1415_v10  ;;  %v857_v38 = vmul.f32 %v6755_v15, %v6811_v56  ;;  %v1423_v7 = vld [vmem:[%s3521_s13 + $0x2e8] sm:$0xff] }
 0x202   : > { %v3037_v59 = vpack.c.bf16 %v2128_v1, %v2120_v17  ;;  %2910 = vmatpush1.bf16.xpose.msra.mxu1 %v2909_v60  ;;  %v865_v26 = vmul.f32 %v6755_v15, %v6812_v29  ;;  %v1240_v52 = vunpack.c.l.bf16 %v1029_v55  ;;  %v1241_v3 = vunpack.c.h.bf16 %v1029_v55  ;;  %v1421_v55 = vld [vmem:[%s3521_s13 + $0x2d8] sm:$0xff] }
 0x203   : > { %v1877_v18 = vmul.f32 %v1621_v33, %v853_v36  ;;  %v1885_v19 = vmul.f32 %v1629_v63, %v861_v44  ;;  %v1249_v30 = vunpack.c.h.bf16 %v1033_v16  ;;  %v1624_v25 = vunpack.c.l.bf16 %v1413_v27 }
 0x204   : > { %3038 = vmatpush1.bf16.xpose.msra.mxu0 %v3037_v59  ;;  %v1625_v45 = vunpack.c.h.bf16 %v1413_v27  ;;  %v1632_v53 = vunpack.c.l.bf16 %v1417_v49  ;;  %v1633_v50 = vunpack.c.h.bf16 %v1417_v49  ;;  %v852_v11 = vmul.f32 %v6758_v46, %v6811_v56 }
 0x205   : > { %v2133_v40 = vadd.f32 %v1877_v18, %v1237_v58  ;;  %v2141_v24 = vadd.f32 %v1885_v19, %v1245_v22  ;;  %v860_v47 = vmul.f32 %v6758_v46, %v6812_v29  ;;  %v856_v4 = vmul.f32 %v6759_v54, %v6811_v56 }
 0x206   : > { %v1881_v20 = vmul.f32 %v1625_v45, %v857_v38  ;;  %v1248_v39 = vunpack.c.l.bf16 %v1033_v16  ;;  %v1889_v23 = vmul.f32 %v1633_v50, %v865_v26  ;;  %v1876_v9 = vmul.f32 %v1620_v57, %v852_v11  ;;  %v1425_v16 = vld [vmem:[%s3521_s13 + $0x2f8] sm:$0xff] }
 0x207   : > { %v864_v37 = vmul.f32 %v6759_v54, %v6812_v29  ;;  %v2911_v34 = vpack.c.bf16 %v2141_v24, %v2133_v40  ;;  %v1884_v14 = vmul.f32 %v1628_v32, %v860_v47  ;;  %v1880_v0 = vmul.f32 %v1624_v25, %v856_v4  ;;  %v5805_v47 = vld [vmem:[%s3514_s27 + $0x308] sm:$0xff] }
 0x208   : > { %v2137_v62 = vadd.f32 %v1881_v20, %v1241_v3  ;;  %v2145_v35 = vadd.f32 %v1889_v23, %v1249_v30  ;;  %v2132_v21 = vadd.f32 %v1876_v9, %v1236_v31  ;;  %v869_v42 = vmul.f32 %v6742_v51, %v6813_v13  ;;  %v1037_v31 = vld [vmem:[%s3514_s27 + $0x2d8] sm:$0xff] }
 0x209   : > { %v1888_v5 = vmul.f32 %v1632_v53, %v864_v37  ;;  %2912 = vmatprep.subr.bf16.mxu1 %v2911_v34  ;;  %v2140_v6 = vadd.f32 %v1884_v14, %v1244_v28  ;;  %v2136_v43 = vadd.f32 %v1880_v0, %v1240_v52  ;;  %v877_v56 = vmul.f32 %v6742_v51, %v6814_v48  ;;  %v1041_v28 = vld [vmem:[%s3514_s27 + $0x2f8] sm:$0xff]  ;;  %v5808_v37 = vld [vmem:[%s3514_s27 + $0x328] sm:$0xff]  ;;  %v6815_v14 = vld [vmem:[#allocation25_spill] sm:$0xff] }
 0x20a   : > { %v1252_v36 = vunpack.c.l.bf16 %v5773_v41  ;;  %v3039_v12 = vpack.c.bf16 %v2145_v35, %v2137_v62  ;;  %v1253_v29 = vunpack.c.h.bf16 %v5773_v41  ;;  %v1260_v44 = vunpack.c.l.bf16 %v5776_v2 }
 0x20b   : > { %v2144_v17 = vadd.f32 %v1888_v5, %v1248_v39  ;;  %v2913_v10 = vpack.c.bf16 %v2140_v6, %v2132_v21  ;;  %v1261_v61 = vunpack.c.h.bf16 %v5776_v2  ;;  %v1636_v1 = vunpack.c.l.bf16 %v1419_v8  ;;  %v1427_v2 = vld [vmem:[%s3521_s13 + $0x308] sm:$0xff]  ;;  %v6816_v5 = vld [vmem:[#allocation24_spill] sm:$0xff] }
 0x20c   : > { %v1637_v58 = vunpack.c.h.bf16 %v1419_v8  ;;  %3040 = vmatprep.subr.bf16.mxu0 %v3039_v12  ;;  %v1644_v22 = vunpack.c.l.bf16 %v1423_v7  ;;  %v1645_v57 = vunpack.c.h.bf16 %v1423_v7  ;;  %v873_v33 = vmul.f32 %v6755_v15, %v6813_v13  ;;  %v1431_v8 = vld [vmem:[%s3521_s13 + $0x328] sm:$0xff] }
 0x20d   : > { %v3041_v60 = vpack.c.bf16 %v2144_v17, %v2136_v43  ;;  %2914 = vmatpush1.bf16.xpose.msra.mxu1 %v2913_v10  ;;  %v881_v59 = vmul.f32 %v6755_v15, %v6814_v48  ;;  %v1256_v32 = vunpack.c.l.bf16 %v1037_v31  ;;  %v1257_v63 = vunpack.c.h.bf16 %v1037_v31  ;;  %v1429_v31 = vld [vmem:[%s3521_s13 + $0x318] sm:$0xff] }
 0x20e   : > { %v1893_v27 = vmul.f32 %v1637_v58, %v869_v42  ;;  %v1901_v38 = vmul.f32 %v1645_v57, %v877_v56  ;;  %v1265_v49 = vunpack.c.h.bf16 %v1041_v28  ;;  %v1640_v18 = vunpack.c.l.bf16 %v1421_v55 }
 0x20f   : > { %3042 = vmatpush1.bf16.xpose.msra.mxu0 %v3041_v60  ;;  %v1641_v26 = vunpack.c.h.bf16 %v1421_v55  ;;  %v1648_v3 = vunpack.c.l.bf16 %v1425_v16  ;;  %v1649_v19 = vunpack.c.h.bf16 %v1425_v16  ;;  %v868_v30 = vmul.f32 %v6758_v46, %v6813_v13 }
 0x210   : > { %v2149_v52 = vadd.f32 %v1893_v27, %v1253_v29  ;;  %v2157_v25 = vadd.f32 %v1901_v38, %v1261_v61  ;;  %v876_v40 = vmul.f32 %v6758_v46, %v6814_v48  ;;  %v872_v53 = vmul.f32 %v6759_v54, %v6813_v13 }
 0x211   : > { %v1897_v45 = vmul.f32 %v1641_v26, %v873_v33  ;;  %v1264_v50 = vunpack.c.l.bf16 %v1041_v28  ;;  %v1905_v11 = vmul.f32 %v1649_v19, %v881_v59  ;;  %v1892_v24 = vmul.f32 %v1636_v1, %v868_v30  ;;  %v1433_v28 = vld [vmem:[%s3521_s13 + $0x338] sm:$0xff] }
 0x212   : > { %v880_v20 = vmul.f32 %v6759_v54, %v6814_v48  ;;  %v2915_v4 = vpack.c.bf16 %v2157_v25, %v2149_v52  ;;  %v1900_v23 = vmul.f32 %v1644_v22, %v876_v40  ;;  %v1896_v9 = vmul.f32 %v1640_v18, %v872_v53  ;;  %v5837_v40 = vld [vmem:[%s3514_s27 + $0x348] sm:$0xff] }
 0x213   : > { %v2153_v39 = vadd.f32 %v1897_v45, %v1257_v63  ;;  %v2161_v41 = vadd.f32 %v1905_v11, %v1265_v49  ;;  %v2148_v34 = vadd.f32 %v1892_v24, %v1252_v36  ;;  %v885_v0 = vmul.f32 %v6742_v51, %v6815_v14  ;;  %v1045_v36 = vld [vmem:[%s3514_s27 + $0x318] sm:$0xff] }
 0x214   : > { %v1904_v62 = vmul.f32 %v1648_v3, %v880_v20  ;;  %2916 = vmatprep.subr.bf16.mxu1 %v2915_v4  ;;  %v2156_v35 = vadd.f32 %v1900_v23, %v1260_v44  ;;  %v2152_v21 = vadd.f32 %v1896_v9, %v1256_v32  ;;  %v893_v13 = vmul.f32 %v6742_v51, %v6816_v5  ;;  %v1049_v44 = vld [vmem:[%s3514_s27 + $0x338] sm:$0xff]  ;;  %v5840_v20 = vld [vmem:[%s3514_s27 + $0x368] sm:$0xff] }
 0x215   : > { %v1268_v42 = vunpack.c.l.bf16 %v5805_v47  ;;  %v3043_v6 = vpack.c.bf16 %v2161_v41, %v2153_v39  ;;  %v1269_v48 = vunpack.c.h.bf16 %v5805_v47  ;;  %v1276_v56 = vunpack.c.l.bf16 %v5808_v37  ;;  %v6817_v23 = vld [vmem:[#allocation28_spill] sm:$0xff] }
 0x216   : > { %v2160_v43 = vadd.f32 %v1904_v62, %v1264_v50  ;;  %v2917_v7 = vpack.c.bf16 %v2156_v35, %v2148_v34  ;;  %v1277_v12 = vunpack.c.h.bf16 %v5808_v37  ;;  %v1652_v17 = vunpack.c.l.bf16 %v1427_v2  ;;  %v1435_v37 = vld [vmem:[%s3521_s13 + $0x348] sm:$0xff] }
 0x217   : > { %v1653_v29 = vunpack.c.h.bf16 %v1427_v2  ;;  %3044 = vmatprep.subr.bf16.mxu0 %v3043_v6  ;;  %v1660_v61 = vunpack.c.l.bf16 %v1431_v8  ;;  %v1661_v1 = vunpack.c.h.bf16 %v1431_v8  ;;  %v889_v58 = vmul.f32 %v6755_v15, %v6815_v14  ;;  %v6818_v62 = vld [vmem:[#allocation26_spill] sm:$0xff] }
 0x218   : > { %v3045_v10 = vpack.c.bf16 %v2160_v43, %v2152_v21  ;;  %2918 = vmatpush1.bf16.xpose.msra.mxu1 %v2917_v7  ;;  %v897_v60 = vmul.f32 %v6755_v15, %v6816_v5  ;;  %v1272_v22 = vunpack.c.l.bf16 %v1045_v36  ;;  %v1273_v57 = vunpack.c.h.bf16 %v1045_v36  ;;  %v1439_v2 = vld [vmem:[%s3521_s13 + $0x368] sm:$0xff]  ;;  %v1437_v36 = vld [vmem:[%s3521_s13 + $0x358] sm:$0xff] }
 0x219   : > { %v1909_v55 = vmul.f32 %v1653_v29, %v885_v0  ;;  %v1917_v33 = vmul.f32 %v1661_v1, %v893_v13  ;;  %v1281_v16 = vunpack.c.h.bf16 %v1049_v44  ;;  %v1656_v27 = vunpack.c.l.bf16 %v1429_v31 }
 0x21a   : > { %3046 = vmatpush1.bf16.xpose.msra.mxu0 %v3045_v10  ;;  %v1657_v59 = vunpack.c.h.bf16 %v1429_v31  ;;  %v1664_v63 = vunpack.c.l.bf16 %v1433_v28  ;;  %v1665_v38 = vunpack.c.h.bf16 %v1433_v28  ;;  %v884_v49 = vmul.f32 %v6758_v46, %v6815_v14 }
 0x21b   : > { %v2165_v32 = vadd.f32 %v1909_v55, %v1269_v48  ;;  %v2173_v18 = vadd.f32 %v1917_v33, %v1277_v12  ;;  %v892_v52 = vmul.f32 %v6758_v46, %v6816_v5  ;;  %v888_v3 = vmul.f32 %v6759_v54, %v6815_v14 }
 0x21c   : > { %v1913_v26 = vmul.f32 %v1657_v59, %v889_v58  ;;  %v1280_v19 = vunpack.c.l.bf16 %v1049_v44  ;;  %v1921_v30 = vmul.f32 %v1665_v38, %v897_v60  ;;  %v1908_v25 = vmul.f32 %v1652_v17, %v884_v49  ;;  %v1441_v44 = vld [vmem:[%s3521_s13 + $0x378] sm:$0xff] }
 0x21d   : > { %v896_v45 = vmul.f32 %v6759_v54, %v6816_v5  ;;  %v2919_v53 = vpack.c.bf16 %v2173_v18, %v2165_v32  ;;  %v1916_v11 = vmul.f32 %v1660_v61, %v892_v52  ;;  %v1912_v24 = vmul.f32 %v1656_v27, %v888_v3  ;;  %v5869_v52 = vld [vmem:[%s3514_s27 + $0x388] sm:$0xff] }
 0x21e   : > { %v2169_v50 = vadd.f32 %v1913_v26, %v1273_v57  ;;  %v2177_v47 = vadd.f32 %v1921_v30, %v1281_v16  ;;  %v2164_v4 = vadd.f32 %v1908_v25, %v1268_v42  ;;  %v901_v9 = vmul.f32 %v6742_v51, %v6817_v23  ;;  %v1053_v42 = vld [vmem:[%s3514_s27 + $0x358] sm:$0xff] }
 0x21f   : > { %v1920_v39 = vmul.f32 %v1664_v63, %v896_v45  ;;  %2920 = vmatprep.subr.bf16.mxu1 %v2919_v53  ;;  %v2172_v41 = vadd.f32 %v1916_v11, %v1276_v56  ;;  %v2168_v34 = vadd.f32 %v1912_v24, %v1272_v22  ;;  %v909_v14 = vmul.f32 %v6742_v51, %v6818_v62  ;;  %v1057_v56 = vld [vmem:[%s3514_s27 + $0x378] sm:$0xff]  ;;  %v5872_v45 = vld [vmem:[%s3514_s27 + $0x3a8] sm:$0xff]  ;;  %v6819_v11 = vld [vmem:[#allocation27_spill] sm:$0xff] }
 0x220   : > { %v1284_v0 = vunpack.c.l.bf16 %v5837_v40  ;;  %v3047_v35 = vpack.c.bf16 %v2177_v47, %v2169_v50  ;;  %v1285_v5 = vunpack.c.h.bf16 %v5837_v40  ;;  %v1292_v13 = vunpack.c.l.bf16 %v5840_v20 }
 0x221   : > { %v2176_v21 = vadd.f32 %v1920_v39, %v1280_v19  ;;  %v2921_v8 = vpack.c.bf16 %v2172_v41, %v2164_v4  ;;  %v1293_v6 = vunpack.c.h.bf16 %v5840_v20  ;;  %v1668_v43 = vunpack.c.l.bf16 %v1435_v37  ;;  %v1443_v20 = vld [vmem:[%s3521_s13 + $0x388] sm:$0xff]  ;;  %v6820_v39 = vld [vmem:[#allocation29_spill] sm:$0xff] }
 0x222   : > { %v1669_v48 = vunpack.c.h.bf16 %v1435_v37  ;;  %3048 = vmatprep.subr.bf16.mxu0 %v3047_v35  ;;  %v1676_v12 = vunpack.c.l.bf16 %v1439_v2  ;;  %v1677_v17 = vunpack.c.h.bf16 %v1439_v2  ;;  %v905_v29 = vmul.f32 %v6755_v15, %v6817_v23  ;;  %v1447_v37 = vld [vmem:[%s3521_s13 + $0x3a8] sm:$0xff] }
 0x223   : > { %v3049_v7 = vpack.c.bf16 %v2176_v21, %v2168_v34  ;;  %2922 = vmatpush1.bf16.xpose.msra.mxu1 %v2921_v8  ;;  %v913_v10 = vmul.f32 %v6755_v15, %v6818_v62  ;;  %v1288_v61 = vunpack.c.l.bf16 %v1053_v42  ;;  %v1289_v1 = vunpack.c.h.bf16 %v1053_v42  ;;  %v1445_v42 = vld [vmem:[%s3521_s13 + $0x398] sm:$0xff] }
 0x224   : > { %v1925_v31 = vmul.f32 %v1669_v48, %v901_v9  ;;  %v1933_v58 = vmul.f32 %v1677_v17, %v909_v14  ;;  %v1297_v28 = vunpack.c.h.bf16 %v1057_v56  ;;  %v1672_v55 = vunpack.c.l.bf16 %v1437_v36 }
 0x225   : > { %3050 = vmatpush1.bf16.xpose.msra.mxu0 %v3049_v7  ;;  %v1673_v60 = vunpack.c.h.bf16 %v1437_v36  ;;  %v1680_v57 = vunpack.c.l.bf16 %v1441_v44  ;;  %v1681_v33 = vunpack.c.h.bf16 %v1441_v44  ;;  %v900_v16 = vmul.f32 %v6758_v46, %v6817_v23 }
 0x226   : > { %v2181_v22 = vadd.f32 %v1925_v31, %v1285_v5  ;;  %v2189_v27 = vadd.f32 %v1933_v58, %v1293_v6  ;;  %v908_v32 = vmul.f32 %v6758_v46, %v6818_v62  ;;  %v904_v63 = vmul.f32 %v6759_v54, %v6817_v23 }
 0x227   : > { %v1929_v59 = vmul.f32 %v1673_v60, %v905_v29  ;;  %v1296_v38 = vunpack.c.l.bf16 %v1057_v56  ;;  %v1937_v49 = vmul.f32 %v1681_v33, %v913_v10  ;;  %v1924_v18 = vmul.f32 %v1668_v43, %v900_v16  ;;  %v1449_v56 = vld [vmem:[%s3521_s13 + $0x3b8] sm:$0xff] }
 0x228   : > { %v912_v26 = vmul.f32 %v6759_v54, %v6818_v62  ;;  %v2923_v3 = vpack.c.bf16 %v2189_v27, %v2181_v22  ;;  %v1932_v30 = vmul.f32 %v1676_v12, %v908_v32  ;;  %v1928_v25 = vmul.f32 %v1672_v55, %v904_v63  ;;  %v1067_v32 = vld [vmem:[%s3514_s27 + $0x3c8] sm:$0xff] }
 0x229   : > { %v2185_v19 = vadd.f32 %v1929_v59, %v1289_v1  ;;  %v2193_v40 = vadd.f32 %v1937_v49, %v1297_v28  ;;  %v2180_v53 = vadd.f32 %v1924_v18, %v1284_v0  ;;  %v917_v24 = vmul.f32 %v6742_v51, %v6819_v11  ;;  %v1061_v0 = vld [vmem:[%s3514_s27 + $0x398] sm:$0xff] }
 0x22a   : > { %v1936_v50 = vmul.f32 %v1680_v57, %v912_v26  ;;  %2924 = vmatprep.subr.bf16.mxu1 %v2923_v3  ;;  %v2188_v47 = vadd.f32 %v1932_v30, %v1292_v13  ;;  %v2184_v4 = vadd.f32 %v1928_v25, %v1288_v61  ;;  %v925_v23 = vmul.f32 %v6742_v51, %v6820_v39  ;;  %v1065_v13 = vld [vmem:[%s3514_s27 + $0x3b8] sm:$0xff]  ;;  %v1071_v26 = vld [vmem:[%s3514_s27 + $0x3e8] sm:$0xff] }
 0x22b   : > { %v1300_v9 = vunpack.c.l.bf16 %v5869_v52  ;;  %v3051_v41 = vpack.c.bf16 %v2193_v40, %v2185_v19  ;;  %v1301_v62 = vunpack.c.h.bf16 %v5869_v52  ;;  %v1308_v14 = vunpack.c.l.bf16 %v5872_v45  ;;  %v6821_v30 = vld [vmem:[#allocation30_spill] sm:$0xff] }
 0x22c   : > { %v2192_v34 = vadd.f32 %v1936_v50, %v1296_v38  ;;  %v2925_v2 = vpack.c.bf16 %v2188_v47, %v2180_v53  ;;  %v1309_v35 = vunpack.c.h.bf16 %v5872_v45  ;;  %v1684_v21 = vunpack.c.l.bf16 %v1443_v20  ;;  %v1451_v45 = vld [vmem:[%s3521_s13 + $0x3c8] sm:$0xff]  ;;  %v6822_v50 = vld [vmem:[#allocation31_spill] sm:$0xff] }
 0x22d   : > { %v1685_v5 = vunpack.c.h.bf16 %v1443_v20  ;;  %3052 = vmatprep.subr.bf16.mxu0 %v3051_v41  ;;  %v1692_v6 = vunpack.c.l.bf16 %v1447_v37  ;;  %v1693_v43 = vunpack.c.h.bf16 %v1447_v37  ;;  %v921_v48 = vmul.f32 %v6755_v15, %v6819_v11  ;;  %v1455_v20 = vld [vmem:[%s3521_s13 + $0x3e8] sm:$0xff] }
 0x22e   : > { %v3053_v8 = vpack.c.bf16 %v2192_v34, %v2184_v4  ;;  %2926 = vmatpush1.bf16.xpose.msra.mxu1 %v2925_v2  ;;  %v929_v7 = vmul.f32 %v6755_v15, %v6820_v39  ;;  %v1304_v12 = vunpack.c.l.bf16 %v1061_v0  ;;  %v1305_v17 = vunpack.c.h.bf16 %v1061_v0  ;;  %v1073_v0 = vld [vmem:[%s3514_s27 + $0x3f8] sm:$0xff] }
 0x22f   : > { %v1941_v36 = vmul.f32 %v1685_v5, %v917_v24  ;;  %v1949_v29 = vmul.f32 %v1693_v43, %v925_v23  ;;  %v1313_v44 = vunpack.c.h.bf16 %v1065_v13  ;;  %v1688_v31 = vunpack.c.l.bf16 %v1445_v42  ;;  %v1453_v2 = vld [vmem:[%s3521_s13 + $0x3d8] sm:$0xff] }
 0x230   : > { %3054 = vmatpush1.bf16.xpose.msra.mxu0 %v3053_v8  ;;  %v1689_v10 = vunpack.c.h.bf16 %v1445_v42  ;;  %v1696_v1 = vunpack.c.l.bf16 %v1449_v56  ;;  %v1697_v58 = vunpack.c.h.bf16 %v1449_v56  ;;  %v916_v28 = vmul.f32 %v6758_v46, %v6819_v11  ;;  %v1457_v5 = vld [vmem:[%s3521_s13 + $0x3f8] sm:$0xff]  ;;  %s2793_s13 = sshll.u32 %s3510_s28, 5 }
 0x231   : > { %v2197_v61 = vadd.f32 %v1941_v36, %v1301_v62  ;;  %v2205_v55 = vadd.f32 %v1949_v29, %v1309_v35  ;;  %v924_v22 = vmul.f32 %v6758_v46, %v6820_v39  ;;  %v920_v57 = vmul.f32 %v6759_v54, %v6819_v11  ;;  %s413_s8 = scalar_lea.vmem [#allocation8], %s2793_s13 }
 0x232   : > { %v1945_v60 = vmul.f32 %v1689_v10, %v921_v48  ;;  %v1312_v33 = vunpack.c.l.bf16 %v1065_v13  ;;  %v1953_v16 = vmul.f32 %v1697_v58, %v929_v7  ;;  %v1940_v27 = vmul.f32 %v1684_v21, %v916_v28  ;;  %s2606_s16 = sshll.u32 %s413_s8, 4  ;;  %s5952_s16 = int_to_ptr.vmem [resolvable:$true] %s2606_s16 }
 0x233   : > { %v928_v59 = vmul.f32 %v6759_v54, %v6820_v39  ;;  %v2927_v63 = vpack.c.bf16 %v2205_v55, %v2197_v61  ;;  %v1948_v49 = vmul.f32 %v1692_v6, %v924_v22  ;;  %v1944_v18 = vmul.f32 %v1688_v31, %v920_v57  ;;  %s3210_s15 = scalar_lea.vmem %s5952_s16, 512  ;;  %p3217_p9 = scmp.lt.s32.totalorder %s5952_s16, %s3215_s20 }
 0x234   : > { %v2201_v38 = vadd.f32 %v1945_v60, %v1305_v17  ;;  %v2209_v52 = vadd.f32 %v1953_v16, %v1313_v44  ;;  %v2196_v3 = vadd.f32 %v1940_v27, %v1300_v9  ;;  %v933_v25 = vmul.f32 %v6742_v51, %v6821_v30  ;;  %v1069_v9 = vld [vmem:[%s3514_s27 + $0x3d8] sm:$0xff]  ;;  %s444_s27 = scalar_lea.vmem %s6011_s5, %s6840_s19  ;;  %p3211_p12 = scmp.ne.s32.totalorder %s5952_s16, %s3210_s15 }
 0x235   : > { %v1952_v19 = vmul.f32 %v1696_v1, %v928_v59  ;;  %2928 = vmatprep.subr.bf16.mxu1 %v2927_v63  ;;  %v2204_v40 = vadd.f32 %v1948_v49, %v1308_v14  ;;  %v2200_v53 = vadd.f32 %v1944_v18, %v1304_v12  ;;  %v941_v11 = vmul.f32 %v6742_v51, %v6822_v50  ;;  %v2236_v18 = vld [vmem:[%s6006_s0 + $0x30] sm:$0xff]  ;;  %p3218_p11 = scmp.lt.s32.totalorder %s3216_s14, %s3210_s15 }
 0x236   : > { %v1316_v24 = vunpack.c.l.bf16 %v1067_v32  ;;  %v3055_v47 = vpack.c.bf16 %v2209_v52, %v2201_v38  ;;  %v1317_v39 = vunpack.c.h.bf16 %v1067_v32  ;;  %v1324_v23 = vunpack.c.l.bf16 %v1071_v26  ;;  %v2245_v52 = vld [vmem:[%s6006_s0 + $0x78] sm:$0xff]  ;;  %p3212_p7 = pnand %p3211_p12, %p6826_p13 }
 0x237   : > { %v2208_v4 = vadd.f32 %v1952_v19, %v1312_v33  ;;  %v2929_v37 = vpack.c.bf16 %v2204_v40, %v2196_v3  ;;  %v1325_v41 = vunpack.c.h.bf16 %v1071_v26  ;;  %v1700_v34 = vunpack.c.l.bf16 %v1451_v45  ;;  %v2241_v26 = vld [vmem:[%s6006_s0 + $0x58] sm:$0xff]  ;;  %v2240_v3 = vld [vmem:[%s6006_s0 + $0x50] sm:$0xff]  ;;  %p3219_p1 = por %p3218_p11, %p3217_p9 }
 0x238   : > { %v1701_v62 = vunpack.c.h.bf16 %v1451_v45  ;;  %3056 = vmatprep.subr.bf16.mxu0 %v3055_v47  ;;  %v1708_v35 = vunpack.c.l.bf16 %v1455_v20  ;;  %v1709_v21 = vunpack.c.h.bf16 %v1455_v20  ;;  %v937_v51 = vmul.f32 %v6755_v15, %v6821_v30  ;;  %v2244_v19 = vld [vmem:[%s6006_s0 + $0x70] sm:$0xff]  ;;  %v6823_v45 = vld [vmem:[#allocation13_spill] sm:$0xff]  ;;  %p3213_p10 = pneg %p3212_p7 }
 0x239   : > { %v3057_v14 = vpack.c.bf16 %v2208_v4, %v2200_v53  ;;  %2930 = vmatpush1.bf16.xpose.msra.mxu1 %v2929_v37  ;;  %v945_v42 = vmul.f32 %v6755_v15, %v6822_v50  ;;  %v1320_v8 = vunpack.c.l.bf16 %v1069_v9  ;;  %v1321_v6 = vunpack.c.h.bf16 %v1069_v9 }
 0x23a   : > { %v1957_v13 = vmul.f32 %v1701_v62, %v933_v25  ;;  %v1965_v43 = vmul.f32 %v1709_v21, %v941_v11  ;;  %v1329_v48 = vunpack.c.h.bf16 %v1073_v0  ;;  %v1704_v56 = vunpack.c.l.bf16 %v1453_v2  ;;  %p3220_p6 = pnand %p3219_p1, %p3213_p10 }
 0x23b   : > { %3058 = vmatpush1.bf16.xpose.msra.mxu0 %v3057_v14  ;;  %v1705_v36 = vunpack.c.h.bf16 %v1453_v2  ;;  %v1712_v12 = vunpack.c.l.bf16 %v1457_v5  ;;  %v1713_v17 = vunpack.c.h.bf16 %v1457_v5  ;;  %v932_v29 = vmul.f32 %v6758_v46, %v6821_v30 }
 0x23c   : > { %v2213_v7 = vadd.f32 %v1957_v13, %v1317_v39  ;;  %v2221_v44 = vadd.f32 %v1965_v43, %v1325_v41  ;;  %v940_v10 = vmul.f32 %v6758_v46, %v6822_v50  ;;  %v936_v15 = vmul.f32 %v6759_v54, %v6821_v30  ;;  %v2569_v30 = vld [vmem:[%s444_s27] sm:$0x3] }
 0x23d   : > { %v1961_v31 = vmul.f32 %v1705_v36, %v937_v51  ;;  %v1328_v61 = vunpack.c.l.bf16 %v1073_v0  ;;  %v1969_v1 = vmul.f32 %v1713_v17, %v945_v42  ;;  %v1956_v58 = vmul.f32 %v1700_v34, %v932_v29 }
 0x23e   : > { %v944_v28 = vmul.f32 %v6759_v54, %v6822_v50  ;;  %v2931_v55 = vpack.c.bf16 %v2221_v44, %v2213_v7  ;;  %v1964_v22 = vmul.f32 %v1708_v35, %v940_v10  ;;  %v1960_v57 = vmul.f32 %v1704_v56, %v936_v15  ;;  %v2232_v54 = vld [vmem:[%s6006_s0 + $0x10] sm:$0xff] }
 0x23f   : > { %v2217_v60 = vadd.f32 %v1961_v31, %v1321_v6  ;;  %v2225_v33 = vadd.f32 %v1969_v1, %v1329_v48  ;;  %v2212_v16 = vadd.f32 %v1956_v58, %v1316_v24  ;;  %v6824_v40 = vsub.s32 0, %v6823_v45 }
 0x240   : > { %v1968_v27 = vmul.f32 %v1712_v12, %v944_v28  ;;  %2932 = vmatprep.subr.bf16.mxu1 %v2931_v55  ;;  %v2220_v59 = vadd.f32 %v1964_v22, %v1324_v23  ;;  %v2216_v32 = vadd.f32 %v1960_v57, %v1320_v8  ;;  %v6825_v24 = vsub.s32 1, %v6823_v45 }
 0x241   : > { %v3059_v46 = vpack.c.bf16 %v2225_v33, %v2217_v60  ;;  %v2574_v53 = vrot.slane %v2569_v30, %v6824_v40 }
 0x242   : > { %v2224_v63 = vadd.f32 %v1968_v27, %v1328_v61  ;;  %v2933_v38 = vpack.c.bf16 %v2220_v59, %v2212_v16  ;;  %v2578_v20 = vrot.slane %v2569_v30, %v6825_v24 }
 0x243   : > { %3060 = vmatprep.subr.bf16.mxu0 %v3059_v46 }
 0x244   : > { %v3061_v49 = vpack.c.bf16 %v2224_v63, %v2216_v32  ;;  %2934 = vmatpush1.bf16.xpose.msra.mxu1 %v2933_v38 }
 0x246   : > { %3062 = vmatpush1.bf16.xpose.msra.mxu0 %v3061_v49 }
 0x24b   : > { %2388 = vmatmul.mubr.f32.vlgmr.msra.gmra.mrb[0].mxu1 %v2232_v54 }
 0x24c   : > { %2393 = vmatprep.mubr.f32.mxu1 %v2241_v26 }
 0x24d   : > { %2542 = vmatmul.mubr.f32.vlgmr.msra.gmra.mrb[0].mxu0 %v2236_v18 }
 0x24e   : > { %2547 = vmatprep.mubr.f32.mxu0 %v2245_v52 }
 0x24f   : > { %2394 = vmatmul.mubr.f32.gmra.mrb[2].mxu1 %v2240_v3 }
 0x251   : > { %2548 = vmatmul.mubr.f32.gmra.mrb[2].mxu0 %v2244_v19 }
 0x31e   : > { %v2389_v25 = vpop.f32.mrb[0].mxu1 }
 0x31f   : > { %v2391_v11 = vpop.f32.mrb[1].mxu1 }
 0x320   : > { %v2543_v50 = vpop.f32.mrb[0].mxu0 }
 0x321   : > { %v3063_v47 = vadd.f32 %v2543_v50, %v2389_v25  ;;  %v2545_v4 = vpop.f32.mrb[1].mxu0 }
 0x322   : > { %v3064_v39 = vadd.f32 %v2545_v4, %v2391_v11  ;;  %v2395_v9 = vpop.f32.mrb[2].mxu1 }
 0x323   : > { %v2581_v23 = vadd.f32 %v3063_v47, %v2574_v53  ;;  %v2397_v34 = vpop.f32.mrb[3].mxu1 }
 0x324   : > { %v2582_v37 = vadd.f32 %v3064_v39, %v2578_v20  ;;  %v2549_v41 = vpop.f32.mrb[2].mxu0 }
 0x325   : > { %2585 = vst [vmem:[%s413_s8] sm:$0xff] %v2581_v23  ;;  %v3065_v62 = vadd.f32 %v2549_v41, %v2395_v9  ;;  %v2551_v0 = vpop.f32.mrb[3].mxu0 }
 0x326   : > { %2586 = vst [vmem:[%s413_s8 + $0x8] sm:$0xff] %v2582_v37  ;;  %v3066_v2 = vadd.f32 %v2551_v0, %v2397_v34 }
 0x327   : > { %v2583_v14 = vadd.f32 %v3065_v62, %v2574_v53 }
 0x328   : > { %v2584_v35 = vadd.f32 %v3066_v2, %v2578_v20 }
 0x329   : > { %2587 = vst [vmem:[%s413_s8 + $0x10] sm:$0xff] %v2583_v14 }
 0x32a   : > { %2588 = vst [vmem:[%s413_s8 + $0x18] sm:$0xff] %v2584_v35 }
 0x32b   : > { %3223 = shalt.err (!%p3220_p6)
}
 0x32c   : > { %s3224_s19 = scalar_lea.hbm %s5957_s17, 512  ;;  %s3228_s27 = scalar_lea.hbm %s6012_s6, 1024 }
 0x32d   : > { %p3225_p2 = scmp.ne.s32.totalorder %s5957_s17, %s3224_s19  ;;  %p3229_p8 = scmp.lt.u32.totalorder %s5957_s17, %s6012_s6 }
 0x32e   : > { %p3230_p0 = scmp.lt.u32.totalorder %s3228_s27, %s3224_s19  ;;  %p3232_p12 = scmp.lt.u32.totalorder %s3224_s19, %s5957_s17 }
 0x32f   : > { %p3226_p5 = pnand %p3225_p2, %p6826_p13 }
 0x330   : > { %p3231_p3 = por %p3230_p0, %p3229_p8 }
 0x331   : > { %p3227_p4 = pneg %p3226_p5 }
 0x332   : > { %p3233_p7 = por %p3232_p12, %p3231_p3 }
 0x334   : > { %p3234_p10 = pnand %p3233_p7, %p3227_p4 }
 0x336   : > { %3237 = shalt.err (!%p3234_p10)
}
 0x337   : > { %s3304_s18 = smov 256   ;;  %s3305_s1 = smov 512  }
 0x338   : > { %s3306_s9 = smov 16  }
 0x339   : > { %3079 = dma.vmem_to_hbm [thread:$0]  (%p6826_p13), %s5952_s16, 512, %s5957_s17, %s2590_s24, %s3304_s18, %s3305_s1, %s3306_s9  }
 0x33a PF: > { %s2621_s15 = sand.u32 1, %s3276_s21   ;;  %p6827_p9 = scmp.ne.s32.totalorder %s6269_s12, 0 }
 0x33b   : > { %p6828_p11 = scmp.ge.s32.totalorder %s3296_s26, 2  ;;  %s2622_s30 = scalar_lea.sflag [#allocation5], %s2621_s15 }
 0x33d   : > { %p3089_p1 = pnand %p6828_p11, %p6827_p9 }
 0x33f   : > { %3271 = dma.done.wait (!%p3089_p1), %s2622_s30, 512  }
 0x340   : > { %3273 = vsyncadd (!%p3089_p1), %s2622_s30, 4294966784  ;;  %s25_s26 = sadd.s32 1, %s3296_s26   ;;  %s6829_s10 = sld [smem:[#allocation12_spill]] }
 0x341   : > { %p22_p6 = scmp.ge.s32.totalorder %s25_s26, 4   ;;  %s6830_s21 = smov %s3280_s22 }
 0x342   : > { %s6831_s22 = smov %s3284_s23  ;;  %s6832_s23 = smov %s3398_s11 }
 0x343   : > { %s6833_s24 = smov %s3292_s25  ;;  %24 = sbr.rel (!%p22_p6) target bundleno = 10 (0xa), region = 122 }
 0x346   : > { %s6834_s25 = smov %s6829_s10 }
 0x34a   :  { %2627 = vsyncpa [#allocation4], 1 }
 0x34b   :  { %2629 = vsyncpa [#allocation4 + $0x1], 1 }
 0x34c   :  { %2630 = vsyncpa [#allocation7], 1 }
 0x34d   :  { %2632 = vsyncpa [#allocation7 + $0x1], 1 }
 0x34e   :  { %2633 = vsyncpa [#allocation5], 1 }
 0x34f   :  { %2635 = vsyncpa [#allocation5 + $0x1], 1 }

</bundles_post_ra>
